<compile_context>
chip_gen: v7x
topology: tpu7x:2x2x1
jax: 0.10.0
libtpu: 0.0.40
codegen_flags: <defaults>
</compile_context>

<pallas_src>
import functools
import math

import jax
import jax.numpy as jnp
from jax.experimental import pallas as pl
from jax.experimental.pallas import tpu as pltpu

# Model hyper-parameters (small, consistent with DecoderLayerNAT.__init__).
D_MODEL = 32
N_HEADS = 4
DIM_FF = 64
NUM_LAYERS = 2
EPS = 1e-5          # nn.LayerNorm(d_model, layer_norm_eps) -> eps = 1e-5
NEG_INF = -1e30     # additive mask value (exp underflows to exactly 0)
LANE = 128


# ---------------------------------------------------------------------------
# Wrapper-side parameter packing: everything goes into two 128-lane slabs.
# ---------------------------------------------------------------------------
def _pack_rows(entries, lane=LANE):
    """Pack named 2-D arrays into one [R, lane] f32 slab (one DMA instead of
    one DMA + double-buffer bookkeeping per tensor).  Multi-row entries are
    8-row padded so static slices stay (8,128)-tile aligned; single-row
    entries are packed densely."""
    offsets, blocks, row = {}, [], 0
    for name, arr in entries:
        arr = jnp.asarray(arr, jnp.float32)
        nr, nc = arr.shape
        if nc > lane:
            raise ValueError(f"{name}: {nc} cols > {lane} lanes")
        nr_pad = ((nr + 7) // 8) * 8 if nr > 1 else 1
        block = jnp.zeros((nr_pad, lane), jnp.float32).at[:nr, :nc].set(arr)
        blocks.append(block)
        offsets[name] = (row, nr, nc)
        row += nr_pad
    slab = jnp.concatenate(blocks, axis=0)
    pad = (-slab.shape[0]) % 8
    if pad:
        slab = jnp.concatenate([slab, jnp.zeros((pad, lane), jnp.float32)], 0)
    return slab, offsets


def build_weight_slab(p, d=D_MODEL):
    """All matmul weights (torch [out, in] layout), 128-lane padded."""
    entries = [
        ("sa_wi", p["sa_wi"]),              # [3d, d] packed QKV (self-attn)
        ("sa_wo", p["sa_wo"]),              # [d, d]
        ("pa_wqk", p["pa_wi"][:2 * d]),     # [2d, d] fused Q/K (pos-attn)
        ("pa_wv", p["pa_wi"][2 * d:]),      # [d, d]
        ("pa_wo", p["pa_wo"]),              # [d, d]
        ("ea_wq", p["ea_wi"][:d]),          # [d, d]
        ("ea_wkv", p["ea_wi"][d:]),         # [2d, d] fused K/V (enc-dec attn)
        ("ea_wo", p["ea_wo"]),              # [d, d]
        ("ff1w", p["ff1w"]),                # [f, d]
        ("ff2w", p["ff2w"]),                # [d, f]
    ]
    return _pack_rows(entries)


def build_vector_slab(p, pe_tiled, mask_self, mask_ed, d=D_MODEL):
    """PE, batch block-diag masks, all biases and LayerNorm params.
    Multi-row entries first so their static slices start 8-row aligned."""
    entries = [
        ("pe", pe_tiled),                      # [B*S, d]
        ("mask_self", mask_self),              # [B*S, B*S]
        ("mask_ed", mask_ed),                  # [B*S, B*Se]
        ("sa_bi", p["sa_bi"]),                 # [1, 3d]
        ("sa_bo", p["sa_bo"]),                 # [1, d]
        ("pa_bqk", p["pa_bi"][:, :2 * d]),     # [1, 2d]
        ("pa_bv", p["pa_bi"][:, 2 * d:]),      # [1, d]
        ("pa_bo", p["pa_bo"]),                 # [1, d]
        ("ea_bq", p["ea_bi"][:, :d]),          # [1, d]
        ("ea_bkv", p["ea_bi"][:, d:]),         # [1, 2d]
        ("ea_bo", p["ea_bo"]),                 # [1, d]
        ("ff1b", p["ff1b"]),                   # [1, f]
        ("ff2b", p["ff2b"]),                   # [1, d]
        ("n1g", p["n1g"]), ("n1b", p["n1b"]),
        ("n2g", p["n2g"]), ("n2b", p["n2b"]),
        ("n3g", p["n3g"]), ("n3b", p["n3b"]),
        ("n4g", p["n4g"]), ("n4b", p["n4b"]),
    ]
    return _pack_rows(entries)


def sinusoidal_pe(seq_len, d_model):
    pos = jnp.arange(seq_len, dtype=jnp.float32)[:, None]
    i = jnp.arange(0, d_model, 2, dtype=jnp.float32)
    div = jnp.exp(-math.log(10000.0) * i / d_model)
    pe = jnp.zeros((seq_len, d_model), jnp.float32)
    pe = pe.at[:, 0::2].set(jnp.sin(pos * div))
    pe = pe.at[:, 1::2].set(jnp.cos(pos * div))
    return pe


def batch_block_mask(b, sq, sk):
    """Additive mask [b*sq, b*sk]: 0 within the same batch element, -1e30
    across batch elements (exact per-batch softmax after a single fused score
    matmul over the whole folded batch)."""
    q_b = jnp.repeat(jnp.arange(b, dtype=jnp.int32), sq)[:, None]
    k_b = jnp.repeat(jnp.arange(b, dtype=jnp.int32), sk)[None, :]
    return jnp.where(q_b == k_b, 0.0, NEG_INF).astype(jnp.float32)


# ---------------------------------------------------------------------------
# Pallas kernel: the full weight-shared DecoderNAT stack, one invocation.
# ---------------------------------------------------------------------------
def decoder_nat_kernel(x_ref, enc_ref, w_ref, v_ref, out_ref, *,
                       B, S, Se, D, H, num_layers, w_offs, v_offs):
    dh = D // H
    scale = 1.0 / math.sqrt(dh)
    M = B * S          # folded target rows
    Me = B * Se        # folded encoder rows

    # --- static slab slices (zero-cost ref views -> one load per parameter) -
    def wget(name):
        r, nr, nc = w_offs[name]
        return w_ref[r:r + nr, 0:nc]

    def vget(name, rows=None):
        r, nr, nc = v_offs[name]
        val = v_ref[r:r + nr, 0:nc]
        if rows is not None and nr == 1:
            val = jnp.broadcast_to(val, (rows, nc))   # hoisted broadcast
        return val

    # --- hoisted loads / broadcasts: read once, reused by every layer [R4] --
    sa_wi, sa_wo = wget("sa_wi"), wget("sa_wo")
    pa_wqk, pa_wv, pa_wo = wget("pa_wqk"), wget("pa_wv"), wget("pa_wo")
    ea_wq, ea_wkv, ea_wo = wget("ea_wq"), wget("ea_wkv"), wget("ea_wo")
    ff1w, ff2w = wget("ff1w"), wget("ff2w")

    sa_bi, sa_bo = vget("sa_bi", M), vget("sa_bo", M)
    pa_bqk, pa_bv, pa_bo = vget("pa_bqk", M), vget("pa_bv", M), vget("pa_bo", M)
    ea_bq, ea_bo = vget("ea_bq", M), vget("ea_bo", M)
    ea_bkv = vget("ea_bkv", Me)
    ff1b, ff2b = vget("ff1b", M), vget("ff2b", M)
    n1g, n1b = vget("n1g", M), vget("n1b", M)
    n2g, n2b = vget("n2g", M), vget("n2b", M)
    n3g, n3b = vget("n3g", M), vget("n3b", M)
    n4g, n4b = vget("n4g", M), vget("n4b", M)
    pe = vget("pe")                                            # [M, D]
    mask_self = jnp.broadcast_to(vget("mask_self")[None], (H, M, M))
    mask_ed = jnp.broadcast_to(vget("mask_ed")[None], (H, M, Me))

    # --- helpers -------------------------------------------------------------
    def linear(v, w, b):
        # torch nn.Linear: y = v @ w.T + b  (w: [out, in]; b pre-broadcast).
        return jax.lax.dot_general(
            v, w, (((1,), (1,)), ((), ())),
            preferred_element_type=jnp.float32) + b

    def layer_norm(v, g, b):
        mu = jnp.mean(v, axis=-1, keepdims=True)
        var = jnp.mean(jnp.square(v - mu), axis=-1, keepdims=True)
        return (v - mu) * jax.lax.rsqrt(var + EPS) * g + b

    def attention(q, k, v, mask, wo, bo):
        # q: [M, D]; k, v: [Mk, D]; mask: [H, M, Mk] block-diagonal over batch.
        # One batched score matmul + one batched PV matmul for ALL batches and
        # heads [R1,R5]; the mask makes the softmax exactly per-batch.
        mk = k.shape[0]
        qh = (q * scale).reshape(M, H, dh)        # 1/sqrt(dh) folded into Q
        kh = k.reshape(mk, H, dh)
        vh = v.reshape(mk, H, dh)
        s = jnp.einsum("qhd,khd->hqk", qh, kh,
                       preferred_element_type=jnp.float32) + mask
        s = s - jnp.max(s, axis=-1, keepdims=True)
        p = jnp.exp(s)
        p = p / jnp.sum(p, axis=-1, keepdims=True)   # exact softmax (torch parity)
        o = jnp.einsum("hqk,khd->qhd", p, vh,
                       preferred_element_type=jnp.float32).reshape(M, D)
        return linear(o, wo, bo)

    # --- fold batch into rows (free leading-dim merge, no relayout) [R1,R3] -
    x = x_ref[...].reshape(M, D)
    enc = enc_ref[...].reshape(Me, D)

    # Encoder K/V projection is layer-invariant (shared weights, same encoder
    # output) -> computed once, outside the layer loop.
    kv_enc = linear(enc, ea_wkv, ea_bkv)          # [Me, 2D]
    k_enc, v_enc = kv_enc[:, :D], kv_enc[:, D:]

    # Weight-shared layer stack (post-norm, residual connections, eval mode).
    for _ in range(num_layers):
        # 1) self-attention (fused QKV projection), residual, norm1.
        qkv = linear(x, sa_wi, sa_bi)             # [M, 3D]
        sa = attention(qkv[:, :D], qkv[:, D:2 * D], qkv[:, 2 * D:],
                       mask_self, sa_wo, sa_bo)
        x = layer_norm(x + sa, n1g, n1b)

        # 2) positional attention: Q = K = x + PE, V = x (fused Q/K proj).
        qk = linear(x + pe, pa_wqk, pa_bqk)       # [M, 2D]
        v_pos = linear(x, pa_wv, pa_bv)
        pa = attention(qk[:, :D], qk[:, D:], v_pos, mask_self, pa_wo, pa_bo)
        x = layer_norm(x + pa, n2g, n2b)

        # 3) encoder-decoder attention (K/V hoisted above).
        q_ed = linear(x, ea_wq, ea_bq)
        ea = attention(q_ed, k_enc, v_enc, mask_ed, ea_wo, ea_bo)
        x = layer_norm(x + ea, n3g, n3b)

        # 4) feed-forward.
        hdn = jnp.maximum(linear(x, ff1w, ff1b), 0.0)
        ff = linear(hdn, ff2w, ff2b)
        x = layer_norm(x + ff, n4g, n4b)

    # DecoderNAT(norm=None) -> no final norm.  Free leading-dim split back.
    out_ref[...] = x.reshape(B, S, D).astype(out_ref.dtype)


# ---------------------------------------------------------------------------
# Wrapper.
# ---------------------------------------------------------------------------
def decoder_nat_forward(e_output, tgt_input, params, num_layers=NUM_LAYERS):
    """DecoderNAT.forward: the weight-shared layer applied num_layers times,
    fully fused into ONE gridless pallas_call (batch folded into rows)."""
    B, S, D = tgt_input.shape
    Be, Se, De = e_output.shape
    assert Be == B and De == D
    # Batch masks are packed along lanes of the vector slab.
    assert B * S <= LANE and B * Se <= LANE, "folded batch must fit 128 lanes"

    w_slab, w_offs = build_weight_slab(params, D)
    pe_tiled = jnp.tile(sinusoidal_pe(S, D), (B, 1))            # [B*S, D]
    v_slab, v_offs = build_vector_slab(
        params, pe_tiled, batch_block_mask(B, S, S),
        batch_block_mask(B, S, Se), D)

    kernel = functools.partial(
        decoder_nat_kernel, B=B, S=S, Se=Se, D=D, H=N_HEADS,
        num_layers=num_layers, w_offs=w_offs, v_offs=v_offs)

    vmem_spec = pl.BlockSpec(memory_space=pltpu.MemorySpace.VMEM)
    return pl.pallas_call(
        kernel,
        out_shape=jax.ShapeDtypeStruct((B, S, D), jnp.float32),
        in_specs=[vmem_spec, vmem_spec, vmem_spec, vmem_spec],
        out_specs=vmem_spec,
    )(tgt_input.astype(jnp.float32), e_output.astype(jnp.float32),
      w_slab, v_slab)


def init_params(key, d=D_MODEL, f=DIM_FF):
    """torch-style parameters (packed in_proj per attention, LN, FFN)."""
    ks = jax.random.split(key, 20)

    def w(k, shape):
        return jax.random.normal(k, shape, jnp.float32) * 0.02

    ones = jnp.ones((1, d), jnp.float32)
    zeros = jnp.zeros((1, d), jnp.float32)
    params = {}
    for idx, name in enumerate(("sa", "pa", "ea")):
        params[f"{name}_wi"] = w(ks[4 * idx + 0], (3 * d, d))
        params[f"{name}_bi"] = w(ks[4 * idx + 1], (1, 3 * d))
        params[f"{name}_wo"] = w(ks[4 * idx + 2], (d, d))
        params[f"{name}_bo"] = w(ks[4 * idx + 3], (1, d))
    for n in range(1, 5):
        params[f"n{n}g"] = ones
        params[f"n{n}b"] = zeros
    params["ff1w"] = w(ks[12], (f, d))
    params["ff1b"] = w(ks[13], (1, f))
    params["ff2w"] = w(ks[14], (d, f))
    params["ff2b"] = w(ks[15], (1, d))
    return params


if __name__ == "__main__":
    B, S, SE = 2, 8, 8
    key = jax.random.PRNGKey(0)
    k_tgt, k_enc, k_par = jax.random.split(key, 3)
    tgt_input = jax.random.normal(k_tgt, (B, S, D_MODEL), jnp.float32)
    e_output = jax.random.normal(k_enc, (B, SE, D_MODEL), jnp.float32)
    params = init_params(k_par)

    out = decoder_nat_forward(e_output, tgt_input, params,
                              num_layers=NUM_LAYERS)
    out = jax.block_until_ready(out)
    assert out.shape == (B, S, D_MODEL)
    assert bool(jnp.all(jnp.isfinite(out)))
    print("KERNEL_OK")
</pallas_src>

<mosaic_0001>
module attributes {stable_mosaic.version = 11 : i64} {
  func.func @decoder_nat_kernel(%arg0: memref<2x8x32xf32, #tpu.memory_space<vmem>>, %arg1: memref<2x8x32xf32, #tpu.memory_space<vmem>>, %arg2: memref<480x128xf32, #tpu.memory_space<vmem>>, %arg3: memref<72x128xf32, #tpu.memory_space<vmem>>, %arg4: memref<2x8x32xf32, #tpu.memory_space<vmem>>) attributes {dimension_semantics = [], scalar_prefetch = 0 : i64, scratch_operands = 0 : i64, tpu.core_type = #tpu.core_type<tc>} {
    %c0 = arith.constant 0 : index
    %c0_0 = arith.constant 0 : index
    %0 = vector.load %arg2[%c0, %c0_0] : memref<480x128xf32, #tpu.memory_space<vmem>>, vector<96x32xf32>
    %c96 = arith.constant 96 : index
    %c0_1 = arith.constant 0 : index
    %1 = vector.load %arg2[%c96, %c0_1] : memref<480x128xf32, #tpu.memory_space<vmem>>, vector<32x32xf32>
    %c128 = arith.constant 128 : index
    %c0_2 = arith.constant 0 : index
    %2 = vector.load %arg2[%c128, %c0_2] : memref<480x128xf32, #tpu.memory_space<vmem>>, vector<64x32xf32>
    %c192 = arith.constant 192 : index
    %c0_3 = arith.constant 0 : index
    %3 = vector.load %arg2[%c192, %c0_3] : memref<480x128xf32, #tpu.memory_space<vmem>>, vector<32x32xf32>
    %c224 = arith.constant 224 : index
    %c0_4 = arith.constant 0 : index
    %4 = vector.load %arg2[%c224, %c0_4] : memref<480x128xf32, #tpu.memory_space<vmem>>, vector<32x32xf32>
    %c256 = arith.constant 256 : index
    %c0_5 = arith.constant 0 : index
    %5 = vector.load %arg2[%c256, %c0_5] : memref<480x128xf32, #tpu.memory_space<vmem>>, vector<32x32xf32>
    %c288 = arith.constant 288 : index
    %c0_6 = arith.constant 0 : index
    %6 = vector.load %arg2[%c288, %c0_6] : memref<480x128xf32, #tpu.memory_space<vmem>>, vector<64x32xf32>
    %c352 = arith.constant 352 : index
    %c0_7 = arith.constant 0 : index
    %7 = vector.load %arg2[%c352, %c0_7] : memref<480x128xf32, #tpu.memory_space<vmem>>, vector<32x32xf32>
    %c384 = arith.constant 384 : index
    %c0_8 = arith.constant 0 : index
    %8 = vector.load %arg2[%c384, %c0_8] : memref<480x128xf32, #tpu.memory_space<vmem>>, vector<64x32xf32>
    %c448 = arith.constant 448 : index
    %c0_9 = arith.constant 0 : index
    %9 = vector.load %arg2[%c448, %c0_9] : memref<480x128xf32, #tpu.memory_space<vmem>>, vector<32x64xf32>
    %c48 = arith.constant 48 : index
    %c0_10 = arith.constant 0 : index
    %10 = vector.load %arg3[%c48, %c0_10] : memref<72x128xf32, #tpu.memory_space<vmem>>, vector<1x96xf32>
    %11 = vector.shape_cast %10 : vector<1x96xf32> to vector<1x96xf32>
    %12 = vector.broadcast %11 : vector<1x96xf32> to vector<16x96xf32>
    %c49 = arith.constant 49 : index
    %c0_11 = arith.constant 0 : index
    %13 = vector.load %arg3[%c49, %c0_11] : memref<72x128xf32, #tpu.memory_space<vmem>>, vector<1x32xf32>
    %14 = vector.shape_cast %13 : vector<1x32xf32> to vector<1x32xf32>
    %15 = vector.broadcast %14 : vector<1x32xf32> to vector<16x32xf32>
    %c50 = arith.constant 50 : index
    %c0_12 = arith.constant 0 : index
    %16 = vector.load %arg3[%c50, %c0_12] : memref<72x128xf32, #tpu.memory_space<vmem>>, vector<1x64xf32>
    %17 = vector.shape_cast %16 : vector<1x64xf32> to vector<1x64xf32>
    %18 = vector.broadcast %17 : vector<1x64xf32> to vector<16x64xf32>
    %c51 = arith.constant 51 : index
    %c0_13 = arith.constant 0 : index
    %19 = vector.load %arg3[%c51, %c0_13] : memref<72x128xf32, #tpu.memory_space<vmem>>, vector<1x32xf32>
    %20 = vector.shape_cast %19 : vector<1x32xf32> to vector<1x32xf32>
    %21 = vector.broadcast %20 : vector<1x32xf32> to vector<16x32xf32>
    %c52 = arith.constant 52 : index
    %c0_14 = arith.constant 0 : index
    %22 = vector.load %arg3[%c52, %c0_14] : memref<72x128xf32, #tpu.memory_space<vmem>>, vector<1x32xf32>
    %23 = vector.shape_cast %22 : vector<1x32xf32> to vector<1x32xf32>
    %24 = vector.broadcast %23 : vector<1x32xf32> to vector<16x32xf32>
    %c53 = arith.constant 53 : index
    %c0_15 = arith.constant 0 : index
    %25 = vector.load %arg3[%c53, %c0_15] : memref<72x128xf32, #tpu.memory_space<vmem>>, vector<1x32xf32>
    %26 = vector.shape_cast %25 : vector<1x32xf32> to vector<1x32xf32>
    %27 = vector.broadcast %26 : vector<1x32xf32> to vector<16x32xf32>
    %c55 = arith.constant 55 : index
    %c0_16 = arith.constant 0 : index
    %28 = vector.load %arg3[%c55, %c0_16] : memref<72x128xf32, #tpu.memory_space<vmem>>, vector<1x32xf32>
    %29 = vector.shape_cast %28 : vector<1x32xf32> to vector<1x32xf32>
    %30 = vector.broadcast %29 : vector<1x32xf32> to vector<16x32xf32>
    %c54 = arith.constant 54 : index
    %c0_17 = arith.constant 0 : index
    %31 = vector.load %arg3[%c54, %c0_17] : memref<72x128xf32, #tpu.memory_space<vmem>>, vector<1x64xf32>
    %32 = vector.shape_cast %31 : vector<1x64xf32> to vector<1x64xf32>
    %33 = vector.broadcast %32 : vector<1x64xf32> to vector<16x64xf32>
    %c56 = arith.constant 56 : index
    %c0_18 = arith.constant 0 : index
    %34 = vector.load %arg3[%c56, %c0_18] : memref<72x128xf32, #tpu.memory_space<vmem>>, vector<1x64xf32>
    %35 = vector.shape_cast %34 : vector<1x64xf32> to vector<1x64xf32>
    %36 = vector.broadcast %35 : vector<1x64xf32> to vector<16x64xf32>
    %c57 = arith.constant 57 : index
    %c0_19 = arith.constant 0 : index
    %37 = vector.load %arg3[%c57, %c0_19] : memref<72x128xf32, #tpu.memory_space<vmem>>, vector<1x32xf32>
    %38 = vector.shape_cast %37 : vector<1x32xf32> to vector<1x32xf32>
    %39 = vector.broadcast %38 : vector<1x32xf32> to vector<16x32xf32>
    %c58 = arith.constant 58 : index
    %c0_20 = arith.constant 0 : index
    %40 = vector.load %arg3[%c58, %c0_20] : memref<72x128xf32, #tpu.memory_space<vmem>>, vector<1x32xf32>
    %41 = vector.shape_cast %40 : vector<1x32xf32> to vector<1x32xf32>
    %42 = vector.broadcast %41 : vector<1x32xf32> to vector<16x32xf32>
    %c59 = arith.constant 59 : index
    %c0_21 = arith.constant 0 : index
    %43 = vector.load %arg3[%c59, %c0_21] : memref<72x128xf32, #tpu.memory_space<vmem>>, vector<1x32xf32>
    %44 = vector.shape_cast %43 : vector<1x32xf32> to vector<1x32xf32>
    %45 = vector.broadcast %44 : vector<1x32xf32> to vector<16x32xf32>
    %c60 = arith.constant 60 : index
    %c0_22 = arith.constant 0 : index
    %46 = vector.load %arg3[%c60, %c0_22] : memref<72x128xf32, #tpu.memory_space<vmem>>, vector<1x32xf32>
    %47 = vector.shape_cast %46 : vector<1x32xf32> to vector<1x32xf32>
    %48 = vector.broadcast %47 : vector<1x32xf32> to vector<16x32xf32>
    %c61 = arith.constant 61 : index
    %c0_23 = arith.constant 0 : index
    %49 = vector.load %arg3[%c61, %c0_23] : memref<72x128xf32, #tpu.memory_space<vmem>>, vector<1x32xf32>
    %50 = vector.shape_cast %49 : vector<1x32xf32> to vector<1x32xf32>
    %51 = vector.broadcast %50 : vector<1x32xf32> to vector<16x32xf32>
    %c62 = arith.constant 62 : index
    %c0_24 = arith.constant 0 : index
    %52 = vector.load %arg3[%c62, %c0_24] : memref<72x128xf32, #tpu.memory_space<vmem>>, vector<1x32xf32>
    %53 = vector.shape_cast %52 : vector<1x32xf32> to vector<1x32xf32>
    %54 = vector.broadcast %53 : vector<1x32xf32> to vector<16x32xf32>
    %c63 = arith.constant 63 : index
    %c0_25 = arith.constant 0 : index
    %55 = vector.load %arg3[%c63, %c0_25] : memref<72x128xf32, #tpu.memory_space<vmem>>, vector<1x32xf32>
    %56 = vector.shape_cast %55 : vector<1x32xf32> to vector<1x32xf32>
    %57 = vector.broadcast %56 : vector<1x32xf32> to vector<16x32xf32>
    %c64 = arith.constant 64 : index
    %c0_26 = arith.constant 0 : index
    %58 = vector.load %arg3[%c64, %c0_26] : memref<72x128xf32, #tpu.memory_space<vmem>>, vector<1x32xf32>
    %59 = vector.shape_cast %58 : vector<1x32xf32> to vector<1x32xf32>
    %60 = vector.broadcast %59 : vector<1x32xf32> to vector<16x32xf32>
    %c65 = arith.constant 65 : index
    %c0_27 = arith.constant 0 : index
    %61 = vector.load %arg3[%c65, %c0_27] : memref<72x128xf32, #tpu.memory_space<vmem>>, vector<1x32xf32>
    %62 = vector.shape_cast %61 : vector<1x32xf32> to vector<1x32xf32>
    %63 = vector.broadcast %62 : vector<1x32xf32> to vector<16x32xf32>
    %c0_28 = arith.constant 0 : index
    %c0_29 = arith.constant 0 : index
    %64 = vector.load %arg3[%c0_28, %c0_29] : memref<72x128xf32, #tpu.memory_space<vmem>>, vector<16x32xf32>
    %c16 = arith.constant 16 : index
    %c0_30 = arith.constant 0 : index
    %65 = vector.load %arg3[%c16, %c0_30] : memref<72x128xf32, #tpu.memory_space<vmem>>, vector<16x16xf32>
    %66 = vector.shape_cast %65 : vector<16x16xf32> to vector<1x16x16xf32>
    %67 = vector.shape_cast %66 : vector<1x16x16xf32> to vector<1x16x16xf32>
    %68 = vector.broadcast %67 : vector<1x16x16xf32> to vector<4x16x16xf32>
    %c32 = arith.constant 32 : index
    %c0_31 = arith.constant 0 : index
    %69 = vector.load %arg3[%c32, %c0_31] : memref<72x128xf32, #tpu.memory_space<vmem>>, vector<16x16xf32>
    %70 = vector.shape_cast %69 : vector<16x16xf32> to vector<1x16x16xf32>
    %71 = vector.shape_cast %70 : vector<1x16x16xf32> to vector<1x16x16xf32>
    %72 = vector.broadcast %71 : vector<1x16x16xf32> to vector<4x16x16xf32>
    %c0_32 = arith.constant 0 : index
    %c0_33 = arith.constant 0 : index
    %c0_34 = arith.constant 0 : index
    %73 = vector.load %arg0[%c0_32, %c0_33, %c0_34] : memref<2x8x32xf32, #tpu.memory_space<vmem>>, vector<2x8x32xf32>
    %74 = vector.shape_cast %73 : vector<2x8x32xf32> to vector<16x32xf32>
    %c0_35 = arith.constant 0 : index
    %c0_36 = arith.constant 0 : index
    %c0_37 = arith.constant 0 : index
    %75 = vector.load %arg1[%c0_35, %c0_36, %c0_37] : memref<2x8x32xf32, #tpu.memory_space<vmem>>, vector<2x8x32xf32>
    %76 = vector.shape_cast %75 : vector<2x8x32xf32> to vector<16x32xf32>
    %cst = arith.constant dense<0.000000e+00> : vector<16x64xf32>
    %77 = tpu.matmul %76, %6, %cst {dimension_numbers = #tpu.dot_dimension_numbers<[1], [1], [0], [0], [0, 0, 1, 0], [], []>} : vector<16x32xf32>, vector<64x32xf32>, vector<16x64xf32> -> vector<16x64xf32>
    %78 = arith.addf %77, %33 : vector<16x64xf32>
    %79 = vector.extract_strided_slice %78 {offsets = [0, 0], sizes = [16, 32], strides = [1, 1]} : vector<16x64xf32> to vector<16x32xf32>
    %80 = vector.extract_strided_slice %78 {offsets = [0, 32], sizes = [16, 32], strides = [1, 1]} : vector<16x64xf32> to vector<16x32xf32>
    %cst_38 = arith.constant dense<0.000000e+00> : vector<16x96xf32>
    %81 = tpu.matmul %74, %0, %cst_38 {dimension_numbers = #tpu.dot_dimension_numbers<[1], [1], [0], [0], [0, 0, 1, 0], [], []>} : vector<16x32xf32>, vector<96x32xf32>, vector<16x96xf32> -> vector<16x96xf32>
    %82 = arith.addf %81, %12 : vector<16x96xf32>
    %83 = vector.extract_strided_slice %82 {offsets = [0, 0], sizes = [16, 32], strides = [1, 1]} : vector<16x96xf32> to vector<16x32xf32>
    %84 = vector.extract_strided_slice %82 {offsets = [0, 32], sizes = [16, 32], strides = [1, 1]} : vector<16x96xf32> to vector<16x32xf32>
    %85 = vector.extract_strided_slice %82 {offsets = [0, 64], sizes = [16, 32], strides = [1, 1]} : vector<16x96xf32> to vector<16x32xf32>
    %cst_39 = arith.constant 0.353553385 : f32
    %86 = vector.broadcast %cst_39 : f32 to vector<16x32xf32>
    %87 = arith.mulf %83, %86 : vector<16x32xf32>
    %88 = vector.shape_cast %87 : vector<16x32xf32> to vector<16x4x8xf32>
    %89 = vector.shape_cast %84 : vector<16x32xf32> to vector<16x4x8xf32>
    %90 = vector.shape_cast %85 : vector<16x32xf32> to vector<16x4x8xf32>
    "tpu.trace_start"() <{level = 10 : i32, message = "qhd,khd->hqk"}> : () -> ()
    %cst_40 = arith.constant dense<0.000000e+00> : vector<4x16x16xf32>
    %91 = tpu.matmul %88, %89, %cst_40 {dimension_numbers = #tpu.dot_dimension_numbers<[2], [2], [0], [0], [0, 1, 0, 0, 1, 0], [1], [1]>} : vector<16x4x8xf32>, vector<16x4x8xf32>, vector<4x16x16xf32> -> vector<4x16x16xf32>
    "tpu.trace_stop"() : () -> ()
    %92 = arith.addf %91, %68 : vector<4x16x16xf32>
    %cst_41 = arith.constant dense<0xFF800000> : vector<4x16xf32>
    %93 = vector.multi_reduction <maximumf>, %92, %cst_41 [2] : vector<4x16x16xf32> to vector<4x16xf32>
    %94 = vector.shape_cast %93 : vector<4x16xf32> to vector<4x16x1xf32>
    %95 = vector.broadcast %94 : vector<4x16x1xf32> to vector<4x16x16xf32>
    %96 = arith.subf %92, %95 : vector<4x16x16xf32>
    %97 = math.exp %96 : vector<4x16x16xf32>
    %cst_42 = arith.constant dense<0.000000e+00> : vector<4x16xf32>
    %98 = vector.multi_reduction <add>, %97, %cst_42 [2] : vector<4x16x16xf32> to vector<4x16xf32>
    %99 = vector.shape_cast %98 : vector<4x16xf32> to vector<4x16x1xf32>
    %100 = vector.broadcast %99 : vector<4x16x1xf32> to vector<4x16x16xf32>
    %101 = arith.divf %97, %100 : vector<4x16x16xf32>
    "tpu.trace_start"() <{level = 10 : i32, message = "hqk,khd->qhd"}> : () -> ()
    %cst_43 = arith.constant dense<0.000000e+00> : vector<4x8x16xf32>
    %102 = tpu.matmul %90, %101, %cst_43 {dimension_numbers = #tpu.dot_dimension_numbers<[0], [2], [2], [1], [0, 1, 0, 2, 1, 1], [1], [0]>} : vector<16x4x8xf32>, vector<4x16x16xf32>, vector<4x8x16xf32> -> vector<4x8x16xf32>
    %103 = tpu.transpose %102, [2, 0, 1] : vector<4x8x16xf32> -> vector<16x4x8xf32>
    "tpu.trace_stop"() : () -> ()
    %104 = vector.shape_cast %103 : vector<16x4x8xf32> to vector<16x32xf32>
    %cst_44 = arith.constant dense<0.000000e+00> : vector<16x32xf32>
    %105 = tpu.matmul %104, %1, %cst_44 {dimension_numbers = #tpu.dot_dimension_numbers<[1], [1], [0], [0], [0, 0, 1, 0], [], []>} : vector<16x32xf32>, vector<32x32xf32>, vector<16x32xf32> -> vector<16x32xf32>
    %106 = arith.addf %105, %15 : vector<16x32xf32>
    %107 = arith.addf %74, %106 : vector<16x32xf32>
    %cst_45 = arith.constant dense<0.000000e+00> : vector<16xf32>
    %108 = vector.multi_reduction <add>, %107, %cst_45 [1] : vector<16x32xf32> to vector<16xf32>
    %109 = vector.shape_cast %108 : vector<16xf32> to vector<16x1xf32>
    %cst_46 = arith.constant 3.200000e+01 : f32
    %110 = vector.broadcast %cst_46 : f32 to vector<16x1xf32>
    %111 = arith.divf %109, %110 : vector<16x1xf32>
    %112 = vector.broadcast %111 : vector<16x1xf32> to vector<16x32xf32>
    %113 = arith.subf %107, %112 : vector<16x32xf32>
    %114 = arith.mulf %113, %113 : vector<16x32xf32>
    %cst_47 = arith.constant dense<0.000000e+00> : vector<16xf32>
    %115 = vector.multi_reduction <add>, %114, %cst_47 [1] : vector<16x32xf32> to vector<16xf32>
    %116 = vector.shape_cast %115 : vector<16xf32> to vector<16x1xf32>
    %cst_48 = arith.constant 3.200000e+01 : f32
    %117 = vector.broadcast %cst_48 : f32 to vector<16x1xf32>
    %118 = arith.divf %116, %117 : vector<16x1xf32>
    %119 = vector.broadcast %111 : vector<16x1xf32> to vector<16x32xf32>
    %120 = arith.subf %107, %119 : vector<16x32xf32>
    %cst_49 = arith.constant 9.99999974E-6 : f32
    %121 = vector.broadcast %cst_49 : f32 to vector<16x1xf32>
    %122 = arith.addf %118, %121 : vector<16x1xf32>
    %123 = math.rsqrt %122 : vector<16x1xf32>
    %124 = vector.broadcast %123 : vector<16x1xf32> to vector<16x32xf32>
    %125 = arith.mulf %120, %124 : vector<16x32xf32>
    %126 = arith.mulf %125, %42 : vector<16x32xf32>
    %127 = arith.addf %126, %45 : vector<16x32xf32>
    %128 = arith.addf %127, %64 : vector<16x32xf32>
    %cst_50 = arith.constant dense<0.000000e+00> : vector<16x64xf32>
    %129 = tpu.matmul %128, %2, %cst_50 {dimension_numbers = #tpu.dot_dimension_numbers<[1], [1], [0], [0], [0, 0, 1, 0], [], []>} : vector<16x32xf32>, vector<64x32xf32>, vector<16x64xf32> -> vector<16x64xf32>
    %130 = arith.addf %129, %18 : vector<16x64xf32>
    %cst_51 = arith.constant dense<0.000000e+00> : vector<16x32xf32>
    %131 = tpu.matmul %127, %3, %cst_51 {dimension_numbers = #tpu.dot_dimension_numbers<[1], [1], [0], [0], [0, 0, 1, 0], [], []>} : vector<16x32xf32>, vector<32x32xf32>, vector<16x32xf32> -> vector<16x32xf32>
    %132 = arith.addf %131, %21 : vector<16x32xf32>
    %133 = vector.extract_strided_slice %130 {offsets = [0, 0], sizes = [16, 32], strides = [1, 1]} : vector<16x64xf32> to vector<16x32xf32>
    %134 = vector.extract_strided_slice %130 {offsets = [0, 32], sizes = [16, 32], strides = [1, 1]} : vector<16x64xf32> to vector<16x32xf32>
    %cst_52 = arith.constant 0.353553385 : f32
    %135 = vector.broadcast %cst_52 : f32 to vector<16x32xf32>
    %136 = arith.mulf %133, %135 : vector<16x32xf32>
    %137 = vector.shape_cast %136 : vector<16x32xf32> to vector<16x4x8xf32>
    %138 = vector.shape_cast %134 : vector<16x32xf32> to vector<16x4x8xf32>
    %139 = vector.shape_cast %132 : vector<16x32xf32> to vector<16x4x8xf32>
    "tpu.trace_start"() <{level = 10 : i32, message = "qhd,khd->hqk"}> : () -> ()
    %cst_53 = arith.constant dense<0.000000e+00> : vector<4x16x16xf32>
    %140 = tpu.matmul %137, %138, %cst_53 {dimension_numbers = #tpu.dot_dimension_numbers<[2], [2], [0], [0], [0, 1, 0, 0, 1, 0], [1], [1]>} : vector<16x4x8xf32>, vector<16x4x8xf32>, vector<4x16x16xf32> -> vector<4x16x16xf32>
    "tpu.trace_stop"() : () -> ()
    %141 = arith.addf %140, %68 : vector<4x16x16xf32>
    %cst_54 = arith.constant dense<0xFF800000> : vector<4x16xf32>
    %142 = vector.multi_reduction <maximumf>, %141, %cst_54 [2] : vector<4x16x16xf32> to vector<4x16xf32>
    %143 = vector.shape_cast %142 : vector<4x16xf32> to vector<4x16x1xf32>
    %144 = vector.broadcast %143 : vector<4x16x1xf32> to vector<4x16x16xf32>
    %145 = arith.subf %141, %144 : vector<4x16x16xf32>
    %146 = math.exp %145 : vector<4x16x16xf32>
    %cst_55 = arith.constant dense<0.000000e+00> : vector<4x16xf32>
    %147 = vector.multi_reduction <add>, %146, %cst_55 [2] : vector<4x16x16xf32> to vector<4x16xf32>
    %148 = vector.shape_cast %147 : vector<4x16xf32> to vector<4x16x1xf32>
    %149 = vector.broadcast %148 : vector<4x16x1xf32> to vector<4x16x16xf32>
    %150 = arith.divf %146, %149 : vector<4x16x16xf32>
    "tpu.trace_start"() <{level = 10 : i32, message = "hqk,khd->qhd"}> : () -> ()
    %cst_56 = arith.constant dense<0.000000e+00> : vector<4x8x16xf32>
    %151 = tpu.matmul %139, %150, %cst_56 {dimension_numbers = #tpu.dot_dimension_numbers<[0], [2], [2], [1], [0, 1, 0, 2, 1, 1], [1], [0]>} : vector<16x4x8xf32>, vector<4x16x16xf32>, vector<4x8x16xf32> -> vector<4x8x16xf32>
    %152 = tpu.transpose %151, [2, 0, 1] : vector<4x8x16xf32> -> vector<16x4x8xf32>
    "tpu.trace_stop"() : () -> ()
    %153 = vector.shape_cast %152 : vector<16x4x8xf32> to vector<16x32xf32>
    %cst_57 = arith.constant dense<0.000000e+00> : vector<16x32xf32>
    %154 = tpu.matmul %153, %4, %cst_57 {dimension_numbers = #tpu.dot_dimension_numbers<[1], [1], [0], [0], [0, 0, 1, 0], [], []>} : vector<16x32xf32>, vector<32x32xf32>, vector<16x32xf32> -> vector<16x32xf32>
    %155 = arith.addf %154, %24 : vector<16x32xf32>
    %156 = arith.addf %127, %155 : vector<16x32xf32>
    %cst_58 = arith.constant dense<0.000000e+00> : vector<16xf32>
    %157 = vector.multi_reduction <add>, %156, %cst_58 [1] : vector<16x32xf32> to vector<16xf32>
    %158 = vector.shape_cast %157 : vector<16xf32> to vector<16x1xf32>
    %cst_59 = arith.constant 3.200000e+01 : f32
    %159 = vector.broadcast %cst_59 : f32 to vector<16x1xf32>
    %160 = arith.divf %158, %159 : vector<16x1xf32>
    %161 = vector.broadcast %160 : vector<16x1xf32> to vector<16x32xf32>
    %162 = arith.subf %156, %161 : vector<16x32xf32>
    %163 = arith.mulf %162, %162 : vector<16x32xf32>
    %cst_60 = arith.constant dense<0.000000e+00> : vector<16xf32>
    %164 = vector.multi_reduction <add>, %163, %cst_60 [1] : vector<16x32xf32> to vector<16xf32>
    %165 = vector.shape_cast %164 : vector<16xf32> to vector<16x1xf32>
    %cst_61 = arith.constant 3.200000e+01 : f32
    %166 = vector.broadcast %cst_61 : f32 to vector<16x1xf32>
    %167 = arith.divf %165, %166 : vector<16x1xf32>
    %168 = vector.broadcast %160 : vector<16x1xf32> to vector<16x32xf32>
    %169 = arith.subf %156, %168 : vector<16x32xf32>
    %cst_62 = arith.constant 9.99999974E-6 : f32
    %170 = vector.broadcast %cst_62 : f32 to vector<16x1xf32>
    %171 = arith.addf %167, %170 : vector<16x1xf32>
    %172 = math.rsqrt %171 : vector<16x1xf32>
    %173 = vector.broadcast %172 : vector<16x1xf32> to vector<16x32xf32>
    %174 = arith.mulf %169, %173 : vector<16x32xf32>
    %175 = arith.mulf %174, %48 : vector<16x32xf32>
    %176 = arith.addf %175, %51 : vector<16x32xf32>
    %cst_63 = arith.constant dense<0.000000e+00> : vector<16x32xf32>
    %177 = tpu.matmul %176, %5, %cst_63 {dimension_numbers = #tpu.dot_dimension_numbers<[1], [1], [0], [0], [0, 0, 1, 0], [], []>} : vector<16x32xf32>, vector<32x32xf32>, vector<16x32xf32> -> vector<16x32xf32>
    %178 = arith.addf %177, %27 : vector<16x32xf32>
    %cst_64 = arith.constant 0.353553385 : f32
    %179 = vector.broadcast %cst_64 : f32 to vector<16x32xf32>
    %180 = arith.mulf %178, %179 : vector<16x32xf32>
    %181 = vector.shape_cast %180 : vector<16x32xf32> to vector<16x4x8xf32>
    %182 = vector.shape_cast %79 : vector<16x32xf32> to vector<16x4x8xf32>
    %183 = vector.shape_cast %80 : vector<16x32xf32> to vector<16x4x8xf32>
    "tpu.trace_start"() <{level = 10 : i32, message = "qhd,khd->hqk"}> : () -> ()
    %cst_65 = arith.constant dense<0.000000e+00> : vector<4x16x16xf32>
    %184 = tpu.matmul %181, %182, %cst_65 {dimension_numbers = #tpu.dot_dimension_numbers<[2], [2], [0], [0], [0, 1, 0, 0, 1, 0], [1], [1]>} : vector<16x4x8xf32>, vector<16x4x8xf32>, vector<4x16x16xf32> -> vector<4x16x16xf32>
    "tpu.trace_stop"() : () -> ()
    %185 = arith.addf %184, %72 : vector<4x16x16xf32>
    %cst_66 = arith.constant dense<0xFF800000> : vector<4x16xf32>
    %186 = vector.multi_reduction <maximumf>, %185, %cst_66 [2] : vector<4x16x16xf32> to vector<4x16xf32>
    %187 = vector.shape_cast %186 : vector<4x16xf32> to vector<4x16x1xf32>
    %188 = vector.broadcast %187 : vector<4x16x1xf32> to vector<4x16x16xf32>
    %189 = arith.subf %185, %188 : vector<4x16x16xf32>
    %190 = math.exp %189 : vector<4x16x16xf32>
    %cst_67 = arith.constant dense<0.000000e+00> : vector<4x16xf32>
    %191 = vector.multi_reduction <add>, %190, %cst_67 [2] : vector<4x16x16xf32> to vector<4x16xf32>
    %192 = vector.shape_cast %191 : vector<4x16xf32> to vector<4x16x1xf32>
    %193 = vector.broadcast %192 : vector<4x16x1xf32> to vector<4x16x16xf32>
    %194 = arith.divf %190, %193 : vector<4x16x16xf32>
    "tpu.trace_start"() <{level = 10 : i32, message = "hqk,khd->qhd"}> : () -> ()
    %cst_68 = arith.constant dense<0.000000e+00> : vector<4x8x16xf32>
    %195 = tpu.matmul %183, %194, %cst_68 {dimension_numbers = #tpu.dot_dimension_numbers<[0], [2], [2], [1], [0, 1, 0, 2, 1, 1], [1], [0]>} : vector<16x4x8xf32>, vector<4x16x16xf32>, vector<4x8x16xf32> -> vector<4x8x16xf32>
    %196 = tpu.transpose %195, [2, 0, 1] : vector<4x8x16xf32> -> vector<16x4x8xf32>
    "tpu.trace_stop"() : () -> ()
    %197 = vector.shape_cast %196 : vector<16x4x8xf32> to vector<16x32xf32>
    %cst_69 = arith.constant dense<0.000000e+00> : vector<16x32xf32>
    %198 = tpu.matmul %197, %7, %cst_69 {dimension_numbers = #tpu.dot_dimension_numbers<[1], [1], [0], [0], [0, 0, 1, 0], [], []>} : vector<16x32xf32>, vector<32x32xf32>, vector<16x32xf32> -> vector<16x32xf32>
    %199 = arith.addf %198, %30 : vector<16x32xf32>
    %200 = arith.addf %176, %199 : vector<16x32xf32>
    %cst_70 = arith.constant dense<0.000000e+00> : vector<16xf32>
    %201 = vector.multi_reduction <add>, %200, %cst_70 [1] : vector<16x32xf32> to vector<16xf32>
    %202 = vector.shape_cast %201 : vector<16xf32> to vector<16x1xf32>
    %cst_71 = arith.constant 3.200000e+01 : f32
    %203 = vector.broadcast %cst_71 : f32 to vector<16x1xf32>
    %204 = arith.divf %202, %203 : vector<16x1xf32>
    %205 = vector.broadcast %204 : vector<16x1xf32> to vector<16x32xf32>
    %206 = arith.subf %200, %205 : vector<16x32xf32>
    %207 = arith.mulf %206, %206 : vector<16x32xf32>
    %cst_72 = arith.constant dense<0.000000e+00> : vector<16xf32>
    %208 = vector.multi_reduction <add>, %207, %cst_72 [1] : vector<16x32xf32> to vector<16xf32>
    %209 = vector.shape_cast %208 : vector<16xf32> to vector<16x1xf32>
    %cst_73 = arith.constant 3.200000e+01 : f32
    %210 = vector.broadcast %cst_73 : f32 to vector<16x1xf32>
    %211 = arith.divf %209, %210 : vector<16x1xf32>
    %212 = vector.broadcast %204 : vector<16x1xf32> to vector<16x32xf32>
    %213 = arith.subf %200, %212 : vector<16x32xf32>
    %cst_74 = arith.constant 9.99999974E-6 : f32
    %214 = vector.broadcast %cst_74 : f32 to vector<16x1xf32>
    %215 = arith.addf %211, %214 : vector<16x1xf32>
    %216 = math.rsqrt %215 : vector<16x1xf32>
    %217 = vector.broadcast %216 : vector<16x1xf32> to vector<16x32xf32>
    %218 = arith.mulf %213, %217 : vector<16x32xf32>
    %219 = arith.mulf %218, %54 : vector<16x32xf32>
    %220 = arith.addf %219, %57 : vector<16x32xf32>
    %cst_75 = arith.constant dense<0.000000e+00> : vector<16x64xf32>
    %221 = tpu.matmul %220, %8, %cst_75 {dimension_numbers = #tpu.dot_dimension_numbers<[1], [1], [0], [0], [0, 0, 1, 0], [], []>} : vector<16x32xf32>, vector<64x32xf32>, vector<16x64xf32> -> vector<16x64xf32>
    %222 = arith.addf %221, %36 : vector<16x64xf32>
    %cst_76 = arith.constant 0.000000e+00 : f32
    %223 = vector.broadcast %cst_76 : f32 to vector<16x64xf32>
    %224 = arith.maximumf %222, %223 : vector<16x64xf32>
    %cst_77 = arith.constant dense<0.000000e+00> : vector<16x32xf32>
    %225 = tpu.matmul %224, %9, %cst_77 {dimension_numbers = #tpu.dot_dimension_numbers<[1], [1], [0], [0], [0, 0, 1, 0], [], []>} : vector<16x64xf32>, vector<32x64xf32>, vector<16x32xf32> -> vector<16x32xf32>
    %226 = arith.addf %225, %39 : vector<16x32xf32>
    %227 = arith.addf %220, %226 : vector<16x32xf32>
    %cst_78 = arith.constant dense<0.000000e+00> : vector<16xf32>
    %228 = vector.multi_reduction <add>, %227, %cst_78 [1] : vector<16x32xf32> to vector<16xf32>
    %229 = vector.shape_cast %228 : vector<16xf32> to vector<16x1xf32>
    %cst_79 = arith.constant 3.200000e+01 : f32
    %230 = vector.broadcast %cst_79 : f32 to vector<16x1xf32>
    %231 = arith.divf %229, %230 : vector<16x1xf32>
    %232 = vector.broadcast %231 : vector<16x1xf32> to vector<16x32xf32>
    %233 = arith.subf %227, %232 : vector<16x32xf32>
    %234 = arith.mulf %233, %233 : vector<16x32xf32>
    %cst_80 = arith.constant dense<0.000000e+00> : vector<16xf32>
    %235 = vector.multi_reduction <add>, %234, %cst_80 [1] : vector<16x32xf32> to vector<16xf32>
    %236 = vector.shape_cast %235 : vector<16xf32> to vector<16x1xf32>
    %cst_81 = arith.constant 3.200000e+01 : f32
    %237 = vector.broadcast %cst_81 : f32 to vector<16x1xf32>
    %238 = arith.divf %236, %237 : vector<16x1xf32>
    %239 = vector.broadcast %231 : vector<16x1xf32> to vector<16x32xf32>
    %240 = arith.subf %227, %239 : vector<16x32xf32>
    %cst_82 = arith.constant 9.99999974E-6 : f32
    %241 = vector.broadcast %cst_82 : f32 to vector<16x1xf32>
    %242 = arith.addf %238, %241 : vector<16x1xf32>
    %243 = math.rsqrt %242 : vector<16x1xf32>
    %244 = vector.broadcast %243 : vector<16x1xf32> to vector<16x32xf32>
    %245 = arith.mulf %240, %244 : vector<16x32xf32>
    %246 = arith.mulf %245, %60 : vector<16x32xf32>
    %247 = arith.addf %246, %63 : vector<16x32xf32>
    %cst_83 = arith.constant dense<0.000000e+00> : vector<16x96xf32>
    %248 = tpu.matmul %247, %0, %cst_83 {dimension_numbers = #tpu.dot_dimension_numbers<[1], [1], [0], [0], [0, 0, 1, 0], [], []>} : vector<16x32xf32>, vector<96x32xf32>, vector<16x96xf32> -> vector<16x96xf32>
    %249 = arith.addf %248, %12 : vector<16x96xf32>
    %250 = vector.extract_strided_slice %249 {offsets = [0, 0], sizes = [16, 32], strides = [1, 1]} : vector<16x96xf32> to vector<16x32xf32>
    %251 = vector.extract_strided_slice %249 {offsets = [0, 32], sizes = [16, 32], strides = [1, 1]} : vector<16x96xf32> to vector<16x32xf32>
    %252 = vector.extract_strided_slice %249 {offsets = [0, 64], sizes = [16, 32], strides = [1, 1]} : vector<16x96xf32> to vector<16x32xf32>
    %cst_84 = arith.constant 0.353553385 : f32
    %253 = vector.broadcast %cst_84 : f32 to vector<16x32xf32>
    %254 = arith.mulf %250, %253 : vector<16x32xf32>
    %255 = vector.shape_cast %254 : vector<16x32xf32> to vector<16x4x8xf32>
    %256 = vector.shape_cast %251 : vector<16x32xf32> to vector<16x4x8xf32>
    %257 = vector.shape_cast %252 : vector<16x32xf32> to vector<16x4x8xf32>
    "tpu.trace_start"() <{level = 10 : i32, message = "qhd,khd->hqk"}> : () -> ()
    %cst_85 = arith.constant dense<0.000000e+00> : vector<4x16x16xf32>
    %258 = tpu.matmul %255, %256, %cst_85 {dimension_numbers = #tpu.dot_dimension_numbers<[2], [2], [0], [0], [0, 1, 0, 0, 1, 0], [1], [1]>} : vector<16x4x8xf32>, vector<16x4x8xf32>, vector<4x16x16xf32> -> vector<4x16x16xf32>
    "tpu.trace_stop"() : () -> ()
    %259 = arith.addf %258, %68 : vector<4x16x16xf32>
    %cst_86 = arith.constant dense<0xFF800000> : vector<4x16xf32>
    %260 = vector.multi_reduction <maximumf>, %259, %cst_86 [2] : vector<4x16x16xf32> to vector<4x16xf32>
    %261 = vector.shape_cast %260 : vector<4x16xf32> to vector<4x16x1xf32>
    %262 = vector.broadcast %261 : vector<4x16x1xf32> to vector<4x16x16xf32>
    %263 = arith.subf %259, %262 : vector<4x16x16xf32>
    %264 = math.exp %263 : vector<4x16x16xf32>
    %cst_87 = arith.constant dense<0.000000e+00> : vector<4x16xf32>
    %265 = vector.multi_reduction <add>, %264, %cst_87 [2] : vector<4x16x16xf32> to vector<4x16xf32>
    %266 = vector.shape_cast %265 : vector<4x16xf32> to vector<4x16x1xf32>
    %267 = vector.broadcast %266 : vector<4x16x1xf32> to vector<4x16x16xf32>
    %268 = arith.divf %264, %267 : vector<4x16x16xf32>
    "tpu.trace_start"() <{level = 10 : i32, message = "hqk,khd->qhd"}> : () -> ()
    %cst_88 = arith.constant dense<0.000000e+00> : vector<4x8x16xf32>
    %269 = tpu.matmul %257, %268, %cst_88 {dimension_numbers = #tpu.dot_dimension_numbers<[0], [2], [2], [1], [0, 1, 0, 2, 1, 1], [1], [0]>} : vector<16x4x8xf32>, vector<4x16x16xf32>, vector<4x8x16xf32> -> vector<4x8x16xf32>
    %270 = tpu.transpose %269, [2, 0, 1] : vector<4x8x16xf32> -> vector<16x4x8xf32>
    "tpu.trace_stop"() : () -> ()
    %271 = vector.shape_cast %270 : vector<16x4x8xf32> to vector<16x32xf32>
    %cst_89 = arith.constant dense<0.000000e+00> : vector<16x32xf32>
    %272 = tpu.matmul %271, %1, %cst_89 {dimension_numbers = #tpu.dot_dimension_numbers<[1], [1], [0], [0], [0, 0, 1, 0], [], []>} : vector<16x32xf32>, vector<32x32xf32>, vector<16x32xf32> -> vector<16x32xf32>
    %273 = arith.addf %272, %15 : vector<16x32xf32>
    %274 = arith.addf %247, %273 : vector<16x32xf32>
    %cst_90 = arith.constant dense<0.000000e+00> : vector<16xf32>
    %275 = vector.multi_reduction <add>, %274, %cst_90 [1] : vector<16x32xf32> to vector<16xf32>
    %276 = vector.shape_cast %275 : vector<16xf32> to vector<16x1xf32>
    %cst_91 = arith.constant 3.200000e+01 : f32
    %277 = vector.broadcast %cst_91 : f32 to vector<16x1xf32>
    %278 = arith.divf %276, %277 : vector<16x1xf32>
    %279 = vector.broadcast %278 : vector<16x1xf32> to vector<16x32xf32>
    %280 = arith.subf %274, %279 : vector<16x32xf32>
    %281 = arith.mulf %280, %280 : vector<16x32xf32>
    %cst_92 = arith.constant dense<0.000000e+00> : vector<16xf32>
    %282 = vector.multi_reduction <add>, %281, %cst_92 [1] : vector<16x32xf32> to vector<16xf32>
    %283 = vector.shape_cast %282 : vector<16xf32> to vector<16x1xf32>
    %cst_93 = arith.constant 3.200000e+01 : f32
    %284 = vector.broadcast %cst_93 : f32 to vector<16x1xf32>
    %285 = arith.divf %283, %284 : vector<16x1xf32>
    %286 = vector.broadcast %278 : vector<16x1xf32> to vector<16x32xf32>
    %287 = arith.subf %274, %286 : vector<16x32xf32>
    %cst_94 = arith.constant 9.99999974E-6 : f32
    %288 = vector.broadcast %cst_94 : f32 to vector<16x1xf32>
    %289 = arith.addf %285, %288 : vector<16x1xf32>
    %290 = math.rsqrt %289 : vector<16x1xf32>
    %291 = vector.broadcast %290 : vector<16x1xf32> to vector<16x32xf32>
    %292 = arith.mulf %287, %291 : vector<16x32xf32>
    %293 = arith.mulf %292, %42 : vector<16x32xf32>
    %294 = arith.addf %293, %45 : vector<16x32xf32>
    %295 = arith.addf %294, %64 : vector<16x32xf32>
    %cst_95 = arith.constant dense<0.000000e+00> : vector<16x64xf32>
    %296 = tpu.matmul %295, %2, %cst_95 {dimension_numbers = #tpu.dot_dimension_numbers<[1], [1], [0], [0], [0, 0, 1, 0], [], []>} : vector<16x32xf32>, vector<64x32xf32>, vector<16x64xf32> -> vector<16x64xf32>
    %297 = arith.addf %296, %18 : vector<16x64xf32>
    %cst_96 = arith.constant dense<0.000000e+00> : vector<16x32xf32>
    %298 = tpu.matmul %294, %3, %cst_96 {dimension_numbers = #tpu.dot_dimension_numbers<[1], [1], [0], [0], [0, 0, 1, 0], [], []>} : vector<16x32xf32>, vector<32x32xf32>, vector<16x32xf32> -> vector<16x32xf32>
    %299 = arith.addf %298, %21 : vector<16x32xf32>
    %300 = vector.extract_strided_slice %297 {offsets = [0, 0], sizes = [16, 32], strides = [1, 1]} : vector<16x64xf32> to vector<16x32xf32>
    %301 = vector.extract_strided_slice %297 {offsets = [0, 32], sizes = [16, 32], strides = [1, 1]} : vector<16x64xf32> to vector<16x32xf32>
    %cst_97 = arith.constant 0.353553385 : f32
    %302 = vector.broadcast %cst_97 : f32 to vector<16x32xf32>
    %303 = arith.mulf %300, %302 : vector<16x32xf32>
    %304 = vector.shape_cast %303 : vector<16x32xf32> to vector<16x4x8xf32>
    %305 = vector.shape_cast %301 : vector<16x32xf32> to vector<16x4x8xf32>
    %306 = vector.shape_cast %299 : vector<16x32xf32> to vector<16x4x8xf32>
    "tpu.trace_start"() <{level = 10 : i32, message = "qhd,khd->hqk"}> : () -> ()
    %cst_98 = arith.constant dense<0.000000e+00> : vector<4x16x16xf32>
    %307 = tpu.matmul %304, %305, %cst_98 {dimension_numbers = #tpu.dot_dimension_numbers<[2], [2], [0], [0], [0, 1, 0, 0, 1, 0], [1], [1]>} : vector<16x4x8xf32>, vector<16x4x8xf32>, vector<4x16x16xf32> -> vector<4x16x16xf32>
    "tpu.trace_stop"() : () -> ()
    %308 = arith.addf %307, %68 : vector<4x16x16xf32>
    %cst_99 = arith.constant dense<0xFF800000> : vector<4x16xf32>
    %309 = vector.multi_reduction <maximumf>, %308, %cst_99 [2] : vector<4x16x16xf32> to vector<4x16xf32>
    %310 = vector.shape_cast %309 : vector<4x16xf32> to vector<4x16x1xf32>
    %311 = vector.broadcast %310 : vector<4x16x1xf32> to vector<4x16x16xf32>
    %312 = arith.subf %308, %311 : vector<4x16x16xf32>
    %313 = math.exp %312 : vector<4x16x16xf32>
    %cst_100 = arith.constant dense<0.000000e+00> : vector<4x16xf32>
    %314 = vector.multi_reduction <add>, %313, %cst_100 [2] : vector<4x16x16xf32> to vector<4x16xf32>
    %315 = vector.shape_cast %314 : vector<4x16xf32> to vector<4x16x1xf32>
    %316 = vector.broadcast %315 : vector<4x16x1xf32> to vector<4x16x16xf32>
    %317 = arith.divf %313, %316 : vector<4x16x16xf32>
    "tpu.trace_start"() <{level = 10 : i32, message = "hqk,khd->qhd"}> : () -> ()
    %cst_101 = arith.constant dense<0.000000e+00> : vector<4x8x16xf32>
    %318 = tpu.matmul %306, %317, %cst_101 {dimension_numbers = #tpu.dot_dimension_numbers<[0], [2], [2], [1], [0, 1, 0, 2, 1, 1], [1], [0]>} : vector<16x4x8xf32>, vector<4x16x16xf32>, vector<4x8x16xf32> -> vector<4x8x16xf32>
    %319 = tpu.transpose %318, [2, 0, 1] : vector<4x8x16xf32> -> vector<16x4x8xf32>
    "tpu.trace_stop"() : () -> ()
    %320 = vector.shape_cast %319 : vector<16x4x8xf32> to vector<16x32xf32>
    %cst_102 = arith.constant dense<0.000000e+00> : vector<16x32xf32>
    %321 = tpu.matmul %320, %4, %cst_102 {dimension_numbers = #tpu.dot_dimension_numbers<[1], [1], [0], [0], [0, 0, 1, 0], [], []>} : vector<16x32xf32>, vector<32x32xf32>, vector<16x32xf32> -> vector<16x32xf32>
    %322 = arith.addf %321, %24 : vector<16x32xf32>
    %323 = arith.addf %294, %322 : vector<16x32xf32>
    %cst_103 = arith.constant dense<0.000000e+00> : vector<16xf32>
    %324 = vector.multi_reduction <add>, %323, %cst_103 [1] : vector<16x32xf32> to vector<16xf32>
    %325 = vector.shape_cast %324 : vector<16xf32> to vector<16x1xf32>
    %cst_104 = arith.constant 3.200000e+01 : f32
    %326 = vector.broadcast %cst_104 : f32 to vector<16x1xf32>
    %327 = arith.divf %325, %326 : vector<16x1xf32>
    %328 = vector.broadcast %327 : vector<16x1xf32> to vector<16x32xf32>
    %329 = arith.subf %323, %328 : vector<16x32xf32>
    %330 = arith.mulf %329, %329 : vector<16x32xf32>
    %cst_105 = arith.constant dense<0.000000e+00> : vector<16xf32>
    %331 = vector.multi_reduction <add>, %330, %cst_105 [1] : vector<16x32xf32> to vector<16xf32>
    %332 = vector.shape_cast %331 : vector<16xf32> to vector<16x1xf32>
    %cst_106 = arith.constant 3.200000e+01 : f32
    %333 = vector.broadcast %cst_106 : f32 to vector<16x1xf32>
    %334 = arith.divf %332, %333 : vector<16x1xf32>
    %335 = vector.broadcast %327 : vector<16x1xf32> to vector<16x32xf32>
    %336 = arith.subf %323, %335 : vector<16x32xf32>
    %cst_107 = arith.constant 9.99999974E-6 : f32
    %337 = vector.broadcast %cst_107 : f32 to vector<16x1xf32>
    %338 = arith.addf %334, %337 : vector<16x1xf32>
    %339 = math.rsqrt %338 : vector<16x1xf32>
    %340 = vector.broadcast %339 : vector<16x1xf32> to vector<16x32xf32>
    %341 = arith.mulf %336, %340 : vector<16x32xf32>
    %342 = arith.mulf %341, %48 : vector<16x32xf32>
    %343 = arith.addf %342, %51 : vector<16x32xf32>
    %cst_108 = arith.constant dense<0.000000e+00> : vector<16x32xf32>
    %344 = tpu.matmul %343, %5, %cst_108 {dimension_numbers = #tpu.dot_dimension_numbers<[1], [1], [0], [0], [0, 0, 1, 0], [], []>} : vector<16x32xf32>, vector<32x32xf32>, vector<16x32xf32> -> vector<16x32xf32>
    %345 = arith.addf %344, %27 : vector<16x32xf32>
    %cst_109 = arith.constant 0.353553385 : f32
    %346 = vector.broadcast %cst_109 : f32 to vector<16x32xf32>
    %347 = arith.mulf %345, %346 : vector<16x32xf32>
    %348 = vector.shape_cast %347 : vector<16x32xf32> to vector<16x4x8xf32>
    %349 = vector.shape_cast %79 : vector<16x32xf32> to vector<16x4x8xf32>
    %350 = vector.shape_cast %80 : vector<16x32xf32> to vector<16x4x8xf32>
    "tpu.trace_start"() <{level = 10 : i32, message = "qhd,khd->hqk"}> : () -> ()
    %cst_110 = arith.constant dense<0.000000e+00> : vector<4x16x16xf32>
    %351 = tpu.matmul %348, %349, %cst_110 {dimension_numbers = #tpu.dot_dimension_numbers<[2], [2], [0], [0], [0, 1, 0, 0, 1, 0], [1], [1]>} : vector<16x4x8xf32>, vector<16x4x8xf32>, vector<4x16x16xf32> -> vector<4x16x16xf32>
    "tpu.trace_stop"() : () -> ()
    %352 = arith.addf %351, %72 : vector<4x16x16xf32>
    %cst_111 = arith.constant dense<0xFF800000> : vector<4x16xf32>
    %353 = vector.multi_reduction <maximumf>, %352, %cst_111 [2] : vector<4x16x16xf32> to vector<4x16xf32>
    %354 = vector.shape_cast %353 : vector<4x16xf32> to vector<4x16x1xf32>
    %355 = vector.broadcast %354 : vector<4x16x1xf32> to vector<4x16x16xf32>
    %356 = arith.subf %352, %355 : vector<4x16x16xf32>
    %357 = math.exp %356 : vector<4x16x16xf32>
    %cst_112 = arith.constant dense<0.000000e+00> : vector<4x16xf32>
    %358 = vector.multi_reduction <add>, %357, %cst_112 [2] : vector<4x16x16xf32> to vector<4x16xf32>
    %359 = vector.shape_cast %358 : vector<4x16xf32> to vector<4x16x1xf32>
    %360 = vector.broadcast %359 : vector<4x16x1xf32> to vector<4x16x16xf32>
    %361 = arith.divf %357, %360 : vector<4x16x16xf32>
    "tpu.trace_start"() <{level = 10 : i32, message = "hqk,khd->qhd"}> : () -> ()
    %cst_113 = arith.constant dense<0.000000e+00> : vector<4x8x16xf32>
    %362 = tpu.matmul %350, %361, %cst_113 {dimension_numbers = #tpu.dot_dimension_numbers<[0], [2], [2], [1], [0, 1, 0, 2, 1, 1], [1], [0]>} : vector<16x4x8xf32>, vector<4x16x16xf32>, vector<4x8x16xf32> -> vector<4x8x16xf32>
    %363 = tpu.transpose %362, [2, 0, 1] : vector<4x8x16xf32> -> vector<16x4x8xf32>
    "tpu.trace_stop"() : () -> ()
    %364 = vector.shape_cast %363 : vector<16x4x8xf32> to vector<16x32xf32>
    %cst_114 = arith.constant dense<0.000000e+00> : vector<16x32xf32>
    %365 = tpu.matmul %364, %7, %cst_114 {dimension_numbers = #tpu.dot_dimension_numbers<[1], [1], [0], [0], [0, 0, 1, 0], [], []>} : vector<16x32xf32>, vector<32x32xf32>, vector<16x32xf32> -> vector<16x32xf32>
    %366 = arith.addf %365, %30 : vector<16x32xf32>
    %367 = arith.addf %343, %366 : vector<16x32xf32>
    %cst_115 = arith.constant dense<0.000000e+00> : vector<16xf32>
    %368 = vector.multi_reduction <add>, %367, %cst_115 [1] : vector<16x32xf32> to vector<16xf32>
    %369 = vector.shape_cast %368 : vector<16xf32> to vector<16x1xf32>
    %cst_116 = arith.constant 3.200000e+01 : f32
    %370 = vector.broadcast %cst_116 : f32 to vector<16x1xf32>
    %371 = arith.divf %369, %370 : vector<16x1xf32>
    %372 = vector.broadcast %371 : vector<16x1xf32> to vector<16x32xf32>
    %373 = arith.subf %367, %372 : vector<16x32xf32>
    %374 = arith.mulf %373, %373 : vector<16x32xf32>
    %cst_117 = arith.constant dense<0.000000e+00> : vector<16xf32>
    %375 = vector.multi_reduction <add>, %374, %cst_117 [1] : vector<16x32xf32> to vector<16xf32>
    %376 = vector.shape_cast %375 : vector<16xf32> to vector<16x1xf32>
    %cst_118 = arith.constant 3.200000e+01 : f32
    %377 = vector.broadcast %cst_118 : f32 to vector<16x1xf32>
    %378 = arith.divf %376, %377 : vector<16x1xf32>
    %379 = vector.broadcast %371 : vector<16x1xf32> to vector<16x32xf32>
    %380 = arith.subf %367, %379 : vector<16x32xf32>
    %cst_119 = arith.constant 9.99999974E-6 : f32
    %381 = vector.broadcast %cst_119 : f32 to vector<16x1xf32>
    %382 = arith.addf %378, %381 : vector<16x1xf32>
    %383 = math.rsqrt %382 : vector<16x1xf32>
    %384 = vector.broadcast %383 : vector<16x1xf32> to vector<16x32xf32>
    %385 = arith.mulf %380, %384 : vector<16x32xf32>
    %386 = arith.mulf %385, %54 : vector<16x32xf32>
    %387 = arith.addf %386, %57 : vector<16x32xf32>
    %cst_120 = arith.constant dense<0.000000e+00> : vector<16x64xf32>
    %388 = tpu.matmul %387, %8, %cst_120 {dimension_numbers = #tpu.dot_dimension_numbers<[1], [1], [0], [0], [0, 0, 1, 0], [], []>} : vector<16x32xf32>, vector<64x32xf32>, vector<16x64xf32> -> vector<16x64xf32>
    %389 = arith.addf %388, %36 : vector<16x64xf32>
    %cst_121 = arith.constant 0.000000e+00 : f32
    %390 = vector.broadcast %cst_121 : f32 to vector<16x64xf32>
    %391 = arith.maximumf %389, %390 : vector<16x64xf32>
    %cst_122 = arith.constant dense<0.000000e+00> : vector<16x32xf32>
    %392 = tpu.matmul %391, %9, %cst_122 {dimension_numbers = #tpu.dot_dimension_numbers<[1], [1], [0], [0], [0, 0, 1, 0], [], []>} : vector<16x64xf32>, vector<32x64xf32>, vector<16x32xf32> -> vector<16x32xf32>
    %393 = arith.addf %392, %39 : vector<16x32xf32>
    %394 = arith.addf %387, %393 : vector<16x32xf32>
    %cst_123 = arith.constant dense<0.000000e+00> : vector<16xf32>
    %395 = vector.multi_reduction <add>, %394, %cst_123 [1] : vector<16x32xf32> to vector<16xf32>
    %396 = vector.shape_cast %395 : vector<16xf32> to vector<16x1xf32>
    %cst_124 = arith.constant 3.200000e+01 : f32
    %397 = vector.broadcast %cst_124 : f32 to vector<16x1xf32>
    %398 = arith.divf %396, %397 : vector<16x1xf32>
    %399 = vector.broadcast %398 : vector<16x1xf32> to vector<16x32xf32>
    %400 = arith.subf %394, %399 : vector<16x32xf32>
    %401 = arith.mulf %400, %400 : vector<16x32xf32>
    %cst_125 = arith.constant dense<0.000000e+00> : vector<16xf32>
    %402 = vector.multi_reduction <add>, %401, %cst_125 [1] : vector<16x32xf32> to vector<16xf32>
    %403 = vector.shape_cast %402 : vector<16xf32> to vector<16x1xf32>
    %cst_126 = arith.constant 3.200000e+01 : f32
    %404 = vector.broadcast %cst_126 : f32 to vector<16x1xf32>
    %405 = arith.divf %403, %404 : vector<16x1xf32>
    %406 = vector.broadcast %398 : vector<16x1xf32> to vector<16x32xf32>
    %407 = arith.subf %394, %406 : vector<16x32xf32>
    %cst_127 = arith.constant 9.99999974E-6 : f32
    %408 = vector.broadcast %cst_127 : f32 to vector<16x1xf32>
    %409 = arith.addf %405, %408 : vector<16x1xf32>
    %410 = math.rsqrt %409 : vector<16x1xf32>
    %411 = vector.broadcast %410 : vector<16x1xf32> to vector<16x32xf32>
    %412 = arith.mulf %407, %411 : vector<16x32xf32>
    %413 = arith.mulf %412, %60 : vector<16x32xf32>
    %414 = arith.addf %413, %63 : vector<16x32xf32>
    %415 = vector.shape_cast %414 : vector<16x32xf32> to vector<2x8x32xf32>
    %c0_128 = arith.constant 0 : index
    %c0_129 = arith.constant 0 : index
    %c0_130 = arith.constant 0 : index
    %416 = vector.load %arg4[%c0_128, %c0_129, %c0_130] : memref<2x8x32xf32, #tpu.memory_space<vmem>>, vector<2x8x32xf32>
    tpu.vector_store %arg4[%c0_128, %c0_129, %c0_130], %415 {strides = array<i32>} : memref<2x8x32xf32, #tpu.memory_space<vmem>>, vector<2x8x32xf32>,
    return
  }
}

</mosaic_0001>

<bundles_post_ra>
// kernel: tpu_custom_call.1
= control target key start
LH: loop header
LB: loop body
LE: loop exit
PB: predicated region body
PF: predicated region fallthrough
CT: control target
= control target key end

     0   :  { %9 = vsyncpa [#allocation3], 0  ;;  %s14449_s0 = inlined_call_operand.hbm [shape: f32[2,8,32], index: 0, kind: input, shape index: {}]   ;;  %s14450_s1 = inlined_call_operand.hbm [shape: f32[2,8,32], index: 1, kind: input, shape index: {}]   ;;  %s14451_s2 = inlined_call_operand.hbm [shape: f32[480,128], index: 2, kind: input, shape index: {}]   ;;  %s14452_s3 = inlined_call_operand.hbm [shape: f32[72,128], index: 3, kind: input, shape index: {}]   ;;  %s14453_s4 = inlined_call_operand.hbm [shape: f32[2,8,32], index: 4, kind: output, shape index: {}]  }
   0x1   :  { %10 = vsyncpa [#allocation6], 0 }
   0x2   :  { %11 = vsyncpa [#allocation9], 0 }
   0x3   :  { %12 = vsyncpa [#allocation4], 0  ;;  %s12782_s15 = smov [#allocation5]   ;;  %s12783_s17 = smov [#allocation2]  }
   0x4   :  { %s30_s16 = sshll.u32 %s12782_s15, 4  ;;  %s18_s18 = sshll.u32 %s12783_s17, 4  ;;  %s31_s16 = int_to_ptr.vmem [resolvable:$true] %s30_s16  ;;  %s12826_s18 = int_to_ptr.vmem [resolvable:$true] %s18_s18 }
   0x5   :  { %s12664_s21 = scalar_lea.hbm %s14450_s1, 256 }
   0x6   :  { %p12665_p0 = scmp.ne.s32.totalorder %s14450_s1, %s12664_s21  ;;  %p12668_p1 = scmp.lt.u32.totalorder %s12664_s21, %s14450_s1 }
   0x8   :  { %p12670_p2 = pnand %p12668_p1, %p12665_p0 }
   0xa   :  { %12673 = shalt.err (!%p12670_p2)
}
   0xb   :  { %s12674_s26 = scalar_lea.vmem %s31_s16, 256  ;;  %p12679_p4 = scmp.lt.s32.totalorder %s31_s16, %s31_s16 }
   0xc   :  { %p12675_p3 = scmp.ne.s32.totalorder %s31_s16, %s12674_s26  ;;  %p12680_p5 = scmp.lt.s32.totalorder %s12674_s26, %s12674_s26 }
   0xe   :  { %p12681_p6 = por %p12680_p5, %p12679_p4 }
  0x10   :  { %p12682_p7 = pnand %p12681_p6, %p12675_p3 }
  0x12   :  { %12685 = shalt.err (!%p12682_p7)
}
  0x13   :  { %s12784_s27 = smov 128   ;;  %s12785_s28 = smov 8  }
  0x14   :  { %36 = dma.hbm_to_vmem [thread:$0]  %s14450_s1, 256, %s31_s16, [#allocation6], %s12784_s27, %s12784_s27, %s12785_s28  }
  0x15   :  { %s12686_s7 = scalar_lea.hbm %s14449_s0, 256 }
  0x16   :  { %p12687_p8 = scmp.ne.s32.totalorder %s14449_s0, %s12686_s7  ;;  %p12690_p9 = scmp.lt.u32.totalorder %s12686_s7, %s14449_s0 }
  0x18   :  { %p12692_p10 = pnand %p12690_p9, %p12687_p8 }
  0x1a   :  { %12695 = shalt.err (!%p12692_p10)
}
  0x1b   :  { %s12696_s12 = scalar_lea.vmem %s12826_s18, 256  ;;  %p12701_p12 = scmp.lt.s32.totalorder %s12826_s18, %s12826_s18 }
  0x1c   :  { %p12697_p11 = scmp.ne.s32.totalorder %s12826_s18, %s12696_s12  ;;  %p12702_p13 = scmp.lt.s32.totalorder %s12696_s12, %s12696_s12 }
  0x1e   :  { %p12703_p0 = por %p12702_p13, %p12701_p12 }
  0x20   :  { %p12704_p1 = pnand %p12703_p0, %p12697_p11 }
  0x22   :  { %12707 = shalt.err (!%p12704_p1)
}
  0x23   :  { %24 = dma.hbm_to_vmem [thread:$0]  %s14449_s0, 256, %s12826_s18, [#allocation3], %s12784_s27, %s12784_s27, %s12785_s28  }
  0x24   :  { %s12786_s14 = smov [#allocation7]   ;;  %s12787_s16 = smov [#allocation8]  }
  0x25   :  { %s42_s15 = sshll.u32 %s12786_s14, 4  ;;  %s54_s17 = sshll.u32 %s12787_s16, 4  ;;  %s43_s15 = int_to_ptr.vmem [resolvable:$true] %s42_s15  ;;  %s12863_s17 = int_to_ptr.vmem [resolvable:$true] %s54_s17 }
  0x26   :  { %s12708_s21 = scalar_lea.hbm %s14451_s2, 7680 }
  0x27   :  { %p12709_p2 = scmp.ne.s32.totalorder %s14451_s2, %s12708_s21  ;;  %p12712_p3 = scmp.lt.u32.totalorder %s12708_s21, %s14451_s2 }
  0x29   :  { %p12714_p4 = pnand %p12712_p3, %p12709_p2 }
  0x2b   :  { %12717 = shalt.err (!%p12714_p4)
}
  0x2c   :  { %s12718_s0 = scalar_lea.vmem %s43_s15, 7680  ;;  %p12723_p6 = scmp.lt.s32.totalorder %s43_s15, %s43_s15 }
  0x2d   :  { %p12719_p5 = scmp.ne.s32.totalorder %s43_s15, %s12718_s0  ;;  %p12724_p7 = scmp.lt.s32.totalorder %s12718_s0, %s12718_s0 }
  0x2f   :  { %p12725_p8 = por %p12724_p7, %p12723_p6 }
  0x31   :  { %p12726_p9 = pnand %p12725_p8, %p12719_p5 }
  0x33   :  { %12729 = shalt.err (!%p12726_p9)
}
  0x34   :  { %48 = dma.hbm_to_vmem [thread:$0]  %s14451_s2, 7680, %s43_s15, [#allocation6], %s12784_s27, %s12784_s27, %s12785_s28  }
  0x35   :  { %s12730_s5 = scalar_lea.hbm %s14452_s3, 1152 }
  0x36   :  { %p12731_p10 = scmp.ne.s32.totalorder %s14452_s3, %s12730_s5  ;;  %p12734_p11 = scmp.lt.u32.totalorder %s12730_s5, %s14452_s3 }
  0x38   :  { %p12736_p12 = pnand %p12734_p11, %p12731_p10 }
  0x3a   :  { %12739 = shalt.err (!%p12736_p12)
}
  0x3b   :  { %s12740_s10 = scalar_lea.vmem %s12863_s17, 1152  ;;  %p12745_p0 = scmp.lt.s32.totalorder %s12863_s17, %s12863_s17 }
  0x3c   :  { %p12741_p13 = scmp.ne.s32.totalorder %s12863_s17, %s12740_s10  ;;  %p12746_p1 = scmp.lt.s32.totalorder %s12740_s10, %s12740_s10 }
  0x3e   :  { %p12747_p2 = por %p12746_p1, %p12745_p0 }
  0x40   :  { %p12748_p3 = pnand %p12747_p2, %p12741_p13 }
  0x42   :  { %12751 = shalt.err (!%p12748_p3)
}
  0x43   :  { %60 = dma.hbm_to_vmem [thread:$0]  %s14452_s3, 1152, %s12863_s17, [#allocation9], %s12784_s27, %s12784_s27, %s12785_s28  }
  0x44   :  { %12774 = dma.done.wait [#allocation3], 256  }
  0x45   :  { %12775 = vsyncadd [#allocation3], 4294967040 }
  0x46   :  { %12776 = dma.done.wait [#allocation6], 7936  }
  0x47   :  { %12777 = vsyncadd [#allocation6], 4294959360 }
  0x48   :  { %12778 = dma.done.wait [#allocation9], 1152  }
  0x49   :  { %12779 = vsyncadd [#allocation9], 4294966144  ;;  %vm233_vm0 = vcmask 261120   ;;  %v73_v1 = vld [vmem:[#allocation7] sm:$0xff]  ;;  %v74_v2 = vld [vmem:[#allocation7 + $0x8] sm:$0xff]  ;;  %vm638_vm2 = vcmask 64512  }
  0x4a   :  { %vm12902_vm1 = vmpackc.low %vm233_vm0, %vm233_vm0  ;;  %v75_v3 = vld [vmem:[#allocation7 + $0x10] sm:$0xff]  ;;  %v12906_v4 = vpack.c.bf16 %v74_v2, %v73_v1  ;;  %v76_v5 = vld [vmem:[#allocation7 + $0x18] sm:$0xff]  ;;  %s12788_s3 = smov 112   ;;  %s12789_s12 = smov 120   ;;  %vm955_vm3 = vcmask 130048   ;;  %vm12794_vm4 = vmmov 0  }
  0x4b   :  { %v12908_v6 = vpack.c.bf16 %v76_v5, %v75_v3  ;;  %v12916_v7 = vld [vmem:[#allocation2] sm:$0xff]  ;;  %v110_v9 = vld [vmem:[#allocation7 + $0x128] sm:$0xff]  ;;  %v111_v10 = vld [vmem:[#allocation7 + $0x130] sm:$0xff]  ;;  %s12790_s1 = smov 104   ;;  %s12791_s13 = smov 96   ;;  %vm1940_vm6 = vcmask 195584  }
  0x4c   :  { %11992 = vmatprep.subr.msk.bf16.mxu1 %vm12902_vm1, %v12906_v4  ;;  %v109_v8 = vld [vmem:[#allocation7 + $0x120] sm:$0xff]  ;;  %11440 = vmatprep.mubr.msk.f32.mxu1 %vm233_vm0, %v12916_v7  ;;  %v112_v11 = vld [vmem:[#allocation7 + $0x138] sm:$0xff]  ;;  %v78_v13 = vld [vmem:[#allocation7 + $0x28] sm:$0xff]  ;;  %s12792_s14 = smov 64   ;;  %s12798_s15 = smov 16   ;;  %vm5665_vm7 = vcmask 523264  }
  0x4d   :  { %11995 = vmatpush3.bf16.xpose.msk.msra.mxu1 %vm12902_vm1, %v12906_v4  ;;  %v77_v12 = vld [vmem:[#allocation7 + $0x20] sm:$0xff]  ;;  %v11966_v14 = vpack.c.bf16 %v110_v9, %v109_v8  ;;  %v11972_v15 = vpack.c.bf16 %v112_v11, %v111_v10  ;;  %v114_v18 = vld [vmem:[#allocation7 + $0x148] sm:$0xff]  ;;  %v79_v19 = vld [vmem:[#allocation7 + $0x30] sm:$0xff]  ;;  %s12799_s16 = smov 24   ;;  %s12800_s17 = smov [#allocation10]  }
  0x4e   :  { %11998 = vmatprep.subr.msk.bf16.mxu1 %vm12902_vm1, %v12908_v6  ;;  %v12925_v16 = vpack.c.bf16 %v78_v13, %v77_v12  ;;  %v113_v17 = vld [vmem:[#allocation7 + $0x140] sm:$0xff]  ;;  %v80_v20 = vld [vmem:[#allocation7 + $0x38] sm:$0xff]  ;;  %v115_v23 = vld [vmem:[#allocation7 + $0x150] sm:$0xff]  ;;  %s10777_s19 = sshll.u32 %s12800_s17, 4  ;;  %s10778_s19 = int_to_ptr.vmem [resolvable:$true] %s10777_s19 }
  0x4f   :  { %11968 = vmatprep.subr.msk.bf16.mxu0 %vm12902_vm1, %v11966_v14  ;;  %v11978_v21 = vpack.c.bf16 %v114_v18, %v113_v17  ;;  %v12937_v22 = vpack.c.bf16 %v80_v20, %v79_v19  ;;  %v116_v24 = vld [vmem:[#allocation7 + $0x158] sm:$0xff]  ;;  %v81_v25 = vld [vmem:[#allocation7 + $0x40] sm:$0xff]  ;;  %v82_v26 = vld [vmem:[#allocation7 + $0x48] sm:$0xff]  ;;  %s12752_s20 = scalar_lea.vmem %s10778_s19, 256  ;;  %p12757_p5 = scmp.lt.s32.totalorder %s10778_s19, %s10778_s19 }
  0x50   :  { %11971 = vmatpush3.bf16.xpose.msk.msra.mxu0 %vm12902_vm1, %v11966_v14  ;;  %v11984_v27 = vpack.c.bf16 %v116_v24, %v115_v23  ;;  %v12949_v28 = vpack.c.bf16 %v82_v26, %v81_v25  ;;  %v83_v29 = vld [vmem:[#allocation7 + $0x50] sm:$0xff]  ;;  %v84_v30 = vld [vmem:[#allocation7 + $0x58] sm:$0xff]  ;;  %v12974_v32 = vld [vmem:[#allocation2 + $0x8] sm:$0xff]  ;;  %p12753_p4 = scmp.ne.s32.totalorder %s10778_s19, %s12752_s20  ;;  %p12758_p6 = scmp.lt.s32.totalorder %s12752_s20, %s12752_s20 }
  0x51   :  { %11974 = vmatprep.subr.msk.bf16.mxu0 %vm12902_vm1, %v11972_v15  ;;  %v12961_v31 = vpack.c.bf16 %v84_v30, %v83_v29  ;;  %v231_v33 = vld [vmem:[#allocation5] sm:$0xff]  ;;  %v232_v34 = vld [vmem:[#allocation5 + $0x8] sm:$0xff]  ;;  %vm13116_vm5 = vmpackc.low %vm955_vm3, %vm955_vm3 }
  0x52   :  { %11413 = vmatprep.mubr.msk.f32.mxu0 %vm233_vm0, %v231_v33  ;;  %v10791_v35 = vld [vmem:[#allocation8 + $0x30] ss:$0 sm:$0xff]  ;;  %v13044_v8 = vld [vmem:[#allocation8 + $0x18] sm:$0xff]  ;;  %vm13734_vm8 = vmpackc.low %vm5665_vm7, %vm5665_vm7  ;;  %p12759_p7 = por %p12758_p6, %p12757_p5 }
  0x53   :  { %v13046_v9 = vld [vmem:[#allocation8 + $0x10] sm:$0xff] }
  0x54   :  { %p12760_p8 = pnand %p12759_p7, %p12753_p4 }
  0x55   :  { %12001 = vmatpush3.bf16.xpose.msk.msra.mxu1 %vm12902_vm1, %v12908_v6 }
  0x56   :  { %12004 = vmatprep.subr.msk.bf16.mxu1 %vm12902_vm1, %v12925_v16 }
  0x58   :  { %11977 = vmatpush3.bf16.xpose.msk.msra.mxu0 %vm12902_vm1, %v11972_v15 }
  0x59   :  { %11980 = vmatprep.subr.msk.bf16.mxu0 %vm12902_vm1, %v11978_v21 }
  0x5d   :  { %12007 = vmatpush3.bf16.xpose.msk.msra.mxu1 %vm12902_vm1, %v12925_v16 }
  0x5e   :  { %12010 = vmatprep.subr.msk.bf16.mxu1 %vm12902_vm1, %v12937_v22 }
  0x60   :  { %11983 = vmatpush3.bf16.xpose.msk.msra.mxu0 %vm12902_vm1, %v11978_v21 }
  0x61   :  { %11986 = vmatprep.subr.msk.bf16.mxu0 %vm12902_vm1, %v11984_v27 }
  0x65   :  { %12013 = vmatpush3.bf16.xpose.msk.msra.mxu1 %vm12902_vm1, %v12937_v22 }
  0x66   :  { %12016 = vmatprep.subr.msk.bf16.mxu1 %vm12902_vm1, %v12949_v28 }
  0x68   :  { %11989 = vmatpush3.bf16.xpose.msk.msra.mxu0 %vm12902_vm1, %v11984_v27 }
  0x6d   :  { %12019 = vmatpush3.bf16.xpose.msk.msra.mxu1 %vm12902_vm1, %v12949_v28 }
  0x6e   :  { %12022 = vmatprep.subr.msk.bf16.mxu1 %vm12902_vm1, %v12961_v31 }
  0x6f   :  { %11414 = vmatmul.mubr.msk.f32.vlgmr.msra.gmra.mrb[0].mxu0 %vm233_vm0, %v232_v34 }
  0x75   :  { %12025 = vmatpush3.bf16.xpose.msk.msra.mxu1 %vm12902_vm1, %v12961_v31 }
  0x7c   :  { %11441 = vmatmul.mubr.msk.f32.vlgmr.msra.gmra.mrb[0].mxu1 %vm233_vm0, %v12974_v32 }
 0x142   :  { %v13033_v56 = vpop.f32.mrb[0].mxu0 }
 0x143   :  { %v13035_v57 = vpop.f32.mrb[1].mxu0 }
 0x14f   :  { %v11442_v36 = vpop.f32.mrb[0].mxu1 }
 0x150   :  { %v447_v37 = vpop.f32.mrb[1].mxu1  ;;  %v12987_v40 = vadd.f32 %v11442_v36, %v10791_v35 }
 0x151   :  { %v12980_v38 = vadd.f32 %v10791_v35, %v447_v37 }
 0x152   :  { %v457_v47 = vmul.f32 0.35355338, %v12987_v40 }
 0x153   :  { %478 = vrot.lane.b32.xlu1 %v12980_v38, %s12788_s3  ;;  %474 = vrot.lane.b32.xlu0 %v12980_v38, %s12789_s12  ;;  %v456_v39 = vmul.f32 0.35355338, %v12980_v38 }
 0x155   :  { %11445 = vmatprep.mubr.msk.f32.mxu0 %vm638_vm2, %v456_v39 }
 0x157   :  { %480 = vrot.lane.b32.xlu1 %v12987_v40, %s12788_s3  ;;  %476 = vrot.lane.b32.xlu0 %v12987_v40, %s12789_s12 }
 0x15b   :  { %484 = vrot.lane.b32.xlu1 %v12987_v40, %s12790_s1  ;;  %482 = vrot.lane.b32.xlu0 %v12980_v38, %s12790_s1 }
 0x15f   :  { %488 = vrot.lane.b32.xlu1 %v12987_v40, %s12791_s13  ;;  %486 = vrot.lane.b32.xlu0 %v12980_v38, %s12791_s13 }
 0x1c5   :  { %v13002_v41 = vpop.permute.xlu1 %478  ;;  %v13004_v42 = vpop.permute.xlu0 %474 }
 0x1c6   :  { %490 = vrot.lane.b32.xlu0 %v13004_v42, %s12791_s13 }
 0x1c9   :  { %v13008_v43 = vpop.permute.xlu0 %476  ;;  %v13014_v44 = vpop.permute.xlu1 %480 }
 0x1ca   :  { %494 = vrot.lane.b32.xlu0 %v13002_v41, %s12791_s13  ;;  %492 = vrot.lane.b32.xlu1 %v13008_v43, %s12791_s13 }
 0x1cd   :  { %v13016_v45 = vpop.permute.xlu0 %482  ;;  %v13022_v46 = vpop.permute.xlu1 %484 }
 0x1ce   :  { %496 = vrot.lane.b32.xlu1 %v13014_v44, %s12791_s13  ;;  %498 = vrot.lane.b32.xlu0 %v13016_v45, %s12791_s13 }
 0x1d1   :  { %v487_v48 = vpop.permute.xlu0 %486  ;;  %v489_v49 = vpop.permute.xlu1 %488 }
 0x1d2   :  { %500 = vrot.lane.b32.xlu1 %v13022_v46, %s12791_s13  ;;  %460 = vrot.lane.b32.xlu0 %v456_v39, %s12789_s12 }
 0x1d6   :  { %462 = vrot.lane.b32.xlu1 %v457_v47, %s12789_s12  ;;  %464 = vrot.lane.b32.xlu0 %v456_v39, %s12788_s3 }
 0x1da   :  { %466 = vrot.lane.b32.xlu1 %v457_v47, %s12788_s3  ;;  %468 = vrot.lane.b32.xlu0 %v456_v39, %s12790_s1 }
 0x1de   :  { %470 = vrot.lane.b32.xlu1 %v457_v47, %s12790_s1 }
 0x1f8   :  { %510 = vxpose.xlu0.b32.start [1/2] (short) (narrow) %v487_v48, 8 }
 0x1fc   :  { %511 = vxpose.xlu0.b32.end [2/2] (short) (narrow) %v489_v49, 8 }
 0x238   :  { %v491_v50 = vpop.permute.xlu0 %490 }
 0x239   :  { %542 = vxpose.xlu1.b32.start [1/2] (short) (narrow) %v491_v50, 8 }
 0x23c   :  { %v493_v51 = vpop.permute.xlu1 %492  ;;  %v495_v52 = vpop.permute.xlu0 %494 }
 0x23d   :  { %543 = vxpose.xlu1.b32.end [2/2] (short) (narrow) %v493_v51, 8  ;;  %574 = vxpose.xlu0.b32.start [1/2] (short) (narrow) %v495_v52, 8 }
 0x240   :  { %v497_v53 = vpop.permute.xlu1 %496  ;;  %v499_v54 = vpop.permute.xlu0 %498 }
 0x241   :  { %575 = vxpose.xlu0.b32.end [2/2] (short) (narrow) %v497_v53, 8 }
 0x244   :  { %v501_v55 = vpop.permute.xlu1 %500  ;;  %v461_v58 = vpop.permute.xlu0 %460 }
 0x245   :  { %606 = vxpose.xlu0.b32.start [1/2] (short) (narrow) %v499_v54, 8 }
 0x248   :  { %v465_v59 = vpop.permute.xlu0 %464  ;;  %v463_v62 = vpop.permute.xlu1 %462 }
 0x249   :  { %607 = vxpose.xlu0.b32.end [2/2] (short) (narrow) %v501_v55, 8 }
 0x24c   :  { %v469_v60 = vpop.permute.xlu0 %468  ;;  %v467_v63 = vpop.permute.xlu1 %466 }
 0x250   :  { %v471_v1 = vpop.permute.xlu1 %470 }
 0x278   :  { %v526_v61 = vpop.trf.xlu0 }
 0x279   :  { %11443 = vmatprep.subr.mxu0 %v526_v61 }
 0x27a   :  { %11444 = vmatpush3.msra.mxu0 %v526_v61 }
 0x27b   :  { %11446 = vmatmul.mubr.msk.f32.vlgmr.msra.gmra.mrb[2].mxu0 %vm638_vm2, %v457_v47 }
 0x27c   :  { %11450 = vmatprep.mubr.msk.f32.mxu0 %vm638_vm2, %v461_v58 }
 0x2b9   :  { %v558_v2 = vpop.trf.xlu1 }
 0x2ba   :  { %11448 = vmatprep.subr.mxu0 %v558_v2 }
 0x2bb   :  { %11449 = vmatpush3.msra.mxu0 %v558_v2 }
 0x2bc   :  { %11451 = vmatmul.mubr.msk.f32.vlgmr.msra.gmra.mrb[4].mxu0 %vm638_vm2, %v463_v62 }
 0x2bd   :  { %v590_v3 = vpop.trf.xlu0  ;;  %11455 = vmatprep.mubr.msk.f32.mxu0 %vm638_vm2, %v465_v59 }
 0x2be   :  { %11453 = vmatprep.subr.mxu0 %v590_v3 }
 0x2bf   :  { %11454 = vmatpush3.msra.mxu0 %v590_v3 }
 0x2c0   :  { %11456 = vmatmul.mubr.msk.f32.vlgmr.msra.gmra.mrb[6].mxu0 %vm638_vm2, %v467_v63 }
 0x2c1   :  { %11460 = vmatprep.mubr.msk.f32.mxu0 %vm638_vm2, %v469_v60 }
 0x2c5   :  { %v622_v5 = vpop.trf.xlu0 }
 0x2c6   :  { %11458 = vmatprep.subr.mxu0 %v622_v5 }
 0x2c7   :  { %11459 = vmatpush3.msra.mxu0 %v622_v5 }
 0x2c8   :  { %11461 = vmatmul.mubr.msk.f32.vlgmr.msra.gmra.mrb[8].mxu0 %vm638_vm2, %v471_v1 }
 0x34e   :  { %v11447_v10 = vpop.f32.mrb[2].mxu0 }
 0x34f   :  { %v715_v11 = vadd.f32 %v11447_v10, %v13044_v8  ;;  %v709_v12 = vpop.f32.mrb[3].mxu0 }
 0x350   :  { %v710_v13 = vadd.f32 %v709_v12, %v13046_v9 }
 0x351   :  { %v959_v14 = vsel %vm955_vm3, %v715_v11, -inf }
 0x352   :  { %960 = vmax.xlane.f32.xlu0 %v959_v14  ;;  %v956_v15 = vsel %vm955_vm3, %v710_v13, -inf }
 0x353   :  { %957 = vmax.xlane.f32.xlu1 %v956_v15 }
 0x38f   :  { %v11452_v17 = vpop.f32.mrb[4].mxu0 }
 0x390   :  { %v794_v18 = vadd.f32 %v11452_v17, %v13044_v8  ;;  %v788_v19 = vpop.f32.mrb[5].mxu0 }
 0x391   :  { %v789_v20 = vadd.f32 %v788_v19, %v13046_v9 }
 0x392   :  { %v965_v21 = vsel %vm955_vm3, %v794_v18, -inf }
 0x393   :  { %v11457_v23 = vpop.f32.mrb[6].mxu0  ;;  %966 = vmax.xlane.f32.xlu1 %v965_v21  ;;  %v962_v29 = vsel %vm955_vm3, %v789_v20, -inf }
 0x394   :  { %v873_v24 = vadd.f32 %v11457_v23, %v13044_v8  ;;  %v867_v25 = vpop.f32.mrb[7].mxu0 }
 0x395   :  { %v868_v26 = vadd.f32 %v867_v25, %v13046_v9 }
 0x396   :  { %v971_v27 = vsel %vm955_vm3, %v873_v24, -inf }
 0x397   :  { %972 = vmax.xlane.f32.xlu0 %v971_v27  ;;  %963 = vmax.xlane.f32.xlu1 %v962_v29  ;;  %v968_v30 = vsel %vm955_vm3, %v868_v26, -inf  ;;  %v12795_v27 = vmov 0.0  }
 0x398   :  { %11467 = vmatprep.mubr.msk.f32.mxu0 %vm12794_vm4, %v12795_v27  ;;  %11474 = vmatprep.mubr.msk.f32.mxu1 %vm12794_vm4, %v12795_v27 }
 0x39b   :  { %v11462_v33 = vpop.f32.mrb[8].mxu0  ;;  %969 = vmax.xlane.f32.xlu1 %v968_v30 }
 0x39c   :  { %v952_v34 = vadd.f32 %v11462_v33, %v13044_v8  ;;  %v946_v35 = vpop.f32.mrb[9].mxu0 }
 0x39d   :  { %v947_v36 = vadd.f32 %v946_v35, %v13046_v9 }
 0x39e   :  { %v977_v37 = vsel %vm955_vm3, %v952_v34, -inf }
 0x39f   :  { %978 = vmax.xlane.f32.xlu0 %v977_v37  ;;  %v974_v39 = vsel %vm955_vm3, %v947_v36, -inf }
 0x3a0   :  { %975 = vmax.xlane.f32.xlu1 %v974_v39 }
 0x3b1   :  { %1044 = vrot.lane.b32.xlu1 %v12980_v38, %s12792_s14 }
 0x3b5   :  { %1048 = vrot.lane.b32.xlu0 %v13004_v42, %s12792_s14  ;;  %1046 = vrot.lane.b32.xlu1 %v12987_v40, %s12792_s14 }
 0x3b9   :  { %1052 = vrot.lane.b32.xlu0 %v13002_v41, %s12792_s14  ;;  %1050 = vrot.lane.b32.xlu1 %v13008_v43, %s12792_s14 }
 0x3bd   :  { %1056 = vrot.lane.b32.xlu1 %v13016_v45, %s12792_s14 }
 0x3c1   :  { %1054 = vrot.lane.b32.xlu1 %v13014_v44, %s12792_s14  ;;  %v12793_v44 = vmov 0.0|0.0  }
 0x3c2   :  { %12026 = vmatprep.subr.bf16.mxu0 %v12793_v44  ;;  %12030 = vmatprep.subr.bf16.mxu1 %v12793_v44 }
 0x3df   :  { %v961_v47 = vpop.xlane.xlu0 %960 }
 0x3e0   :  { %v981_v38 = vsub.f32 %v715_v11, %v961_v47  ;;  %v958_v48 = vpop.xlane.xlu1 %957 }
 0x3e1   :  { %v980_v49 = vsub.f32 %v710_v13, %v958_v48 }
 0x3e2   :  { %v990_v42 = vmul.f32 1.442695, %v981_v38 }
 0x3e3   :  { %v988_v50 = vmul.f32 1.442695, %v980_v49 }
 0x3e4   :  { %12417 = vpow2.f32 %v990_v42 }
 0x3e5   :  { %12419 = vpow2.f32 %v988_v50 }
 0x3ee   :  { %v13078_v40 = vpop.eup %12417 }
 0x3ef   :  { %v13080_v41 = vpop.eup %12419  ;;  %v1007_v43 = vsel %vm955_vm3, %v13078_v40, 0.0 }
 0x3f0   :  { %1008 = vadd.xlane.f32.xlu0 %v1007_v43  ;;  %v1004_v45 = vsel %vm955_vm3, %v13080_v41, 0.0 }
 0x3f1   :  { %1005 = vadd.xlane.f32.xlu1 %v1004_v45 }
 0x420   :  { %v967_v51 = vpop.xlane.xlu1 %966 }
 0x421   :  { %v983_v52 = vsub.f32 %v794_v18, %v967_v51 }
 0x423   :  { %v994_v53 = vmul.f32 1.442695, %v983_v52 }
 0x424   :  { %v973_v54 = vpop.xlane.xlu0 %972  ;;  %v964_v55 = vpop.xlane.xlu1 %963 }
 0x425   :  { %12421 = vpow2.f32 %v994_v53  ;;  %v985_v58 = vsub.f32 %v873_v24, %v973_v54  ;;  %v982_v59 = vsub.f32 %v789_v20, %v964_v55 }
 0x427   :  { %v992_v60 = vmul.f32 1.442695, %v982_v59  ;;  %v998_v61 = vmul.f32 1.442695, %v985_v58 }
 0x428   :  { %v970_v62 = vpop.xlane.xlu1 %969 }
 0x429   :  { %v984_v63 = vsub.f32 %v868_v26, %v970_v62  ;;  %12423 = vpow2.f32 %v992_v60 }
 0x42a   :  { %12425 = vpow2.f32 %v998_v61 }
 0x42b   :  { %v996_v1 = vmul.f32 1.442695, %v984_v63 }
 0x42c   :  { %v979_v2 = vpop.xlane.xlu0 %978 }
 0x42d   :  { %12427 = vpow2.f32 %v996_v1  ;;  %v987_v3 = vsub.f32 %v952_v34, %v979_v2  ;;  %v976_v5 = vpop.xlane.xlu1 %975 }
 0x42e   :  { %v986_v10 = vsub.f32 %v947_v36, %v976_v5 }
 0x42f   :  { %v12422_v11 = vpop.eup %12421  ;;  %v1002_v12 = vmul.f32 1.442695, %v987_v3 }
 0x430   :  { %v1000_v13 = vmul.f32 1.442695, %v986_v10  ;;  %v1013_v14 = vsel %vm955_vm3, %v12422_v11, 0.0  ;;  %v1049_v34 = vpop.permute.xlu0 %1048 }
 0x431   :  { %12429 = vpow2.f32 %v1002_v12  ;;  %1014 = vadd.xlane.f32.xlu0 %v1013_v14  ;;  %v1045_v29 = vpop.permute.xlu1 %1044 }
 0x432   :  { %12431 = vpow2.f32 %v1000_v13 }
 0x433   :  { %v12424_v15 = vpop.eup %12423 }
 0x434   :  { %v1010_v17 = vsel %vm955_vm3, %v12424_v15, 0.0  ;;  %v13090_v18 = vpop.eup %12425  ;;  %v1053_v36 = vpop.permute.xlu0 %1052 }
 0x435   :  { %1011 = vadd.xlane.f32.xlu1 %v1010_v17  ;;  %v1019_v21 = vsel %vm955_vm3, %v13090_v18, 0.0  ;;  %v1047_v30 = vpop.permute.xlu1 %1046 }
 0x437   :  { %v13092_v19 = vpop.eup %12427 }
 0x438   :  { %v1016_v20 = vsel %vm955_vm3, %v13092_v19, 0.0 }
 0x439   :  { %1017 = vadd.xlane.f32.xlu0 %v1016_v20  ;;  %1020 = vadd.xlane.f32.xlu1 %v1019_v21  ;;  %v1051_v33 = vpop.permute.xlu1 %1050 }
 0x43b   :  { %v13098_v23 = vpop.eup %12429 }
 0x43c   :  { %v1025_v24 = vsel %vm955_vm3, %v13098_v23, 0.0  ;;  %v13102_v25 = vpop.eup %12431 }
 0x43d   :  { %1026 = vadd.xlane.f32.xlu0 %v1025_v24  ;;  %v1022_v26 = vsel %vm955_vm3, %v13102_v25, 0.0  ;;  %v1057_v35 = vpop.permute.xlu1 %1056 }
 0x441   :  { %1023 = vadd.xlane.f32.xlu0 %v1022_v26 }
 0x457   :  { %1058 = vrot.lane.b32.xlu0 %v13022_v46, %s12792_s14  ;;  %v1055_v46 = vpop.permute.xlu1 %1054 }
 0x46c   :  { %1068 = vxpose.xlu1.b32.start [1/2] (short) (narrow) %v1045_v29, 8  ;;  %v85_v29 = vld [vmem:[#allocation7 + $0x60] sm:$0xff] }
 0x470   :  { %1069 = vxpose.xlu1.b32.end [2/2] (short) (narrow) %v1047_v30, 8  ;;  %v86_v30 = vld [vmem:[#allocation7 + $0x68] sm:$0xff] }
 0x474   :  { %1164 = vxpose.xlu1.b32.start [1/2] (short) (narrow) %v1057_v35, 8 }
 0x475   :  { %1100 = vxpose.xlu0.b32.start [1/2] (short) (narrow) %v1049_v34, 8 }
 0x479   :  { %1101 = vxpose.xlu0.b32.end [2/2] (short) (narrow) %v1051_v33, 8  ;;  %v13142_v33 = vpack.c.bf16 %v86_v30, %v85_v29 }
 0x47d   :  { %v1009_v37 = vpop.xlane.xlu0 %1008  ;;  %1132 = vxpose.xlu0.b32.start [1/2] (short) (narrow) %v1053_v36, 8 }
 0x47e   :  { %12433 = vrcp.f32 %v1009_v37  ;;  %v1006_v39 = vpop.xlane.xlu1 %1005 }
 0x47f   :  { %12435 = vrcp.f32 %v1006_v39  ;;  %v1645_v39 = vlaneseq }
 0x481   :  { %1133 = vxpose.xlu0.b32.end [2/2] (short) (narrow) %v1055_v46, 8  ;;  %v12796_v46 = vmov 1983009808  }
 0x482   :  { %v1643_v37 = vunpack.c.l.s4 %v12796_v46 }
 0x488   :  { %v12434_v47 = vpop.eup %12433 }
 0x489   :  { %v12436_v38 = vpop.eup %12435  ;;  %v1031_v48 = vmul.f32 %v12434_v47, %v13078_v40 }
 0x48a   :  { %v1029_v49 = vmul.f32 %v12436_v38, %v13080_v41  ;;  %v12797_v38 = vmov 1934713408  }
 0x48c   :  { %v12027_v50 = vpack.c.bf16 %v1031_v48, %v1029_v49  ;;  %v1675_v48 = vunpack.c.l.s4 %v12797_v38  ;;  %v1644_v49 = vunpack.c.0.s8 %v1643_v37 }
 0x48e   :  { %12029 = vmatpush3.bf16.xpose.msk.msra.mxu0 %vm13116_vm5, %v12027_v50  ;;  %v1646_v50 = vshrl.u32 %v1645_v39, 7 }
 0x48f   :  { %12034 = vmatprep.subr.bf16.mxu0 %v12793_v44 }
 0x4be   :  { %v1015_v43 = vpop.xlane.xlu0 %1014 }
 0x4bf   :  { %12437 = vrcp.f32 %v1015_v43 }
 0x4c2   :  { %v1012_v45 = vpop.xlane.xlu1 %1011 }
 0x4c3   :  { %12439 = vrcp.f32 %v1012_v45  ;;  %v1676_v45 = vunpack.c.0.s8 %v1675_v48 }
 0x4c6   :  { %v1018_v51 = vpop.xlane.xlu0 %1017  ;;  %v1021_v60 = vpop.xlane.xlu1 %1020 }
 0x4c7   :  { %12441 = vrcp.f32 %v1018_v51  ;;  %v13150_v51 = vsub.s32 %v1644_v49, %v1646_v50 }
 0x4c8   :  { %12443 = vrcp.f32 %v1021_v60 }
 0x4c9   :  { %v12438_v52 = vpop.eup %12437 }
 0x4ca   :  { %v1027_v40 = vpop.xlane.xlu0 %1026  ;;  %v1035_v54 = vmul.f32 %v12438_v52, %v12422_v11 }
 0x4cd   :  { %v12440_v41 = vpop.eup %12439 }
 0x4ce   :  { %v1024_v53 = vpop.xlane.xlu0 %1023  ;;  %v1033_v55 = vmul.f32 %v12440_v41, %v12424_v15 }
 0x4cf   :  { %12445 = vrcp.f32 %v1024_v53 }
 0x4d0   :  { %v12031_v58 = vpack.c.bf16 %v1035_v54, %v1033_v55  ;;  %12447 = vrcp.f32 %v1027_v40 }
 0x4d1   :  { %v12442_v61 = vpop.eup %12441 }
 0x4d2   :  { %v1059_v59 = vpop.permute.xlu0 %1058  ;;  %12033 = vmatpush3.bf16.xpose.msk.msra.mxu1 %vm13116_vm5, %v12031_v58  ;;  %v12444_v62 = vpop.eup %12443  ;;  %v1037_v63 = vmul.f32 %v12442_v61, %v13092_v19  ;;  %v13152_v58 = vsub.s32 %v1676_v45, %v1646_v50 }
 0x4d3   :  { %1165 = vxpose.xlu1.b32.end [2/2] (short) (narrow) %v1059_v59, 8  ;;  %12038 = vmatprep.subr.bf16.mxu1 %v12793_v44  ;;  %v1039_v1 = vmul.f32 %v12444_v62, %v13090_v18 }
 0x4d5   :  { %v12035_v3 = vpack.c.bf16 %v1039_v1, %v1037_v63 }
 0x4d9   :  { %v12446_v5 = vpop.eup %12445 }
 0x4da   :  { %v12448_v10 = vpop.eup %12447  ;;  %v1041_v11 = vmul.f32 %v12446_v5, %v13102_v25 }
 0x4db   :  { %v1043_v12 = vmul.f32 %v12448_v10, %v13098_v23 }
 0x4dd   :  { %v12039_v14 = vpack.c.bf16 %v1043_v12, %v1041_v11 }
 0x4ec   :  { %v1084_v2 = vpop.trf.xlu1 }
 0x4ed   :  { %11468 = vmatmul.mubr.msk.f32.vlgmr.msra.gmra.mrb[10].mxu0 %vm955_vm3, %v1084_v2 }
 0x4ee   :  { %12037 = vmatpush3.bf16.xpose.msk.msra.mxu0 %vm13116_vm5, %v12035_v3  ;;  %11481 = vmatprep.mubr.msk.f32.mxu0 %vm12794_vm4, %v12795_v27 }
 0x4ef   :  { %12044 = vmatprep.subr.msk.bf16.mxu0 %vm12902_vm1, %v13142_v33 }
 0x4f5   :  { %v1116_v13 = vpop.trf.xlu0 }
 0x4f6   :  { %11475 = vmatmul.mubr.msk.f32.vlgmr.msra.gmra.mrb[2].mxu1 %vm955_vm3, %v1116_v13 }
 0x4f7   :  { %12041 = vmatpush3.bf16.xpose.msk.msra.mxu1 %vm13116_vm5, %v12039_v14  ;;  %11488 = vmatprep.mubr.msk.f32.mxu1 %vm12794_vm4, %v12795_v27 }
 0x4fd   :  { %v1148_v15 = vpop.trf.xlu0 }
 0x4fe   :  { %11482 = vmatmul.mubr.msk.f32.vlgmr.msra.gmra.mrb[12].mxu0 %vm955_vm3, %v1148_v15 }
 0x4ff   :  { %12047 = vmatpush3.bf16.xpose.msk.msra.mxu0 %vm12902_vm1, %v13142_v33 }
 0x54f   :  { %v1180_v17 = vpop.trf.xlu1 }
 0x550   :  { %11489 = vmatmul.mubr.msk.f32.vlgmr.msra.gmra.mrb[4].mxu1 %vm955_vm3, %v1180_v17 }
 0x5c0   :  { %v1271_v18 = vpop.f32.mrb[10].mxu0 }
 0x5c1   :  { %1512 = vxpose.xlu0.b32.start.end [1/1] (short) (narrow) %v1271_v18, 16  ;;  %v11469_v19 = vpop.f32.mrb[11].mxu0 }
 0x5c9   :  { %v1350_v20 = vpop.f32.mrb[2].mxu1 }
 0x5ca   :  { %v11476_v21 = vpop.f32.mrb[3].mxu1  ;;  %1544 = vxpose.xlu1.b32.start.end [1/1] (short) (narrow) %v1350_v20, 16 }
 0x5d1   :  { %v1429_v23 = vpop.f32.mrb[12].mxu0 }
 0x5d2   :  { %1576 = vxpose.xlu0.b32.start.end [1/1] (short) (narrow) %v1429_v23, 16  ;;  %v11483_v24 = vpop.f32.mrb[13].mxu0 }
 0x623   :  { %v1508_v25 = vpop.f32.mrb[4].mxu1 }
 0x624   :  { %1608 = vxpose.xlu1.b32.start.end [1/1] (short) (narrow) %v1508_v25, 16  ;;  %v11490_v26 = vpop.f32.mrb[5].mxu1 }
 0x641   :  { %v1528_v34 = vpop.trf.xlu0 }
 0x645   :  { %v1529_v36 = vpop.trf.xlu0 }
 0x64a   :  { %v1560_v35 = vpop.trf.xlu1 }
 0x64e   :  { %v1561_v47 = vpop.trf.xlu1 }
 0x652   :  { %v1592_v43 = vpop.trf.xlu0 }
 0x653   :  { %v1640_v40 = vcombine.low %v1528_v34, %v1592_v43  ;;  %v1641_v52 = vcombine.high %v1528_v34, %v1592_v43 }
 0x655   :  { %v1648_v59 = vrot.slane %v1640_v40, %v13150_v51  ;;  %v1655_v60 = vrot.slane %v1641_v52, %v13150_v51 }
 0x656   :  { %v1593_v53 = vpop.trf.xlu0 }
 0x657   :  { %v1708_v63 = vcombine.low %v1529_v36, %v1593_v53  ;;  %v1709_v1 = vcombine.high %v1529_v36, %v1593_v53 }
 0x659   :  { %v1716_v19 = vrot.slane %v1708_v63, %v13150_v51  ;;  %v1723_v20 = vrot.slane %v1709_v1, %v13150_v51 }
 0x6a4   :  { %v1624_v41 = vpop.trf.xlu1 }
 0x6a5   :  { %v1656_v54 = vcombine.low %v1560_v35, %v1624_v41  ;;  %v1657_v55 = vcombine.high %v1560_v35, %v1624_v41 }
 0x6a7   :  { %v1664_v61 = vrot.slane %v1656_v54, %v13150_v51  ;;  %v1671_v62 = vrot.slane %v1657_v55, %v13150_v51 }
 0x6a8   :  { %v1625_v2 = vpop.trf.xlu1 }
 0x6a9   :  { %v1672_v3 = vcombine.low %v1648_v59, %v1664_v61  ;;  %v1673_v5 = vcombine.high %v1648_v59, %v1664_v61  ;;  %v1688_v10 = vcombine.low %v1655_v60, %v1671_v62  ;;  %v1689_v11 = vcombine.high %v1655_v60, %v1671_v62 }
 0x6aa   :  { %v1724_v12 = vcombine.low %v1561_v47, %v1625_v2  ;;  %v1725_v13 = vcombine.high %v1561_v47, %v1625_v2 }
 0x6ab   :  { %v1680_v14 = vrot.slane %v1672_v3, %v13152_v58  ;;  %v1687_v15 = vrot.slane %v1673_v5, %v13152_v58  ;;  %v1696_v17 = vrot.slane %v1688_v10, %v13152_v58  ;;  %v1703_v18 = vrot.slane %v1689_v11, %v13152_v58  ;;  %v87_v5 = vld [vmem:[#allocation7 + $0x70] sm:$0xff]  ;;  %v88_v10 = vld [vmem:[#allocation7 + $0x78] sm:$0xff] }
 0x6ac   :  { %v1732_v21 = vrot.slane %v1724_v12, %v13150_v51  ;;  %v1739_v23 = vrot.slane %v1725_v13, %v13150_v51 }
 0x6ad   :  { %v1776_v24 = vcombine.low %v1680_v14, %v1687_v15  ;;  %v10853_v25 = vcombine.high %v1680_v14, %v1687_v15  ;;  %v1792_v26 = vcombine.low %v1696_v17, %v1703_v18  ;;  %v10854_v29 = vcombine.high %v1696_v17, %v1703_v18 }
 0x6ae   :  { %v1740_v30 = vcombine.low %v1716_v19, %v1732_v21  ;;  %v1741_v34 = vcombine.high %v1716_v19, %v1732_v21  ;;  %v1756_v35 = vcombine.low %v1723_v20, %v1739_v23  ;;  %v1757_v36 = vcombine.high %v1723_v20, %v1739_v23 }
 0x6af   :  { %v1783_v46 = vrot.slane %v1776_v24, %v13150_v51  ;;  %v1791_v37 = vrot.slane %v10853_v25, %v13150_v51  ;;  %v1799_v39 = vrot.slane %v1792_v26, %v13150_v51  ;;  %v1807_v47 = vrot.slane %v10854_v29, %v13150_v51 }
 0x6b0   :  { %v1748_v38 = vrot.slane %v1740_v30, %v13152_v58  ;;  %v1755_v48 = vrot.slane %v1741_v34, %v13152_v58  ;;  %v1764_v49 = vrot.slane %v1756_v35, %v13152_v58  ;;  %v1771_v50 = vrot.slane %v1757_v36, %v13152_v58 }
 0x6b1   :  { %v1809_v43 = vcombine.high %v1783_v46, %v1791_v37  ;;  %v1825_v45 = vcombine.high %v1799_v39, %v1807_v47  ;;  %v1808_v40 = vcombine.low %v1783_v46, %v1791_v37  ;;  %v1824_v52 = vcombine.low %v1799_v39, %v1807_v47 }
 0x6b2   :  { %v1844_v41 = vcombine.low %v1748_v38, %v1755_v48  ;;  %v10855_v53 = vcombine.high %v1748_v38, %v1755_v48  ;;  %v1860_v54 = vcombine.low %v1764_v49, %v1771_v50  ;;  %v10856_v55 = vcombine.high %v1764_v49, %v1771_v50 }
 0x6b3   :  { %v1823_v59 = vrot.slane %v1809_v43, %v13152_v58  ;;  %v1839_v60 = vrot.slane %v1825_v45, %v13152_v58  ;;  %v1816_v61 = vrot.slane %v1808_v40, %v13152_v58  ;;  %v1832_v62 = vrot.slane %v1824_v52, %v13152_v58  ;;  %v10792_v40 = vld [vmem:[#allocation8 + $0x31] ss:$0 sm:$0xff] }
 0x6b4   :  { %v1851_v63 = vrot.slane %v1844_v41, %v13150_v51  ;;  %v1859_v1 = vrot.slane %v10855_v53, %v13150_v51  ;;  %v1867_v2 = vrot.slane %v1860_v54, %v13150_v51  ;;  %v1875_v3 = vrot.slane %v10856_v55, %v13150_v51 }
 0x6b5   :  { %v1842_v11 = vcombine.low %v1823_v59, %v1839_v60  ;;  %v1841_v12 = vcombine.high %v1816_v61, %v1832_v62  ;;  %v1840_v13 = vcombine.low %v1816_v61, %v1832_v62  ;;  %v13184_v19 = vpack.c.bf16 %v88_v10, %v87_v5  ;;  %v89_v62 = vld [vmem:[#allocation7 + $0x80] sm:$0xff] }
 0x6b6   :  { %v1876_v14 = vcombine.low %v1851_v63, %v1859_v1  ;;  %v1892_v15 = vcombine.low %v1867_v2, %v1875_v3  ;;  %v1877_v17 = vcombine.high %v1851_v63, %v1859_v1  ;;  %v1893_v18 = vcombine.high %v1867_v2, %v1875_v3  ;;  %v90_v63 = vld [vmem:[#allocation7 + $0x88] sm:$0xff] }
 0x6b7   :  { %1922 = vrot.lane.b32.xlu1 %v1842_v11, %s12798_s15  ;;  %1914 = vrot.lane.b32.xlu0 %v1841_v12, %s12785_s28  ;;  %v1843_v23 = vcombine.high %v1823_v59, %v1839_v60  ;;  %v13212_v1 = vpack.c.bf16 %v90_v63, %v89_v62 }
 0x6b8   :  { %v1884_v20 = vrot.slane %v1876_v14, %v13152_v58  ;;  %v1900_v21 = vrot.slane %v1892_v15, %v13152_v58  ;;  %12050 = vmatprep.subr.msk.bf16.mxu0 %vm12902_vm1, %v13184_v19  ;;  %v1891_v26 = vrot.slane %v1877_v17, %v13152_v58  ;;  %v1907_v29 = vrot.slane %v1893_v18, %v13152_v58  ;;  %v91_v15 = vld [vmem:[#allocation7 + $0x90] sm:$0xff]  ;;  %v92_v17 = vld [vmem:[#allocation7 + $0x98] sm:$0xff] }
 0x6b9   :  { %12053 = vmatpush3.bf16.xpose.msk.msra.mxu0 %vm12902_vm1, %v13184_v19  ;;  %12056 = vmatprep.subr.msk.bf16.mxu1 %vm12902_vm1, %v13212_v1  ;;  %v13222_v18 = vpack.c.bf16 %v92_v17, %v91_v15 }
 0x6ba   :  { %v1909_v24 = vcombine.high %v1884_v20, %v1900_v21  ;;  %v1908_v25 = vcombine.low %v1884_v20, %v1900_v21  ;;  %v1910_v30 = vcombine.low %v1891_v26, %v1907_v29  ;;  %v1911_v34 = vcombine.high %v1891_v26, %v1907_v29  ;;  %12059 = vmatpush3.bf16.xpose.msk.msra.mxu1 %vm12902_vm1, %v13212_v1  ;;  %v97_v20 = vld [vmem:[#allocation7 + $0xc0] sm:$0xff]  ;;  %v98_v21 = vld [vmem:[#allocation7 + $0xc8] sm:$0xff]  ;;  %v99_v29 = vld [vmem:[#allocation7 + $0xd0] sm:$0xff] }
 0x6bb   :  { %1930 = vrot.lane.b32.xlu0 %v1843_v23, %s12799_s16  ;;  %12062 = vmatprep.subr.msk.bf16.mxu1 %vm12902_vm1, %v13222_v18  ;;  %v13230_v23 = vpack.c.bf16 %v98_v21, %v97_v20 }
 0x6bc   :  { %1916 = vrot.lane.b32.xlu1 %v1909_v24, %s12785_s28  ;;  %v93_v24 = vld [vmem:[#allocation7 + $0xa0] sm:$0xff] }
 0x6bd   :  { %12080 = vmatprep.subr.msk.bf16.mxu0 %vm12902_vm1, %v13230_v23 }
 0x6c0   :  { %1924 = vrot.lane.b32.xlu1 %v1910_v30, %s12798_s15  ;;  %v100_v30 = vld [vmem:[#allocation7 + $0xd8] sm:$0xff] }
 0x6c2   :  { %12065 = vmatpush3.bf16.xpose.msk.msra.mxu1 %vm12902_vm1, %v13222_v18 }
 0x6c4   :  { %1932 = vrot.lane.b32.xlu1 %v1911_v34, %s12799_s16  ;;  %v13246_v34 = vpack.c.bf16 %v100_v30, %v99_v29 }
 0x729   :  { %v1915_v35 = vpop.permute.xlu0 %1914  ;;  %v1923_v36 = vpop.permute.xlu1 %1922 }
 0x72a   :  { %v1936_v46 = vsel %vm638_vm2, %v1840_v13, %v1915_v35  ;;  %v95_v35 = vld [vmem:[#allocation7 + $0xb0] sm:$0xff] }
 0x72b   :  { %v1938_v37 = vsel %vm955_vm3, %v1936_v46, %v1923_v36  ;;  %v96_v36 = vld [vmem:[#allocation7 + $0xb8] sm:$0xff] }
 0x72c   :  { %v13251_v46 = vpack.c.bf16 %v96_v36, %v95_v35 }
 0x72d   :  { %v1931_v39 = vpop.permute.xlu0 %1930 }
 0x72e   :  { %v1941_v47 = vsel %vm1940_vm6, %v1938_v37, %v1931_v39  ;;  %v1917_v38 = vpop.permute.xlu1 %1916 }
 0x72f   :  { %11499 = vmatprep.mubr.msk.f32.mxu0 %vm233_vm0, %v1941_v47  ;;  %v1937_v49 = vsel %vm638_vm2, %v1908_v25, %v1917_v38  ;;  %v94_v25 = vld [vmem:[#allocation7 + $0xa8] sm:$0xff] }
 0x730   :  { %v13235_v26 = vpack.c.bf16 %v94_v25, %v93_v24 }
 0x732   :  { %v1925_v48 = vpop.permute.xlu1 %1924  ;;  %12068 = vmatprep.subr.msk.bf16.mxu1 %vm12902_vm1, %v13235_v26 }
 0x733   :  { %v1939_v50 = vsel %vm955_vm3, %v1937_v49, %v1925_v48  ;;  %12071 = vmatpush3.bf16.xpose.msk.msra.mxu1 %vm12902_vm1, %v13235_v26 }
 0x734   :  { %12074 = vmatprep.subr.msk.bf16.mxu1 %vm12902_vm1, %v13251_v46 }
 0x736   :  { %v1933_v43 = vpop.permute.xlu1 %1932 }
 0x737   :  { %v1942_v45 = vsel %vm1940_vm6, %v1939_v50, %v1933_v43  ;;  %v10801_v43 = vld [vmem:[#allocation8 + $0x3a] ss:$0 sm:$0xff] }
 0x738   :  { %11500 = vmatmul.mubr.msk.f32.vlgmr.msra.gmra.mrb[14].mxu0 %vm233_vm0, %v1942_v45 }
 0x739   :  { %12083 = vmatpush3.bf16.xpose.msk.msra.mxu0 %vm12902_vm1, %v13230_v23 }
 0x73a   :  { %12086 = vmatprep.subr.msk.bf16.mxu0 %vm12902_vm1, %v13246_v34 }
 0x73b   :  { %12077 = vmatpush3.bf16.xpose.msk.msra.mxu1 %vm12902_vm1, %v13251_v46 }
 0x741   :  { %12089 = vmatpush3.bf16.xpose.msk.msra.mxu0 %vm12902_vm1, %v13246_v34 }
 0x80b   :  { %v11501_v52 = vpop.f32.mrb[14].mxu0 }
 0x80c   :  { %v2033_v41 = vadd.f32 %v11501_v52, %v10792_v40  ;;  %v2027_v53 = vpop.f32.mrb[15].mxu0 }
 0x80d   :  { %v2028_v54 = vadd.f32 %v10792_v40, %v2027_v53  ;;  %v10802_v40 = vld [vmem:[#allocation8 + $0x3b] ss:$0 sm:$0xff]  ;;  %v223_v53 = vld [vmem:[#allocation8] sm:$0xff] }
 0x80e   :  { %v2037_v55 = vadd.f32 %v2033_v41, %v12974_v32 }
 0x80f   :  { %v2036_v59 = vadd.f32 %v2028_v54, %v12916_v7 }
 0x810   :  { %v2041_v60 = vsel %vm233_vm0, %v2037_v55, 0.0 }
 0x811   :  { %2042 = vadd.xlane.f32.xlu1 %v2041_v60  ;;  %v2038_v61 = vsel %vm233_vm0, %v2036_v59, 0.0 }
 0x812   :  { %2039 = vadd.xlane.f32.xlu0 %v2038_v61  ;;  %v224_v61 = vld [vmem:[#allocation8 + $0x8] sm:$0xff] }
 0x89e   :  { %v2043_v32 = vpop.xlane.xlu1 %2042 }
 0x89f   :  { %v2046_v7 = vmul.f32 0.03125, %v2043_v32  ;;  %v2040_v2 = vpop.xlane.xlu0 %2039 }
 0x8a0   :  { %v2045_v3 = vmul.f32 0.03125, %v2040_v2 }
 0x8a1   :  { %v2048_v5 = vsub.f32 %v2037_v55, %v2046_v7  ;;  %v10793_v7 = vld [vmem:[#allocation8 + $0x32] ss:$0 sm:$0xff] }
 0x8a2   :  { %v2047_v10 = vsub.f32 %v2036_v59, %v2045_v3 }
 0x8a3   :  { %v2050_v13 = vmul.f32 %v2048_v5, %v2048_v5 }
 0x8a4   :  { %v2049_v11 = vmul.f32 %v2047_v10, %v2047_v10 }
 0x8a5   :  { %v2054_v14 = vsel %vm233_vm0, %v2050_v13, 0.0 }
 0x8a6   :  { %v2051_v12 = vsel %vm233_vm0, %v2049_v11, 0.0 }
 0x8a7   :  { %2052 = vadd.xlane.f32.xlu0 %v2051_v12 }
 0x8ab   :  { %2055 = vadd.xlane.f32.xlu0 %v2054_v14 }
 0x934   :  { %v2053_v37 = vpop.xlane.xlu0 %2052 }
 0x935   :  { %v2057_v39 = vmul.f32 0.03125, %v2053_v37 }
 0x937   :  { %v2059_v47 = vadd.f32 1e-05, %v2057_v39 }
 0x938   :  { %v2056_v38 = vpop.xlane.xlu0 %2055 }
 0x939   :  { %12449 = vrsqrt.f32 %v2059_v47  ;;  %v2058_v48 = vmul.f32 0.03125, %v2056_v38 }
 0x93b   :  { %v2060_v49 = vadd.f32 1e-05, %v2058_v48 }
 0x93d   :  { %12451 = vrsqrt.f32 %v2060_v49 }
 0x943   :  { %v12450_v50 = vpop.eup %12449 }
 0x944   :  { %v2063_v45 = vmul.f32 %v12450_v50, %v2047_v10 }
 0x946   :  { %v2065_v52 = vmul.f32 %v10801_v43, %v2063_v45 }
 0x947   :  { %v12452_v41 = vpop.eup %12451 }
 0x948   :  { %v2064_v54 = vmul.f32 %v12452_v41, %v2048_v5  ;;  %v13262_v55 = vadd.f32 %v10802_v40, %v2065_v52 }
 0x94a   :  { %11529 = vmatprep.mubr.msk.f32.mxu0 %vm233_vm0, %v13262_v55  ;;  %v2069_v59 = vadd.f32 %v13262_v55, %v223_v53  ;;  %v2066_v60 = vmul.f32 %v10801_v43, %v2064_v54 }
 0x94c   :  { %11518 = vmatprep.mubr.msk.f32.mxu1 %vm233_vm0, %v2069_v59  ;;  %v13268_v62 = vadd.f32 %v10802_v40, %v2066_v60 }
 0x94e   :  { %11530 = vmatmul.mubr.msk.f32.vlgmr.msra.gmra.mrb[16].mxu0 %vm233_vm0, %v13268_v62  ;;  %v2070_v63 = vadd.f32 %v13268_v62, %v224_v61 }
 0x950   :  { %11519 = vmatmul.mubr.msk.f32.vlgmr.msra.gmra.mrb[6].mxu1 %vm233_vm0, %v2070_v63 }
 0xa21   :  { %v13274_v32 = vpop.f32.mrb[16].mxu0 }
 0xa22   :  { %v13276_v2 = vpop.f32.mrb[17].mxu0 }
 0xa23   :  { %v11520_v3 = vpop.f32.mrb[6].mxu1 }
 0xa24   :  { %v2173_v5 = vadd.f32 %v11520_v3, %v10793_v7  ;;  %v2167_v10 = vpop.f32.mrb[7].mxu1 }
 0xa25   :  { %v2168_v11 = vadd.f32 %v10793_v7, %v2167_v10 }
 0xa26   :  { %2289 = vrot.lane.b32.xlu0 %v2173_v5, %s12789_s12  ;;  %v2270_v24 = vmul.f32 0.35355338, %v2173_v5 }
 0xa27   :  { %2287 = vrot.lane.b32.xlu1 %v2168_v11, %s12789_s12  ;;  %v2269_v12 = vmul.f32 0.35355338, %v2168_v11 }
 0xa29   :  { %11534 = vmatprep.mubr.msk.f32.mxu0 %vm638_vm2, %v2269_v12 }
 0xa2a   :  { %2293 = vrot.lane.b32.xlu0 %v2173_v5, %s12788_s3 }
 0xa2b   :  { %2291 = vrot.lane.b32.xlu1 %v2168_v11, %s12788_s3 }
 0xa2e   :  { %2321 = vrot.lane.b32.xlu0 %v2173_v5, %s12791_s13 }
 0xa2f   :  { %2295 = vrot.lane.b32.xlu1 %v2168_v11, %s12790_s1 }
 0xa32   :  { %2319 = vrot.lane.b32.xlu0 %v2168_v11, %s12791_s13 }
 0xa33   :  { %2297 = vrot.lane.b32.xlu1 %v2173_v5, %s12790_s1 }
 0xa98   :  { %v2290_v13 = vpop.permute.xlu0 %2289 }
 0xa99   :  { %2325 = vrot.lane.b32.xlu1 %v2290_v13, %s12791_s13  ;;  %v2288_v14 = vpop.permute.xlu1 %2287 }
 0xa9c   :  { %v2294_v15 = vpop.permute.xlu0 %2293 }
 0xa9d   :  { %2329 = vrot.lane.b32.xlu0 %v2294_v15, %s12791_s13  ;;  %v2292_v17 = vpop.permute.xlu1 %2291 }
 0xaa0   :  { %v2322_v25 = vpop.permute.xlu0 %2321 }
 0xaa1   :  { %2327 = vrot.lane.b32.xlu0 %v2292_v17, %s12791_s13  ;;  %v2296_v20 = vpop.permute.xlu1 %2295 }
 0xaa4   :  { %v2320_v29 = vpop.permute.xlu0 %2319 }
 0xaa5   :  { %v2298_v21 = vpop.permute.xlu1 %2297  ;;  %2273 = vrot.lane.b32.xlu0 %v2269_v12, %s12789_s12 }
 0xaa6   :  { %2333 = vrot.lane.b32.xlu1 %v2298_v21, %s12791_s13 }
 0xaa9   :  { %2277 = vrot.lane.b32.xlu0 %v2269_v12, %s12788_s3 }
 0xaaa   :  { %2323 = vrot.lane.b32.xlu1 %v2288_v14, %s12791_s13 }
 0xaad   :  { %2279 = vrot.lane.b32.xlu0 %v2270_v24, %s12788_s3 }
 0xaae   :  { %2275 = vrot.lane.b32.xlu1 %v2270_v24, %s12789_s12 }
 0xab2   :  { %2331 = vrot.lane.b32.xlu1 %v2296_v20, %s12791_s13 }
 0xab6   :  { %2281 = vrot.lane.b32.xlu1 %v2269_v12, %s12790_s1 }
 0xaba   :  { %2283 = vrot.lane.b32.xlu1 %v2270_v24, %s12790_s1 }
 0xacb   :  { %2343 = vxpose.xlu0.b32.start [1/2] (short) (narrow) %v2320_v29, 8 }
 0xacf   :  { %2344 = vxpose.xlu0.b32.end [2/2] (short) (narrow) %v2322_v25, 8 }
 0xb0b   :  { %v2326_v36 = vpop.permute.xlu1 %2325 }
 0xb0f   :  { %v2330_v30 = vpop.permute.xlu0 %2329 }
 0xb13   :  { %v2328_v35 = vpop.permute.xlu0 %2327 }
 0xb14   :  { %2407 = vxpose.xlu0.b32.start [1/2] (short) (narrow) %v2328_v35, 8 }
 0xb17   :  { %v2274_v37 = vpop.permute.xlu0 %2273 }
 0xb18   :  { %v2334_v39 = vpop.permute.xlu1 %2333  ;;  %2408 = vxpose.xlu0.b32.end [2/2] (short) (narrow) %v2330_v30, 8  ;;  %11539 = vmatprep.mubr.msk.f32.mxu1 %vm638_vm2, %v2274_v37 }
 0xb1b   :  { %v2278_v49 = vpop.permute.xlu0 %2277 }
 0xb1c   :  { %v2324_v47 = vpop.permute.xlu1 %2323 }
 0xb1d   :  { %2375 = vxpose.xlu1.b32.start [1/2] (short) (narrow) %v2324_v47, 8 }
 0xb1f   :  { %v2280_v50 = vpop.permute.xlu0 %2279 }
 0xb20   :  { %v2276_v38 = vpop.permute.xlu1 %2275 }
 0xb21   :  { %2376 = vxpose.xlu1.b32.end [2/2] (short) (narrow) %v2326_v36, 8 }
 0xb24   :  { %v2332_v48 = vpop.permute.xlu1 %2331 }
 0xb25   :  { %2439 = vxpose.xlu0.b32.start [1/2] (short) (narrow) %v2332_v48, 8 }
 0xb28   :  { %v2282_v45 = vpop.permute.xlu1 %2281 }
 0xb29   :  { %2440 = vxpose.xlu0.b32.end [2/2] (short) (narrow) %v2334_v39, 8  ;;  %v10794_v39 = vld [vmem:[#allocation8 + $0x33] ss:$0 sm:$0xff] }
 0xb2a   :  { %v13329_v47 = vadd.f32 %v10794_v39, %v13276_v2 }
 0xb2c   :  { %v2284_v52 = vpop.permute.xlu1 %2283 }
 0xb4b   :  { %v2359_v43 = vpop.trf.xlu0 }
 0xb4c   :  { %11532 = vmatprep.subr.mxu0 %v2359_v43 }
 0xb4d   :  { %11533 = vmatpush3.msra.mxu0 %v2359_v43 }
 0xb4e   :  { %11535 = vmatmul.mubr.msk.f32.vlgmr.msra.gmra.mrb[18].mxu0 %vm638_vm2, %v2270_v24 }
 0xb4f   :  { %11544 = vmatprep.mubr.msk.f32.mxu0 %vm638_vm2, %v2278_v49 }
 0xb94   :  { %v2423_v40 = vpop.trf.xlu0 }
 0xb95   :  { %11542 = vmatprep.subr.mxu0 %v2423_v40 }
 0xb96   :  { %11543 = vmatpush3.msra.mxu0 %v2423_v40 }
 0xb97   :  { %11545 = vmatmul.mubr.msk.f32.vlgmr.msra.gmra.mrb[20].mxu0 %vm638_vm2, %v2280_v50  ;;  %12090 = vmatprep.subr.bf16.mxu0 %v12793_v44 }
 0xb98   :  { %11556 = vmatprep.mubr.msk.f32.mxu0 %vm12794_vm4, %v12795_v27 }
 0xb9d   :  { %v2391_v41 = vpop.trf.xlu1 }
 0xb9e   :  { %11537 = vmatprep.subr.mxu1 %v2391_v41 }
 0xb9f   :  { %11538 = vmatpush3.msra.mxu1 %v2391_v41 }
 0xba0   :  { %11540 = vmatmul.mubr.msk.f32.vlgmr.msra.gmra.mrb[8].mxu1 %vm638_vm2, %v2276_v38 }
 0xba1   :  { %11549 = vmatprep.mubr.msk.f32.mxu1 %vm638_vm2, %v2282_v45 }
 0xba5   :  { %v2455_v53 = vpop.trf.xlu0 }
 0xba6   :  { %11547 = vmatprep.subr.mxu1 %v2455_v53 }
 0xba7   :  { %11548 = vmatpush3.msra.mxu1 %v2455_v53 }
 0xba8   :  { %11550 = vmatmul.mubr.msk.f32.vlgmr.msra.gmra.mrb[10].mxu1 %vm638_vm2, %v2284_v52  ;;  %12094 = vmatprep.subr.bf16.mxu1 %v12793_v44 }
 0xba9   :  { %11563 = vmatprep.mubr.msk.f32.mxu1 %vm12794_vm4, %v12795_v27 }
 0xc21   :  { %v11536_v54 = vpop.f32.mrb[18].mxu0 }
 0xc22   :  { %v2547_v59 = vadd.f32 %v11536_v54, %v13044_v8  ;;  %v2541_v60 = vpop.f32.mrb[19].mxu0 }
 0xc23   :  { %v2542_v61 = vadd.f32 %v2541_v60, %v13046_v9 }
 0xc24   :  { %v2790_v63 = vsel %vm955_vm3, %v2547_v59, -inf }
 0xc25   :  { %2791 = vmax.xlane.f32.xlu0 %v2790_v63  ;;  %v2787_v7 = vsel %vm955_vm3, %v2542_v61, -inf }
 0xc26   :  { %2788 = vmax.xlane.f32.xlu1 %v2787_v7 }
 0xc6a   :  { %v11546_v3 = vpop.f32.mrb[20].mxu0 }
 0xc6b   :  { %v2705_v5 = vadd.f32 %v11546_v3, %v13044_v8  ;;  %v2699_v10 = vpop.f32.mrb[21].mxu0 }
 0xc6c   :  { %v2700_v20 = vadd.f32 %v2699_v10, %v13046_v9 }
 0xc6d   :  { %v2802_v11 = vsel %vm955_vm3, %v2705_v5, -inf }
 0xc6e   :  { %2803 = vmax.xlane.f32.xlu0 %v2802_v11  ;;  %v2799_v36 = vsel %vm955_vm3, %v2700_v20, -inf }
 0xc73   :  { %v11541_v12 = vpop.f32.mrb[8].mxu1 }
 0xc74   :  { %v2626_v13 = vadd.f32 %v11541_v12, %v13044_v8  ;;  %v2620_v14 = vpop.f32.mrb[9].mxu1 }
 0xc75   :  { %v2621_v15 = vadd.f32 %v2620_v14, %v13046_v9 }
 0xc76   :  { %v2796_v17 = vsel %vm955_vm3, %v2626_v13, -inf }
 0xc77   :  { %2797 = vmax.xlane.f32.xlu1 %v2796_v17  ;;  %v2793_v21 = vsel %vm955_vm3, %v2621_v15, -inf }
 0xc7b   :  { %v11551_v24 = vpop.f32.mrb[10].mxu1  ;;  %2794 = vmax.xlane.f32.xlu1 %v2793_v21 }
 0xc7c   :  { %v2784_v25 = vadd.f32 %v11551_v24, %v13044_v8  ;;  %v2778_v29 = vpop.f32.mrb[11].mxu1  ;;  %v13336_v8 = vadd.f32 %v13274_v32, %v10794_v39 }
 0xc7d   :  { %v2779_v30 = vadd.f32 %v2778_v29, %v13046_v9 }
 0xc7e   :  { %v2808_v35 = vsel %vm955_vm3, %v2784_v25, -inf }
 0xc7f   :  { %2809 = vmax.xlane.f32.xlu0 %v2808_v35  ;;  %2800 = vmax.xlane.f32.xlu1 %v2799_v36  ;;  %v2805_v37 = vsel %vm955_vm3, %v2779_v30, -inf }
 0xc83   :  { %2806 = vmax.xlane.f32.xlu1 %v2805_v37 }
 0xc94   :  { %2301 = vrot.lane.b32.xlu1 %v13329_v47, %s12789_s12 }
 0xc95   :  { %2307 = vrot.lane.b32.xlu0 %v13329_v47, %s12788_s3 }
 0xc98   :  { %2303 = vrot.lane.b32.xlu1 %v13336_v8, %s12789_s12 }
 0xc9c   :  { %2313 = vrot.lane.b32.xlu1 %v13329_v47, %s12790_s1 }
 0xca0   :  { %2309 = vrot.lane.b32.xlu1 %v13336_v8, %s12788_s3 }
 0xcb2   :  { %v2792_v9 = vpop.xlane.xlu0 %2791 }
 0xcb3   :  { %v2812_v2 = vsub.f32 %v2547_v59, %v2792_v9  ;;  %v2789_v38 = vpop.xlane.xlu1 %2788 }
 0xcb4   :  { %v2811_v48 = vsub.f32 %v2542_v61, %v2789_v38 }
 0xcb5   :  { %v2821_v49 = vmul.f32 1.442695, %v2812_v2 }
 0xcb6   :  { %v2819_v50 = vmul.f32 1.442695, %v2811_v48 }
 0xcb7   :  { %12453 = vpow2.f32 %v2821_v49 }
 0xcb8   :  { %12455 = vpow2.f32 %v2819_v50 }
 0xcc1   :  { %v13344_v43 = vpop.eup %12453 }
 0xcc2   :  { %v2838_v32 = vsel %vm955_vm3, %v13344_v43, 0.0  ;;  %v13348_v45 = vpop.eup %12455 }
 0xcc3   :  { %2839 = vadd.xlane.f32.xlu0 %v2838_v32  ;;  %v2835_v40 = vsel %vm955_vm3, %v13348_v45, 0.0 }
 0xcc7   :  { %2836 = vadd.xlane.f32.xlu0 %v2835_v40 }
 0xcfb   :  { %v2804_v52 = vpop.xlane.xlu0 %2803 }
 0xcfc   :  { %v2816_v41 = vsub.f32 %v2705_v5, %v2804_v52 }
 0xcfe   :  { %v2829_v59 = vmul.f32 1.442695, %v2816_v41 }
 0xd04   :  { %v2798_v53 = vpop.xlane.xlu1 %2797 }
 0xd05   :  { %v2814_v54 = vsub.f32 %v2626_v13, %v2798_v53 }
 0xd07   :  { %v2825_v60 = vmul.f32 1.442695, %v2814_v54 }
 0xd08   :  { %v2795_v61 = vpop.xlane.xlu1 %2794 }
 0xd09   :  { %12457 = vpow2.f32 %v2825_v60  ;;  %v2813_v63 = vsub.f32 %v2621_v15, %v2795_v61 }
 0xd0a   :  { %12459 = vpow2.f32 %v2829_v59 }
 0xd0b   :  { %v2823_v7 = vmul.f32 1.442695, %v2813_v63 }
 0xd0c   :  { %v2810_v3 = vpop.xlane.xlu0 %2809  ;;  %v2801_v10 = vpop.xlane.xlu1 %2800 }
 0xd0d   :  { %v2818_v11 = vsub.f32 %v2784_v25, %v2810_v3  ;;  %v2815_v12 = vsub.f32 %v2700_v20, %v2801_v10  ;;  %12461 = vpow2.f32 %v2823_v7 }
 0xd0f   :  { %v2827_v14 = vmul.f32 1.442695, %v2815_v12  ;;  %v2833_v17 = vmul.f32 1.442695, %v2818_v11 }
 0xd10   :  { %v2807_v21 = vpop.xlane.xlu1 %2806  ;;  %v2308_v48 = vpop.permute.xlu0 %2307 }
 0xd11   :  { %v2817_v24 = vsub.f32 %v2779_v30, %v2807_v21  ;;  %12463 = vpow2.f32 %v2827_v14 }
 0xd12   :  { %12465 = vpow2.f32 %v2833_v17 }
 0xd13   :  { %v12458_v5 = vpop.eup %12457  ;;  %v2831_v13 = vmul.f32 1.442695, %v2817_v24 }
 0xd14   :  { %v2844_v29 = vsel %vm955_vm3, %v12458_v5, 0.0  ;;  %v13353_v35 = vpop.eup %12459  ;;  %v2302_v38 = vpop.permute.xlu1 %2301 }
 0xd15   :  { %2845 = vadd.xlane.f32.xlu0 %v2844_v29  ;;  %12467 = vpow2.f32 %v2831_v13  ;;  %v2850_v15 = vsel %vm955_vm3, %v13353_v35, 0.0 }
 0xd17   :  { %v12462_v25 = vpop.eup %12461 }
 0xd18   :  { %v2841_v36 = vsel %vm955_vm3, %v12462_v25, 0.0  ;;  %v2304_v49 = vpop.permute.xlu1 %2303 }
 0xd19   :  { %2851 = vadd.xlane.f32.xlu0 %v2850_v15 }
 0xd1b   :  { %v13357_v20 = vpop.eup %12463 }
 0xd1c   :  { %v2847_v30 = vsel %vm955_vm3, %v13357_v20, 0.0  ;;  %v12466_v37 = vpop.eup %12465  ;;  %v2314_v40 = vpop.permute.xlu1 %2313 }
 0xd1d   :  { %2842 = vadd.xlane.f32.xlu0 %v2841_v36  ;;  %2848 = vadd.xlane.f32.xlu1 %v2847_v30  ;;  %v2856_v39 = vsel %vm955_vm3, %v12466_v37, 0.0 }
 0xd1f   :  { %v12468_v9 = vpop.eup %12467 }
 0xd20   :  { %v2853_v2 = vsel %vm955_vm3, %v12468_v9, 0.0  ;;  %v2310_v52 = vpop.permute.xlu1 %2309 }
 0xd21   :  { %2857 = vadd.xlane.f32.xlu1 %v2856_v39 }
 0xd25   :  { %2854 = vadd.xlane.f32.xlu1 %v2853_v2 }
 0xd33   :  { %2315 = vrot.lane.b32.xlu0 %v13336_v8, %s12790_s1 }
 0xd50   :  { %v2840_v50 = vpop.xlane.xlu0 %2839 }
 0xd51   :  { %2907 = vxpose.xlu0.b32.start [1/2] (short) (narrow) %v2302_v38, 8  ;;  %12469 = vrcp.f32 %v2840_v50 }
 0xd54   :  { %v2837_v32 = vpop.xlane.xlu0 %2836 }
 0xd55   :  { %12471 = vrcp.f32 %v2837_v32  ;;  %2908 = vxpose.xlu0.b32.end [2/2] (short) (narrow) %v2304_v49, 8 }
 0xd58   :  { %2875 = vxpose.xlu1.b32.start [1/2] (short) (narrow) %v13329_v47, 8 }
 0xd59   :  { %2939 = vxpose.xlu0.b32.start [1/2] (short) (narrow) %v2308_v48, 8 }
 0xd5b   :  { %v12470_v41 = vpop.eup %12469 }
 0xd5c   :  { %2876 = vxpose.xlu1.b32.end [2/2] (short) (narrow) %v13336_v8, 8  ;;  %v2862_v54 = vmul.f32 %v12470_v41, %v13344_v43  ;;  %v102_v41 = vld [vmem:[#allocation7 + $0xe8] sm:$0xff] }
 0xd5d   :  { %2940 = vxpose.xlu0.b32.end [2/2] (short) (narrow) %v2310_v52, 8  ;;  %v101_v52 = vld [vmem:[#allocation7 + $0xe0] sm:$0xff] }
 0xd5f   :  { %v12472_v53 = vpop.eup %12471 }
 0xd60   :  { %v2860_v59 = vmul.f32 %v12472_v53, %v13348_v45  ;;  %2971 = vxpose.xlu1.b32.start [1/2] (short) (narrow) %v2314_v40, 8  ;;  %v13390_v53 = vpack.c.bf16 %v102_v41, %v101_v52 }
 0xd62   :  { %v12091_v60 = vpack.c.bf16 %v2862_v54, %v2860_v59 }
 0xd64   :  { %12093 = vmatpush3.bf16.xpose.msk.msra.mxu0 %vm13116_vm5, %v12091_v60 }
 0xd65   :  { %12098 = vmatprep.subr.bf16.mxu0 %v12793_v44 }
 0xda2   :  { %v2846_v61 = vpop.xlane.xlu0 %2845 }
 0xda3   :  { %12473 = vrcp.f32 %v2846_v61 }
 0xda6   :  { %v2852_v47 = vpop.xlane.xlu0 %2851 }
 0xdaa   :  { %v2843_v63 = vpop.xlane.xlu0 %2842  ;;  %v2849_v8 = vpop.xlane.xlu1 %2848 }
 0xdab   :  { %12475 = vrcp.f32 %v2843_v63 }
 0xdad   :  { %v12474_v3 = vpop.eup %12473 }
 0xdae   :  { %v2316_v7 = vpop.permute.xlu0 %2315  ;;  %v2866_v43 = vmul.f32 %v12474_v3, %v12458_v5  ;;  %v2858_v45 = vpop.xlane.xlu1 %2857 }
 0xdaf   :  { %2972 = vxpose.xlu1.b32.end [2/2] (short) (narrow) %v2316_v7, 8 }
 0xdb2   :  { %v2855_v14 = vpop.xlane.xlu1 %2854 }
 0xdb3   :  { %12477 = vrcp.f32 %v2855_v14 }
 0xdb4   :  { %12479 = vrcp.f32 %v2858_v45 }
 0xdb5   :  { %v12476_v10 = vpop.eup %12475  ;;  %12481 = vrcp.f32 %v2849_v8 }
 0xdb6   :  { %v2864_v11 = vmul.f32 %v12476_v10, %v12462_v25  ;;  %12483 = vrcp.f32 %v2852_v47 }
 0xdb8   :  { %v12095_v12 = vpack.c.bf16 %v2866_v43, %v2864_v11 }
 0xdba   :  { %12097 = vmatpush3.bf16.xpose.msk.msra.mxu1 %vm13116_vm5, %v12095_v12 }
 0xdbb   :  { %12102 = vmatprep.subr.bf16.mxu1 %v12793_v44 }
 0xdbd   :  { %v12478_v17 = vpop.eup %12477 }
 0xdbe   :  { %v12480_v21 = vpop.eup %12479  ;;  %v2872_v24 = vmul.f32 %v12478_v17, %v12468_v9 }
 0xdbf   :  { %v2874_v13 = vmul.f32 %v12480_v21, %v12466_v37  ;;  %v12482_v5 = vpop.eup %12481 }
 0xdc0   :  { %v12484_v25 = vpop.eup %12483  ;;  %v2868_v36 = vmul.f32 %v12482_v5, %v13357_v20 }
 0xdc1   :  { %v12103_v15 = vpack.c.bf16 %v2874_v13, %v2872_v24  ;;  %v2870_v30 = vmul.f32 %v12484_v25, %v13353_v35 }
 0xdc3   :  { %v12099_v2 = vpack.c.bf16 %v2870_v30, %v2868_v36 }
 0xdd1   :  { %v2923_v29 = vpop.trf.xlu0 }
 0xdd2   :  { %11564 = vmatmul.mubr.msk.f32.vlgmr.msra.gmra.mrb[12].mxu1 %vm955_vm3, %v2923_v29 }
 0xdd3   :  { %12105 = vmatpush3.bf16.xpose.msk.msra.mxu1 %vm13116_vm5, %v12103_v15  ;;  %11577 = vmatprep.mubr.msk.f32.mxu1 %vm12794_vm4, %v12795_v27 }
 0xdd8   :  { %v2891_v39 = vpop.trf.xlu1 }
 0xdd9   :  { %11557 = vmatmul.mubr.msk.f32.vlgmr.msra.gmra.mrb[22].mxu0 %vm955_vm3, %v2891_v39  ;;  %v2955_v37 = vpop.trf.xlu0 }
 0xdda   :  { %12101 = vmatpush3.bf16.xpose.msk.msra.mxu0 %vm13116_vm5, %v12099_v2  ;;  %11570 = vmatprep.mubr.msk.f32.mxu0 %vm12794_vm4, %v12795_v27 }
 0xddb   :  { %12108 = vmatprep.subr.msk.bf16.mxu0 %vm12902_vm1, %v13390_v53 }
 0xde1   :  { %11571 = vmatmul.mubr.msk.f32.vlgmr.msra.gmra.mrb[24].mxu0 %vm955_vm3, %v2955_v37 }
 0xde2   :  { %12111 = vmatpush3.bf16.xpose.msk.msra.mxu0 %vm12902_vm1, %v13390_v53 }
 0xe2b   :  { %v2987_v9 = vpop.trf.xlu1 }
 0xe2c   :  { %11578 = vmatmul.mubr.msk.f32.vlgmr.msra.gmra.mrb[14].mxu1 %vm955_vm3, %v2987_v9 }
 0xea5   :  { %v3157_v38 = vpop.f32.mrb[12].mxu1 }
 0xea6   :  { %v11565_v20 = vpop.f32.mrb[13].mxu1  ;;  %3351 = vxpose.xlu1.b32.start.end [1/1] (short) (narrow) %v3157_v38, 16 }
 0xeac   :  { %v3078_v35 = vpop.f32.mrb[22].mxu0 }
 0xead   :  { %3319 = vxpose.xlu0.b32.start.end [1/1] (short) (narrow) %v3078_v35, 16  ;;  %v11558_v48 = vpop.f32.mrb[23].mxu0 }
 0xeb4   :  { %v3236_v49 = vpop.f32.mrb[24].mxu0 }
 0xeb5   :  { %3383 = vxpose.xlu0.b32.start.end [1/1] (short) (narrow) %v3236_v49, 16  ;;  %v11572_v50 = vpop.f32.mrb[25].mxu0 }
 0xeff   :  { %v3315_v32 = vpop.f32.mrb[14].mxu1 }
 0xf00   :  { %3415 = vxpose.xlu1.b32.start.end [1/1] (short) (narrow) %v3315_v32, 16  ;;  %v11579_v40 = vpop.f32.mrb[15].mxu1 }
 0xf26   :  { %v3367_v59 = vpop.trf.xlu1 }
 0xf2a   :  { %v3368_v61 = vpop.trf.xlu1 }
 0xf2d   :  { %v3335_v54 = vpop.trf.xlu0 }
 0xf31   :  { %v3336_v60 = vpop.trf.xlu0 }
 0xf35   :  { %v3399_v47 = vpop.trf.xlu0 }
 0xf36   :  { %v3447_v63 = vcombine.low %v3335_v54, %v3399_v47  ;;  %v3448_v7 = vcombine.high %v3335_v54, %v3399_v47 }
 0xf38   :  { %v3455_v11 = vrot.slane %v3447_v63, %v13150_v51  ;;  %v3462_v45 = vrot.slane %v3448_v7, %v13150_v51 }
 0xf39   :  { %v3400_v3 = vpop.trf.xlu0 }
 0xf3a   :  { %v3515_v17 = vcombine.low %v3336_v60, %v3400_v3  ;;  %v3516_v21 = vcombine.high %v3336_v60, %v3400_v3 }
 0xf3c   :  { %v3523_v9 = vrot.slane %v3515_v17, %v13150_v51  ;;  %v3530_v38 = vrot.slane %v3516_v21, %v13150_v51 }
 0xf80   :  { %v3431_v8 = vpop.trf.xlu1 }
 0xf81   :  { %v3463_v10 = vcombine.low %v3367_v59, %v3431_v8  ;;  %v3464_v43 = vcombine.high %v3367_v59, %v3431_v8 }
 0xf83   :  { %v3471_v12 = vrot.slane %v3463_v10, %v13150_v51  ;;  %v3478_v14 = vrot.slane %v3464_v43, %v13150_v51 }
 0xf84   :  { %v3432_v24 = vpop.trf.xlu1 }
 0xf85   :  { %v3479_v13 = vcombine.low %v3455_v11, %v3471_v12  ;;  %v3480_v29 = vcombine.high %v3455_v11, %v3471_v12  ;;  %v3495_v15 = vcombine.low %v3462_v45, %v3478_v14  ;;  %v3496_v5 = vcombine.high %v3462_v45, %v3478_v14 }
 0xf86   :  { %v3531_v25 = vcombine.low %v3368_v61, %v3432_v24  ;;  %v3532_v36 = vcombine.high %v3368_v61, %v3432_v24 }
 0xf87   :  { %v3487_v30 = vrot.slane %v3479_v13, %v13152_v58  ;;  %v3494_v39 = vrot.slane %v3480_v29, %v13152_v58  ;;  %v3503_v2 = vrot.slane %v3495_v15, %v13152_v58  ;;  %v3510_v37 = vrot.slane %v3496_v5, %v13152_v58 }
 0xf88   :  { %v3539_v20 = vrot.slane %v3531_v25, %v13150_v51  ;;  %v3546_v35 = vrot.slane %v3532_v36, %v13150_v51 }
 0xf89   :  { %v3583_v48 = vcombine.low %v3487_v30, %v3494_v39  ;;  %v10899_v49 = vcombine.high %v3487_v30, %v3494_v39  ;;  %v3599_v50 = vcombine.low %v3503_v2, %v3510_v37  ;;  %v10900_v32 = vcombine.high %v3503_v2, %v3510_v37  ;;  %v103_v39 = vld [vmem:[#allocation7 + $0xf0] sm:$0xff]  ;;  %v104_v2 = vld [vmem:[#allocation7 + $0xf8] sm:$0xff] }
 0xf8a   :  { %v3547_v40 = vcombine.low %v3523_v9, %v3539_v20  ;;  %v3548_v52 = vcombine.high %v3523_v9, %v3539_v20  ;;  %v3563_v41 = vcombine.low %v3530_v38, %v3546_v35  ;;  %v3564_v54 = vcombine.high %v3530_v38, %v3546_v35 }
 0xf8b   :  { %v3590_v59 = vrot.slane %v3583_v48, %v13150_v51  ;;  %v3598_v60 = vrot.slane %v10899_v49, %v13150_v51  ;;  %v3606_v61 = vrot.slane %v3599_v50, %v13150_v51  ;;  %v3614_v47 = vrot.slane %v10900_v32, %v13150_v51 }
 0xf8c   :  { %v3555_v63 = vrot.slane %v3547_v40, %v13152_v58  ;;  %v3562_v7 = vrot.slane %v3548_v52, %v13152_v58  ;;  %v3571_v8 = vrot.slane %v3563_v41, %v13152_v58  ;;  %v3578_v3 = vrot.slane %v3564_v54, %v13152_v58 }
 0xf8d   :  { %v3616_v10 = vcombine.high %v3590_v59, %v3598_v60  ;;  %v3632_v43 = vcombine.high %v3606_v61, %v3614_v47  ;;  %v3615_v11 = vcombine.low %v3590_v59, %v3598_v60  ;;  %v3631_v45 = vcombine.low %v3606_v61, %v3614_v47 }
 0xf8e   :  { %v3651_v12 = vcombine.low %v3555_v63, %v3562_v7  ;;  %v10901_v14 = vcombine.high %v3555_v63, %v3562_v7  ;;  %v3667_v17 = vcombine.low %v3571_v8, %v3578_v3  ;;  %v10902_v21 = vcombine.high %v3571_v8, %v3578_v3 }
 0xf8f   :  { %v3630_v24 = vrot.slane %v3616_v10, %v13152_v58  ;;  %v3646_v13 = vrot.slane %v3632_v43, %v13152_v58  ;;  %v3623_v29 = vrot.slane %v3615_v11, %v13152_v58  ;;  %v3639_v15 = vrot.slane %v3631_v45, %v13152_v58 }
 0xf90   :  { %v3658_v5 = vrot.slane %v3651_v12, %v13150_v51  ;;  %v3666_v25 = vrot.slane %v10901_v14, %v13150_v51  ;;  %v3674_v36 = vrot.slane %v3667_v17, %v13150_v51  ;;  %v3682_v30 = vrot.slane %v10902_v21, %v13150_v51 }
 0xf91   :  { %v3649_v37 = vcombine.low %v3630_v24, %v3646_v13  ;;  %v3648_v9 = vcombine.high %v3623_v29, %v3639_v15  ;;  %v3647_v38 = vcombine.low %v3623_v29, %v3639_v15  ;;  %v13428_v50 = vpack.c.bf16 %v104_v2, %v103_v39  ;;  %v10798_v2 = vld [vmem:[#allocation8 + $0x36] ss:$0 sm:$0xff] }
 0xf92   :  { %v3683_v20 = vcombine.low %v3658_v5, %v3666_v25  ;;  %v3699_v35 = vcombine.low %v3674_v36, %v3682_v30  ;;  %v3684_v48 = vcombine.high %v3658_v5, %v3666_v25  ;;  %v3700_v49 = vcombine.high %v3674_v36, %v3682_v30 }
 0xf93   :  { %3729 = vrot.lane.b32.xlu1 %v3649_v37, %s12798_s15  ;;  %3721 = vrot.lane.b32.xlu0 %v3648_v9, %s12785_s28  ;;  %v3650_v52 = vcombine.high %v3630_v24, %v3646_v13  ;;  %v10795_v24 = vld [vmem:[#allocation8 + $0x34] ss:$0 sm:$0xff]  ;;  %v13457_v37 = vadd.f32 %v10798_v2, %v13035_v57 }
 0xf94   :  { %v3691_v32 = vrot.slane %v3683_v20, %v13152_v58  ;;  %v3707_v40 = vrot.slane %v3699_v35, %v13152_v58  ;;  %12114 = vmatprep.subr.msk.bf16.mxu0 %vm12902_vm1, %v13428_v50  ;;  %v3698_v54 = vrot.slane %v3684_v48, %v13152_v58  ;;  %v3714_v59 = vrot.slane %v3700_v49, %v13152_v58 }
 0xf95   :  { %12117 = vmatpush3.bf16.xpose.msk.msra.mxu0 %vm12902_vm1, %v13428_v50 }
 0xf96   :  { %v3716_v41 = vcombine.high %v3691_v32, %v3707_v40  ;;  %v3715_v60 = vcombine.low %v3691_v32, %v3707_v40  ;;  %v3717_v61 = vcombine.low %v3698_v54, %v3714_v59  ;;  %v3718_v47 = vcombine.high %v3698_v54, %v3714_v59  ;;  %v107_v54 = vld [vmem:[#allocation7 + $0x110] sm:$0xff]  ;;  %v108_v59 = vld [vmem:[#allocation7 + $0x118] sm:$0xff] }
 0xf97   :  { %3737 = vrot.lane.b32.xlu0 %v3650_v52, %s12799_s16  ;;  %v105_v52 = vld [vmem:[#allocation7 + $0x100] sm:$0xff] }
 0xf98   :  { %3723 = vrot.lane.b32.xlu1 %v3716_v41, %s12785_s28 }
 0xf9c   :  { %3731 = vrot.lane.b32.xlu1 %v3717_v61, %s12798_s15 }
 0xfa0   :  { %3739 = vrot.lane.b32.xlu1 %v3718_v47, %s12799_s16 }
0x1005   :  { %v3722_v63 = vpop.permute.xlu0 %3721  ;;  %v3730_v7 = vpop.permute.xlu1 %3729 }
0x1006   :  { %v3743_v8 = vsel %vm638_vm2, %v3647_v38, %v3722_v63 }
0x1007   :  { %v3745_v3 = vsel %vm955_vm3, %v3743_v8, %v3730_v7 }
0x1009   :  { %v3738_v10 = vpop.permute.xlu0 %3737 }
0x100a   :  { %v3747_v43 = vsel %vm1940_vm6, %v3745_v3, %v3738_v10  ;;  %v3724_v11 = vpop.permute.xlu1 %3723 }
0x100b   :  { %11588 = vmatprep.mubr.msk.f32.mxu0 %vm233_vm0, %v3747_v43  ;;  %v3744_v12 = vsel %vm638_vm2, %v3715_v60, %v3724_v11  ;;  %v13484_v60 = vpack.c.bf16 %v108_v59, %v107_v54  ;;  %v10803_v43 = vld [vmem:[#allocation8 + $0x3c] ss:$0 sm:$0xff]  ;;  %v228_v59 = vld [vmem:[#allocation8 + $0x28] sm:$0xff] }
0x100e   :  { %v3732_v45 = vpop.permute.xlu1 %3731 }
0x100f   :  { %v3746_v14 = vsel %vm955_vm3, %v3744_v12, %v3732_v45  ;;  %v10804_v45 = vld [vmem:[#allocation8 + $0x3d] ss:$0 sm:$0xff] }
0x1012   :  { %v3740_v17 = vpop.permute.xlu1 %3739 }
0x1013   :  { %v3748_v21 = vsel %vm1940_vm6, %v3746_v14, %v3740_v17 }
0x1014   :  { %11589 = vmatmul.mubr.msk.f32.vlgmr.msra.gmra.mrb[26].mxu0 %vm233_vm0, %v3748_v21 }
0x10e7   :  { %v11590_v13 = vpop.f32.mrb[26].mxu0 }
0x10e8   :  { %v3839_v29 = vadd.f32 %v11590_v13, %v10795_v24  ;;  %v3833_v15 = vpop.f32.mrb[27].mxu0 }
0x10e9   :  { %v3834_v5 = vadd.f32 %v10795_v24, %v3833_v15 }
0x10ea   :  { %v3843_v25 = vadd.f32 %v3839_v29, %v13268_v62 }
0x10eb   :  { %v3842_v36 = vadd.f32 %v3834_v5, %v13262_v55  ;;  %v13466_v55 = vadd.f32 %v13033_v56, %v10798_v2  ;;  %v106_v56 = vld [vmem:[#allocation7 + $0x108] sm:$0xff] }
0x10ec   :  { %v3847_v30 = vsel %vm233_vm0, %v3843_v25, 0.0  ;;  %v13472_v41 = vpack.c.bf16 %v106_v56, %v105_v52 }
0x10ed   :  { %3848 = vadd.xlane.f32.xlu1 %v3847_v30  ;;  %v3844_v39 = vsel %vm233_vm0, %v3842_v36, 0.0 }
0x10ee   :  { %3845 = vadd.xlane.f32.xlu0 %v3844_v39  ;;  %12120 = vmatprep.subr.msk.bf16.mxu1 %vm12902_vm1, %v13472_v41 }
0x10ef   :  { %12123 = vmatpush3.bf16.xpose.msk.msra.mxu1 %vm12902_vm1, %v13472_v41 }
0x10f0   :  { %12126 = vmatprep.subr.msk.bf16.mxu1 %vm12902_vm1, %v13484_v60 }
0x10f7   :  { %12129 = vmatpush3.bf16.xpose.msk.msra.mxu1 %vm12902_vm1, %v13484_v60 }
0x10fe   :  { %3985 = vrot.lane.b32.xlu1 %v13457_v37, %s12789_s12 }
0x1102   :  { %3991 = vrot.lane.b32.xlu1 %v13457_v37, %s12788_s3 }
0x1106   :  { %3997 = vrot.lane.b32.xlu1 %v13457_v37, %s12790_s1 }
0x110a   :  { %3999 = vrot.lane.b32.xlu1 %v13466_v55, %s12790_s1 }
0x117a   :  { %v3849_v62 = vpop.xlane.xlu1 %3848 }
0x117b   :  { %v3851_v9 = vmul.f32 0.03125, %v3849_v62  ;;  %v3846_v38 = vpop.xlane.xlu0 %3845 }
0x117c   :  { %v3850_v57 = vmul.f32 0.03125, %v3846_v38 }
0x117d   :  { %v3853_v20 = vsub.f32 %v3843_v25, %v3851_v9  ;;  %v10796_v25 = vld [vmem:[#allocation8 + $0x35] ss:$0 sm:$0xff] }
0x117e   :  { %v3852_v35 = vsub.f32 %v3842_v36, %v3850_v57  ;;  %v3986_v38 = vpop.permute.xlu1 %3985 }
0x117f   :  { %v3855_v32 = vmul.f32 %v3853_v20, %v3853_v20 }
0x1180   :  { %v3854_v48 = vmul.f32 %v3852_v35, %v3852_v35 }
0x1181   :  { %v3859_v40 = vsel %vm233_vm0, %v3855_v32, 0.0 }
0x1182   :  { %v3856_v49 = vsel %vm233_vm0, %v3854_v48, 0.0  ;;  %v13516_v57 = vpop.permute.xlu1 %3991 }
0x1183   :  { %3857 = vadd.xlane.f32.xlu0 %v3856_v49 }
0x1187   :  { %3860 = vadd.xlane.f32.xlu0 %v3859_v40 }
0x119d   :  { %3987 = vrot.lane.b32.xlu0 %v13466_v55, %s12789_s12 }
0x11a1   :  { %3993 = vrot.lane.b32.xlu0 %v13466_v55, %s12788_s3 }
0x11bf   :  { %4003 = vxpose.xlu0.b32.start [1/2] (short) (narrow) %v13457_v37, 8 }
0x11c3   :  { %4004 = vxpose.xlu0.b32.end [2/2] (short) (narrow) %v13466_v55, 8 }
0x1210   :  { %v3858_v61 = vpop.xlane.xlu0 %3857 }
0x1211   :  { %v3862_v47 = vmul.f32 0.03125, %v3858_v61  ;;  %v227_v61 = vld [vmem:[#allocation8 + $0x20] sm:$0xff] }
0x1213   :  { %v3864_v63 = vadd.f32 1e-05, %v3862_v47 }
0x1214   :  { %v3861_v7 = vpop.xlane.xlu0 %3860 }
0x1215   :  { %12485 = vrsqrt.f32 %v3864_v63  ;;  %v3863_v8 = vmul.f32 0.03125, %v3861_v7 }
0x1217   :  { %v3865_v3 = vadd.f32 1e-05, %v3863_v8 }
0x1218   :  { %v3988_v29 = vpop.permute.xlu0 %3987 }
0x1219   :  { %12487 = vrsqrt.f32 %v3865_v3 }
0x121c   :  { %v13502_v15 = vpop.permute.xlu0 %3993 }
0x121f   :  { %v12486_v10 = vpop.eup %12485 }
0x1220   :  { %v3868_v11 = vmul.f32 %v12486_v10, %v3852_v35 }
0x1222   :  { %v3870_v12 = vmul.f32 %v10803_v43, %v3868_v11 }
0x1223   :  { %v12488_v14 = vpop.eup %12487 }
0x1224   :  { %v3869_v17 = vmul.f32 %v12488_v14, %v3853_v20  ;;  %v13494_v21 = vadd.f32 %v10804_v45, %v3870_v12  ;;  %v13520_v20 = vpop.permute.xlu1 %3997 }
0x1226   :  { %11599 = vmatprep.mubr.msk.f32.mxu1 %vm233_vm0, %v13494_v21  ;;  %v3871_v24 = vmul.f32 %v10803_v43, %v3869_v17 }
0x1228   :  { %v13498_v13 = vadd.f32 %v10804_v45, %v3871_v24  ;;  %v13523_v35 = vpop.permute.xlu1 %3999 }
0x122a   :  { %11600 = vmatmul.mubr.msk.f32.vlgmr.msra.gmra.mrb[16].mxu1 %vm233_vm0, %v13498_v13 }
0x123f   :  { %v13504_v5 = vpop.trf.xlu0 }
0x1240   :  { %11602 = vmatprep.subr.mxu0 %v13504_v5 }
0x1241   :  { %11603 = vmatpush3.msra.mxu0 %v13504_v5 }
0x12fd   :  { %v11601_v36 = vpop.f32.mrb[16].mxu1 }
0x12fe   :  { %v3964_v30 = vadd.f32 %v11601_v36, %v10796_v25  ;;  %v3958_v39 = vpop.f32.mrb[17].mxu1 }
0x12ff   :  { %v3959_v2 = vadd.f32 %v10796_v25, %v3958_v39 }
0x1300   :  { %v3968_v62 = vmul.f32 0.35355338, %v3964_v30 }
0x1301   :  { %v3967_v9 = vmul.f32 0.35355338, %v3959_v2 }
0x1302   :  { %3977 = vrot.lane.b32.xlu0 %v3968_v62, %s12788_s3  ;;  %3973 = vrot.lane.b32.xlu1 %v3968_v62, %s12789_s12 }
0x1303   :  { %11604 = vmatprep.mubr.msk.f32.mxu0 %vm638_vm2, %v3967_v9 }
0x1304   :  { %11605 = vmatmul.mubr.msk.f32.vlgmr.msra.gmra.mrb[28].mxu0 %vm638_vm2, %v3968_v62 }
0x1306   :  { %3981 = vrot.lane.b32.xlu1 %v3968_v62, %s12790_s1  ;;  %3971 = vrot.lane.b32.xlu0 %v3967_v9, %s12789_s12 }
0x130a   :  { %3979 = vrot.lane.b32.xlu1 %v3967_v9, %s12790_s1  ;;  %3975 = vrot.lane.b32.xlu0 %v3967_v9, %s12788_s3 }
0x1328   :  { %4067 = vxpose.xlu0.b32.start [1/2] (short) (narrow) %v13516_v57, 8 }
0x132c   :  { %4068 = vxpose.xlu0.b32.end [2/2] (short) (narrow) %v13502_v15, 8 }
0x1330   :  { %4099 = vxpose.xlu0.b32.start [1/2] (short) (narrow) %v13520_v20, 8 }
0x1333   :  { %4035 = vxpose.xlu1.b32.start [1/2] (short) (narrow) %v3986_v38, 8 }
0x1334   :  { %4100 = vxpose.xlu0.b32.end [2/2] (short) (narrow) %v13523_v35, 8 }
0x1337   :  { %4036 = vxpose.xlu1.b32.end [2/2] (short) (narrow) %v3988_v29, 8 }
0x1355   :  { %4535 = vrot.lane.b32.xlu1 %v13457_v37, %s12791_s13 }
0x1359   :  { %4537 = vrot.lane.b32.xlu1 %v13466_v55, %s12791_s13 }
0x135d   :  { %4541 = vrot.lane.b32.xlu1 %v3988_v29, %s12791_s13  ;;  %4539 = vrot.lane.b32.xlu0 %v3986_v38, %s12791_s13 }
0x1374   :  { %v3978_v48 = vpop.permute.xlu0 %3977  ;;  %v3974_v40 = vpop.permute.xlu1 %3973 }
0x1378   :  { %v3972_v49 = vpop.permute.xlu0 %3971  ;;  %v3982_v56 = vpop.permute.xlu1 %3981 }
0x1379   :  { %11609 = vmatprep.mubr.msk.f32.mxu1 %vm638_vm2, %v3972_v49 }
0x137c   :  { %v3976_v32 = vpop.permute.xlu0 %3975  ;;  %v3980_v37 = vpop.permute.xlu1 %3979 }
0x137d   :  { %11614 = vmatprep.mubr.msk.f32.mxu0 %vm638_vm2, %v3976_v32 }
0x13a8   :  { %v13534_v52 = vpop.trf.xlu0 }
0x13a9   :  { %11612 = vmatprep.subr.mxu0 %v13534_v52 }
0x13aa   :  { %11613 = vmatpush3.msra.mxu0 %v13534_v52 }
0x13ab   :  { %11615 = vmatmul.mubr.msk.f32.vlgmr.msra.gmra.mrb[30].mxu0 %vm638_vm2, %v3978_v48  ;;  %12130 = vmatprep.subr.bf16.mxu0 %v12793_v44 }
0x13ac   :  { %11626 = vmatprep.mubr.msk.f32.mxu0 %vm12794_vm4, %v12795_v27 }
0x13b0   :  { %v13544_v54 = vpop.trf.xlu0 }
0x13b3   :  { %v13542_v55 = vpop.trf.xlu1 }
0x13b4   :  { %11607 = vmatprep.subr.mxu1 %v13542_v55 }
0x13b5   :  { %11608 = vmatpush3.msra.mxu1 %v13542_v55 }
0x13b6   :  { %11610 = vmatmul.mubr.msk.f32.vlgmr.msra.gmra.mrb[18].mxu1 %vm638_vm2, %v3974_v40  ;;  %11617 = vmatprep.subr.mxu1 %v13544_v54 }
0x13b7   :  { %11619 = vmatprep.mubr.msk.f32.mxu1 %vm638_vm2, %v3980_v37  ;;  %11618 = vmatpush3.msra.mxu1 %v13544_v54 }
0x13b8   :  { %12134 = vmatprep.subr.bf16.mxu1 %v12793_v44 }
0x13ba   :  { %11620 = vmatmul.mubr.msk.f32.vlgmr.msra.gmra.mrb[20].mxu1 %vm638_vm2, %v3982_v56 }
0x13bb   :  { %11633 = vmatprep.mubr.msk.f32.mxu1 %vm12794_vm4, %v12795_v27 }
0x13c7   :  { %v13564_v32 = vpop.permute.xlu1 %4535 }
0x13cb   :  { %v13572_v56 = vpop.permute.xlu1 %4537 }
0x13cf   :  { %v13568_v40 = vpop.permute.xlu0 %4539 }
0x13d7   :  { %v11606_v47 = vpop.f32.mrb[28].mxu0 }
0x13d8   :  { %v4207_v63 = vadd.f32 %v11606_v47, %v228_v59  ;;  %v4201_v7 = vpop.f32.mrb[29].mxu0 }
0x13d9   :  { %v4202_v8 = vadd.f32 %v4201_v7, %v227_v61 }
0x13da   :  { %v4450_v3 = vsel %vm955_vm3, %v4207_v63, -inf }
0x13db   :  { %4451 = vmax.xlane.f32.xlu0 %v4450_v3  ;;  %v4447_v10 = vsel %vm955_vm3, %v4202_v8, -inf }
0x13dc   :  { %4448 = vmax.xlane.f32.xlu1 %v4447_v10 }
0x1468   :  { %v4452_v37 = vpop.xlane.xlu0 %4451 }
0x147e   :  { %v11616_v43 = vpop.f32.mrb[30].mxu0 }
0x147f   :  { %v4365_v11 = vadd.f32 %v11616_v43, %v228_v59  ;;  %v4359_v45 = vpop.f32.mrb[31].mxu0 }
0x1480   :  { %v4360_v2 = vadd.f32 %v4359_v45, %v227_v61 }
0x1481   :  { %v4462_v12 = vsel %vm955_vm3, %v4365_v11, -inf }
0x1482   :  { %4463 = vmax.xlane.f32.xlu0 %v4462_v12  ;;  %v4459_v48 = vsel %vm955_vm3, %v4360_v2, -inf }
0x1489   :  { %v11611_v14 = vpop.f32.mrb[18].mxu1 }
0x148a   :  { %v4286_v17 = vadd.f32 %v11611_v14, %v228_v59  ;;  %v4280_v24 = vpop.f32.mrb[19].mxu1 }
0x148b   :  { %v4281_v29 = vadd.f32 %v4280_v24, %v227_v61 }
0x148c   :  { %v4456_v25 = vsel %vm955_vm3, %v4286_v17, -inf }
0x148d   :  { %4457 = vmax.xlane.f32.xlu1 %v4456_v25  ;;  %v11621_v36 = vpop.f32.mrb[20].mxu1  ;;  %v4453_v62 = vsel %vm955_vm3, %v4281_v29, -inf }
0x148e   :  { %v4444_v30 = vadd.f32 %v11621_v36, %v228_v59  ;;  %v4438_v39 = vpop.f32.mrb[21].mxu1  ;;  %v4472_v59 = vsub.f32 %v4207_v63, %v4452_v37 }
0x148f   :  { %v4439_v38 = vadd.f32 %v4438_v39, %v227_v61  ;;  %v13574_v61 = vpop.permute.xlu1 %4541 }
0x1490   :  { %v4468_v9 = vsel %vm955_vm3, %v4444_v30, -inf  ;;  %v4481_v47 = vmul.f32 1.442695, %v4472_v59 }
0x1491   :  { %4454 = vmax.xlane.f32.xlu1 %v4453_v62  ;;  %4469 = vmax.xlane.f32.xlu0 %v4468_v9  ;;  %v4465_v49 = vsel %vm955_vm3, %v4439_v38, -inf }
0x1492   :  { %12489 = vpow2.f32 %v4481_v47 }
0x1493   :  { %v4449_v7 = vpop.xlane.xlu1 %4448 }
0x1494   :  { %v4471_v3 = vsub.f32 %v4202_v8, %v4449_v7 }
0x1495   :  { %4460 = vmax.xlane.f32.xlu1 %v4459_v48 }
0x1496   :  { %v4479_v10 = vmul.f32 1.442695, %v4471_v3 }
0x1498   :  { %12491 = vpow2.f32 %v4479_v10 }
0x1499   :  { %4466 = vmax.xlane.f32.xlu1 %v4465_v49 }
0x149c   :  { %v12490_v43 = vpop.eup %12489 }
0x14a2   :  { %v12492_v45 = vpop.eup %12491 }
0x14a3   :  { %v4495_v12 = vsel %vm955_vm3, %v12492_v45, 0.0 }
0x14a7   :  { %4543 = vrot.lane.b32.xlu0 %v13516_v57, %s12791_s13  ;;  %v4498_v57 = vsel %vm955_vm3, %v12490_v43, 0.0 }
0x14aa   :  { %4547 = vrot.lane.b32.xlu1 %v13520_v20, %s12791_s13 }
0x14c6   :  { %4499 = vadd.xlane.f32.xlu0 %v4498_v57 }
0x14ce   :  { %4496 = vadd.xlane.f32.xlu1 %v4495_v12 }
0x150f   :  { %v4464_v20 = vpop.xlane.xlu0 %4463 }
0x1510   :  { %v4476_v14 = vsub.f32 %v4365_v11, %v4464_v20 }
0x1512   :  { %v4489_v24 = vmul.f32 1.442695, %v4476_v14 }
0x1514   :  { %12493 = vpow2.f32 %v4489_v24 }
0x151a   :  { %v4458_v63 = vpop.xlane.xlu1 %4457 }
0x151b   :  { %v4474_v25 = vsub.f32 %v4286_v17, %v4458_v63 }
0x151d   :  { %v4485_v36 = vmul.f32 1.442695, %v4474_v25 }
0x151e   :  { %v13578_v39 = vpop.eup %12493  ;;  %v4455_v8 = vpop.xlane.xlu1 %4454 }
0x151f   :  { %v4470_v62 = vpop.xlane.xlu0 %4469  ;;  %12495 = vpow2.f32 %v4485_v36  ;;  %v4473_v9 = vsub.f32 %v4281_v29, %v4455_v8  ;;  %v4510_v48 = vsel %vm955_vm3, %v13578_v39, 0.0 }
0x1520   :  { %4511 = vadd.xlane.f32.xlu1 %v4510_v48  ;;  %v4478_v37 = vsub.f32 %v4444_v30, %v4470_v62 }
0x1521   :  { %v4483_v49 = vmul.f32 1.442695, %v4473_v9 }
0x1522   :  { %v4461_v59 = vpop.xlane.xlu1 %4460  ;;  %v4493_v47 = vmul.f32 1.442695, %v4478_v37 }
0x1523   :  { %12497 = vpow2.f32 %v4483_v49  ;;  %v4475_v11 = vsub.f32 %v4360_v2, %v4461_v59  ;;  %v4544_v25 = vpop.permute.xlu0 %4543 }
0x1525   :  { %v4487_v7 = vmul.f32 1.442695, %v4475_v11 }
0x1526   :  { %v4467_v3 = vpop.xlane.xlu1 %4466 }
0x1527   :  { %12499 = vpow2.f32 %v4487_v7  ;;  %v4477_v17 = vsub.f32 %v4439_v38, %v4467_v3 }
0x1528   :  { %12501 = vpow2.f32 %v4493_v47 }
0x1529   :  { %v12496_v10 = vpop.eup %12495  ;;  %v4491_v57 = vmul.f32 1.442695, %v4477_v17 }
0x152a   :  { %v4504_v12 = vsel %vm955_vm3, %v12496_v10, 0.0  ;;  %v4548_v36 = vpop.permute.xlu1 %4547 }
0x152b   :  { %4505 = vadd.xlane.f32.xlu0 %v4504_v12  ;;  %12503 = vpow2.f32 %v4491_v57 }
0x152d   :  { %v12498_v29 = vpop.eup %12497 }
0x152e   :  { %v4501_v20 = vsel %vm955_vm3, %v12498_v29, 0.0 }
0x152f   :  { %4502 = vadd.xlane.f32.xlu1 %v4501_v20 }
0x1531   :  { %v12500_v30 = vpop.eup %12499 }
0x1532   :  { %v4507_v14 = vsel %vm955_vm3, %v12500_v30, 0.0  ;;  %v13585_v2 = vpop.eup %12501 }
0x1533   :  { %4508 = vadd.xlane.f32.xlu0 %v4507_v14  ;;  %v4516_v38 = vsel %vm955_vm3, %v13585_v2, 0.0 }
0x1535   :  { %v12504_v24 = vpop.eup %12503 }
0x1536   :  { %v4513_v63 = vsel %vm955_vm3, %v12504_v24, 0.0 }
0x1537   :  { %4517 = vadd.xlane.f32.xlu0 %v4516_v38 }
0x153b   :  { %4514 = vadd.xlane.f32.xlu0 %v4513_v63 }
0x1540   :  { %4545 = vrot.lane.b32.xlu1 %v13502_v15, %s12791_s13 }
0x1551   :  { %4549 = vrot.lane.b32.xlu0 %v13523_v35, %s12791_s13 }
0x1553   :  { %v4500_v8 = vpop.xlane.xlu0 %4499 }
0x1554   :  { %12505 = vrcp.f32 %v4500_v8 }
0x155b   :  { %v4497_v62 = vpop.xlane.xlu1 %4496 }
0x155c   :  { %12507 = vrcp.f32 %v4497_v62 }
0x155e   :  { %v12506_v9 = vpop.eup %12505 }
0x155f   :  { %v4522_v49 = vmul.f32 %v12506_v9, %v12490_v43 }
0x1566   :  { %v12508_v48 = vpop.eup %12507 }
0x1567   :  { %v4520_v37 = vmul.f32 %v12508_v48, %v12492_v45 }
0x1569   :  { %4559 = vxpose.xlu1.b32.start [1/2] (short) (narrow) %v13564_v32, 8  ;;  %v12131_v59 = vpack.c.bf16 %v4522_v49, %v4520_v37 }
0x156b   :  { %12133 = vmatpush3.bf16.xpose.msk.msra.mxu0 %vm13116_vm5, %v12131_v59 }
0x156c   :  { %12138 = vmatprep.subr.bf16.mxu0 %v12793_v44 }
0x156d   :  { %4560 = vxpose.xlu1.b32.end [2/2] (short) (narrow) %v13572_v56, 8 }
0x156f   :  { %4591 = vxpose.xlu0.b32.start [1/2] (short) (narrow) %v13568_v40, 8 }
0x1571   :  { %4655 = vxpose.xlu1.b32.start [1/2] (short) (narrow) %v4548_v36, 8 }
0x1573   :  { %4592 = vxpose.xlu0.b32.end [2/2] (short) (narrow) %v13574_v61, 8 }
0x1577   :  { %4623 = vxpose.xlu0.b32.start [1/2] (short) (narrow) %v4544_v25, 8 }
0x15ad   :  { %v4512_v15 = vpop.xlane.xlu1 %4511 }
0x15b8   :  { %v4506_v35 = vpop.xlane.xlu0 %4505 }
0x15b9   :  { %12509 = vrcp.f32 %v4506_v35  ;;  %v117_v35 = vld [vmem:[#allocation7 + $0x160] sm:$0xff] }
0x15bc   :  { %v4503_v43 = vpop.xlane.xlu1 %4502 }
0x15bd   :  { %12511 = vrcp.f32 %v4503_v43  ;;  %v118_v43 = vld [vmem:[#allocation7 + $0x168] sm:$0xff] }
0x15c0   :  { %v4546_v32 = vpop.permute.xlu1 %4545  ;;  %v4509_v45 = vpop.xlane.xlu0 %4508 }
0x15c1   :  { %4624 = vxpose.xlu0.b32.end [2/2] (short) (narrow) %v4546_v32, 8  ;;  %12513 = vrcp.f32 %v4509_v45  ;;  %v13630_v32 = vpack.c.bf16 %v118_v43, %v117_v35 }
0x15c2   :  { %12515 = vrcp.f32 %v4512_v15 }
0x15c3   :  { %v12510_v47 = vpop.eup %12509 }
0x15c4   :  { %v4518_v11 = vpop.xlane.xlu0 %4517  ;;  %v4526_v3 = vmul.f32 %v12510_v47, %v12496_v10 }
0x15c7   :  { %v12512_v7 = vpop.eup %12511 }
0x15c8   :  { %v4524_v17 = vmul.f32 %v12512_v7, %v12498_v29  ;;  %v4515_v56 = vpop.xlane.xlu0 %4514 }
0x15c9   :  { %12517 = vrcp.f32 %v4515_v56 }
0x15ca   :  { %v12135_v57 = vpack.c.bf16 %v4526_v3, %v4524_v17  ;;  %12519 = vrcp.f32 %v4518_v11 }
0x15cb   :  { %v12514_v61 = vpop.eup %12513 }
0x15cc   :  { %12137 = vmatpush3.bf16.xpose.msk.msra.mxu1 %vm13116_vm5, %v12135_v57  ;;  %v4550_v40 = vpop.permute.xlu0 %4549  ;;  %v12516_v12 = vpop.eup %12515  ;;  %v4528_v20 = vmul.f32 %v12514_v61, %v12500_v30 }
0x15cd   :  { %4656 = vxpose.xlu1.b32.end [2/2] (short) (narrow) %v4550_v40, 8  ;;  %12142 = vmatprep.subr.bf16.mxu1 %v12793_v44  ;;  %v4530_v14 = vmul.f32 %v12516_v12, %v13578_v39 }
0x15cf   :  { %v12139_v38 = vpack.c.bf16 %v4530_v14, %v4528_v20 }
0x15d3   :  { %v12518_v10 = vpop.eup %12517 }
0x15d4   :  { %v12520_v63 = vpop.eup %12519  ;;  %v4532_v25 = vmul.f32 %v12518_v10, %v12504_v24 }
0x15d5   :  { %v4534_v36 = vmul.f32 %v12520_v63, %v13585_v2 }
0x15d7   :  { %v12143_v39 = vpack.c.bf16 %v4534_v36, %v4532_v25 }
0x15e9   :  { %v13605_v29 = vpop.trf.xlu1 }
0x15ea   :  { %11627 = vmatmul.mubr.msk.f32.vlgmr.msra.gmra.mrb[32].mxu0 %vm955_vm3, %v13605_v29 }
0x15eb   :  { %12141 = vmatpush3.bf16.xpose.msk.msra.mxu0 %vm13116_vm5, %v12139_v38  ;;  %11640 = vmatprep.mubr.msk.f32.mxu0 %vm12794_vm4, %v12795_v27 }
0x15ec   :  { %12148 = vmatprep.subr.msk.bf16.mxu0 %vm12902_vm1, %v13630_v32 }
0x15ef   :  { %v13614_v30 = vpop.trf.xlu0 }
0x15f0   :  { %11634 = vmatmul.mubr.msk.f32.vlgmr.msra.gmra.mrb[22].mxu1 %vm955_vm3, %v13614_v30 }
0x15f1   :  { %12145 = vmatpush3.bf16.xpose.msk.msra.mxu1 %vm13116_vm5, %v12143_v39  ;;  %11647 = vmatprep.mubr.msk.f32.mxu1 %vm12794_vm4, %v12795_v27 }
0x163d   :  { %v13622_v24 = vpop.trf.xlu0 }
0x163e   :  { %11641 = vmatmul.mubr.msk.f32.vlgmr.msra.gmra.mrb[34].mxu0 %vm955_vm3, %v13622_v24 }
0x163f   :  { %12151 = vmatpush3.bf16.xpose.msk.msra.mxu0 %vm12902_vm1, %v13630_v32 }
0x1649   :  { %v13626_v8 = vpop.trf.xlu1 }
0x164a   :  { %11648 = vmatmul.mubr.msk.f32.vlgmr.msra.gmra.mrb[24].mxu1 %vm955_vm3, %v13626_v8 }
0x16bd   :  { %v4762_v2 = vpop.f32.mrb[32].mxu0 }
0x16be   :  { %5003 = vxpose.xlu0.b32.start.end [1/1] (short) (narrow) %v4762_v2, 16  ;;  %v11628_v62 = vpop.f32.mrb[33].mxu0 }
0x16c3   :  { %v4841_v9 = vpop.f32.mrb[22].mxu1 }
0x16c4   :  { %v11635_v48 = vpop.f32.mrb[23].mxu1  ;;  %5035 = vxpose.xlu1.b32.start.end [1/1] (short) (narrow) %v4841_v9, 16 }
0x1711   :  { %v4920_v49 = vpop.f32.mrb[34].mxu0 }
0x1712   :  { %5067 = vxpose.xlu0.b32.start.end [1/1] (short) (narrow) %v4920_v49, 16  ;;  %v11642_v37 = vpop.f32.mrb[35].mxu0 }
0x171d   :  { %v4999_v59 = vpop.f32.mrb[24].mxu1 }
0x171e   :  { %5099 = vxpose.xlu1.b32.start.end [1/1] (short) (narrow) %v4999_v59, 16  ;;  %v11649_v15 = vpop.f32.mrb[25].mxu1 }
0x173e   :  { %v5019_v45 = vpop.trf.xlu0 }
0x1742   :  { %v5020_v47 = vpop.trf.xlu0 }
0x1744   :  { %v5051_v11 = vpop.trf.xlu1 }
0x1748   :  { %v5052_v7 = vpop.trf.xlu1 }
0x1792   :  { %v5083_v3 = vpop.trf.xlu0 }
0x1793   :  { %v5131_v17 = vcombine.low %v5019_v45, %v5083_v3  ;;  %v5132_v56 = vcombine.high %v5019_v45, %v5083_v3 }
0x1795   :  { %v5139_v20 = vrot.slane %v5131_v17, %v13150_v51  ;;  %v5146_v14 = vrot.slane %v5132_v56, %v13150_v51 }
0x1796   :  { %v5084_v40 = vpop.trf.xlu0 }
0x1797   :  { %v5199_v63 = vcombine.low %v5020_v47, %v5084_v40  ;;  %v5200_v25 = vcombine.high %v5020_v47, %v5084_v40 }
0x1799   :  { %v5207_v43 = vrot.slane %v5199_v63, %v13150_v51  ;;  %v5214_v45 = vrot.slane %v5200_v25, %v13150_v51 }
0x179e   :  { %v5115_v57 = vpop.trf.xlu1 }
0x179f   :  { %v5147_v61 = vcombine.low %v5051_v11, %v5115_v57  ;;  %v5148_v12 = vcombine.high %v5051_v11, %v5115_v57 }
0x17a1   :  { %v5155_v10 = vrot.slane %v5147_v61, %v13150_v51  ;;  %v5162_v38 = vrot.slane %v5148_v12, %v13150_v51 }
0x17a2   :  { %v5116_v36 = vpop.trf.xlu1 }
0x17a3   :  { %v5163_v39 = vcombine.low %v5139_v20, %v5155_v10  ;;  %v5164_v2 = vcombine.high %v5139_v20, %v5155_v10  ;;  %v5179_v62 = vcombine.low %v5146_v14, %v5162_v38  ;;  %v5180_v9 = vcombine.high %v5146_v14, %v5162_v38 }
0x17a4   :  { %v5215_v48 = vcombine.low %v5052_v7, %v5116_v36  ;;  %v5216_v49 = vcombine.high %v5052_v7, %v5116_v36 }
0x17a5   :  { %v5171_v37 = vrot.slane %v5163_v39, %v13152_v58  ;;  %v5178_v59 = vrot.slane %v5164_v2, %v13152_v58  ;;  %v5187_v15 = vrot.slane %v5179_v62, %v13152_v58  ;;  %v5194_v35 = vrot.slane %v5180_v9, %v13152_v58 }
0x17a6   :  { %v5223_v11 = vrot.slane %v5215_v48, %v13150_v51  ;;  %v5230_v47 = vrot.slane %v5216_v49, %v13150_v51 }
0x17a7   :  { %v5267_v3 = vcombine.low %v5171_v37, %v5178_v59  ;;  %v10935_v17 = vcombine.high %v5171_v37, %v5178_v59  ;;  %v5283_v56 = vcombine.low %v5187_v15, %v5194_v35  ;;  %v10936_v7 = vcombine.high %v5187_v15, %v5194_v35 }
0x17a8   :  { %v5231_v57 = vcombine.low %v5207_v43, %v5223_v11  ;;  %v5232_v40 = vcombine.high %v5207_v43, %v5223_v11  ;;  %v5247_v61 = vcombine.low %v5214_v45, %v5230_v47  ;;  %v5248_v12 = vcombine.high %v5214_v45, %v5230_v47 }
0x17a9   :  { %v5274_v20 = vrot.slane %v5267_v3, %v13150_v51  ;;  %v5282_v14 = vrot.slane %v10935_v17, %v13150_v51  ;;  %v5290_v10 = vrot.slane %v5283_v56, %v13150_v51  ;;  %v5298_v38 = vrot.slane %v10936_v7, %v13150_v51  ;;  %v119_v7 = vld [vmem:[#allocation7 + $0x170] sm:$0xff] }
0x17aa   :  { %v5239_v63 = vrot.slane %v5231_v57, %v13152_v58  ;;  %v5246_v25 = vrot.slane %v5232_v40, %v13152_v58  ;;  %v5255_v36 = vrot.slane %v5247_v61, %v13152_v58  ;;  %v5262_v39 = vrot.slane %v5248_v12, %v13152_v58  ;;  %v120_v57 = vld [vmem:[#allocation7 + $0x178] sm:$0xff] }
0x17ab   :  { %v5300_v2 = vcombine.high %v5274_v20, %v5282_v14  ;;  %v5316_v62 = vcombine.high %v5290_v10, %v5298_v38  ;;  %v5299_v9 = vcombine.low %v5274_v20, %v5282_v14  ;;  %v5315_v48 = vcombine.low %v5290_v10, %v5298_v38 }
0x17ac   :  { %v5335_v49 = vcombine.low %v5239_v63, %v5246_v25  ;;  %v10937_v37 = vcombine.high %v5239_v63, %v5246_v25  ;;  %v5351_v59 = vcombine.low %v5255_v36, %v5262_v39  ;;  %v10938_v15 = vcombine.high %v5255_v36, %v5262_v39 }
0x17ad   :  { %v5314_v35 = vrot.slane %v5300_v2, %v13152_v58  ;;  %v5330_v43 = vrot.slane %v5316_v62, %v13152_v58  ;;  %v5307_v45 = vrot.slane %v5299_v9, %v13152_v58  ;;  %v5323_v11 = vrot.slane %v5315_v48, %v13152_v58 }
0x17ae   :  { %v5342_v47 = vrot.slane %v5335_v49, %v13150_v51  ;;  %v5350_v3 = vrot.slane %v10937_v37, %v13150_v51  ;;  %v5358_v17 = vrot.slane %v5351_v59, %v13150_v51  ;;  %v5366_v56 = vrot.slane %v10938_v15, %v13150_v51 }
0x17af   :  { %v5333_v40 = vcombine.low %v5314_v35, %v5330_v43  ;;  %v5332_v61 = vcombine.high %v5307_v45, %v5323_v11  ;;  %v5331_v12 = vcombine.low %v5307_v45, %v5323_v11  ;;  %v13668_v63 = vpack.c.bf16 %v120_v57, %v119_v7 }
0x17b0   :  { %v5367_v20 = vcombine.low %v5342_v47, %v5350_v3  ;;  %v5383_v14 = vcombine.low %v5358_v17, %v5366_v56  ;;  %v5368_v10 = vcombine.high %v5342_v47, %v5350_v3  ;;  %v5384_v38 = vcombine.high %v5358_v17, %v5366_v56 }
0x17b1   :  { %5413 = vrot.lane.b32.xlu1 %v5333_v40, %s12798_s15  ;;  %5405 = vrot.lane.b32.xlu0 %v5332_v61, %s12785_s28  ;;  %v5334_v39 = vcombine.high %v5314_v35, %v5330_v43  ;;  %v10797_v40 = vld [vmem:[#allocation8 + $0x37] ss:$0 sm:$0xff] }
0x17b2   :  { %v5375_v25 = vrot.slane %v5367_v20, %v13152_v58  ;;  %v5391_v36 = vrot.slane %v5383_v14, %v13152_v58  ;;  %12154 = vmatprep.subr.msk.bf16.mxu0 %vm12902_vm1, %v13668_v63  ;;  %v5382_v62 = vrot.slane %v5368_v10, %v13152_v58  ;;  %v5398_v9 = vrot.slane %v5384_v38, %v13152_v58 }
0x17b3   :  { %12157 = vmatpush3.bf16.xpose.msk.msra.mxu0 %vm12902_vm1, %v13668_v63 }
0x17b4   :  { %v5400_v2 = vcombine.high %v5375_v25, %v5391_v36  ;;  %v5399_v48 = vcombine.low %v5375_v25, %v5391_v36  ;;  %v5401_v49 = vcombine.low %v5382_v62, %v5398_v9  ;;  %v5402_v37 = vcombine.high %v5382_v62, %v5398_v9 }
0x17b5   :  { %5421 = vrot.lane.b32.xlu0 %v5334_v39, %s12799_s16  ;;  %v121_v39 = vld [vmem:[#allocation7 + $0x180] sm:$0xff] }
0x17b6   :  { %5407 = vrot.lane.b32.xlu1 %v5400_v2, %s12785_s28  ;;  %v122_v2 = vld [vmem:[#allocation7 + $0x188] sm:$0xff] }
0x17b7   :  { %v13696_v62 = vpack.c.bf16 %v122_v2, %v121_v39 }
0x17b9   :  { %12160 = vmatprep.subr.msk.bf16.mxu1 %vm12902_vm1, %v13696_v62 }
0x17ba   :  { %5415 = vrot.lane.b32.xlu1 %v5401_v49, %s12798_s15  ;;  %12163 = vmatpush3.bf16.xpose.msk.msra.mxu1 %vm12902_vm1, %v13696_v62 }
0x17be   :  { %5423 = vrot.lane.b32.xlu1 %v5402_v37, %s12799_s16 }
0x1823   :  { %v5414_v59 = vpop.permute.xlu1 %5413  ;;  %v5406_v15 = vpop.permute.xlu0 %5405 }
0x1824   :  { %v5427_v35 = vsel %vm638_vm2, %v5331_v12, %v5406_v15 }
0x1825   :  { %v5429_v43 = vsel %vm955_vm3, %v5427_v35, %v5414_v59 }
0x1827   :  { %v5422_v45 = vpop.permute.xlu0 %5421 }
0x1828   :  { %v5408_v11 = vpop.permute.xlu1 %5407  ;;  %v5431_v47 = vsel %vm1940_vm6, %v5429_v43, %v5422_v45  ;;  %v123_v45 = vld [vmem:[#allocation7 + $0x190] sm:$0xff] }
0x1829   :  { %11658 = vmatprep.mubr.msk.f32.mxu0 %vm233_vm0, %v5431_v47  ;;  %v5428_v17 = vsel %vm638_vm2, %v5399_v48, %v5408_v11  ;;  %v124_v11 = vld [vmem:[#allocation7 + $0x198] sm:$0xff] }
0x182a   :  { %v13706_v47 = vpack.c.bf16 %v124_v11, %v123_v45 }
0x182c   :  { %v5416_v3 = vpop.permute.xlu1 %5415  ;;  %12166 = vmatprep.subr.msk.bf16.mxu1 %vm12902_vm1, %v13706_v47 }
0x182d   :  { %v5430_v56 = vsel %vm955_vm3, %v5428_v17, %v5416_v3  ;;  %12169 = vmatpush3.bf16.xpose.msk.msra.mxu1 %vm12902_vm1, %v13706_v47  ;;  %v125_v3 = vld [vmem:[#allocation7 + $0x1a0] sm:$0xff]  ;;  %v126_v17 = vld [vmem:[#allocation7 + $0x1a8] sm:$0xff] }
0x1830   :  { %v5424_v7 = vpop.permute.xlu1 %5423 }
0x1831   :  { %v5432_v57 = vsel %vm1940_vm6, %v5430_v56, %v5424_v7  ;;  %v13714_v56 = vpack.c.bf16 %v126_v17, %v125_v3  ;;  %v127_v7 = vld [vmem:[#allocation7 + $0x1b0] sm:$0xff] }
0x1832   :  { %11659 = vmatmul.mubr.msk.f32.vlgmr.msra.gmra.mrb[36].mxu0 %vm233_vm0, %v5432_v57  ;;  %v128_v57 = vld [vmem:[#allocation7 + $0x1b8] sm:$0xff] }
0x1833   :  { %12172 = vmatprep.subr.msk.bf16.mxu1 %vm12902_vm1, %v13714_v56 }
0x1835   :  { %12175 = vmatpush3.bf16.xpose.msk.msra.mxu1 %vm12902_vm1, %v13714_v56 }
0x1905   :  { %v11660_v61 = vpop.f32.mrb[36].mxu0 }
0x1906   :  { %v5523_v12 = vadd.f32 %v11660_v61, %v10797_v40  ;;  %v5517_v20 = vpop.f32.mrb[37].mxu0  ;;  %v129_v61 = vld [vmem:[#allocation7 + $0x1c0] sm:$0xff] }
0x1907   :  { %v5518_v14 = vadd.f32 %v10797_v40, %v5517_v20  ;;  %v13722_v40 = vpack.c.bf16 %v128_v57, %v127_v7  ;;  %v131_v20 = vld [vmem:[#allocation7 + $0x1d0] sm:$0xff]  ;;  %v10799_v57 = vld [vmem:[#allocation8 + $0x38] ss:$0 sm:$0xff] }
0x1908   :  { %v5527_v10 = vadd.f32 %v5523_v12, %v13498_v13  ;;  %v130_v12 = vld [vmem:[#allocation7 + $0x1c8] sm:$0xff] }
0x1909   :  { %v5526_v38 = vadd.f32 %v5518_v14, %v13494_v21  ;;  %12178 = vmatprep.subr.msk.bf16.mxu1 %vm12902_vm1, %v13722_v40  ;;  %v13730_v14 = vpack.c.bf16 %v130_v12, %v129_v61 }
0x190a   :  { %v5531_v25 = vsel %vm233_vm0, %v5527_v10, 0.0  ;;  %12181 = vmatpush3.bf16.xpose.msk.msra.mxu1 %vm12902_vm1, %v13722_v40 }
0x190b   :  { %5532 = vadd.xlane.f32.xlu1 %v5531_v25  ;;  %v5528_v36 = vsel %vm233_vm0, %v5526_v38, 0.0  ;;  %12184 = vmatprep.subr.msk.bf16.mxu0 %vm13734_vm8, %v13730_v14 }
0x190c   :  { %5529 = vadd.xlane.f32.xlu0 %v5528_v36  ;;  %12187 = vmatpush3.bf16.xpose.msk.msra.mxu0 %vm13734_vm8, %v13730_v14 }
0x1998   :  { %v5533_v13 = vpop.xlane.xlu1 %5532 }
0x1999   :  { %v5535_v21 = vmul.f32 0.03125, %v5533_v13  ;;  %v5530_v9 = vpop.xlane.xlu0 %5529 }
0x199a   :  { %v5534_v48 = vmul.f32 0.03125, %v5530_v9 }
0x199b   :  { %v5537_v49 = vsub.f32 %v5527_v10, %v5535_v21 }
0x199c   :  { %v5536_v37 = vsub.f32 %v5526_v38, %v5534_v48  ;;  %v132_v38 = vld [vmem:[#allocation7 + $0x1d8] sm:$0xff] }
0x199d   :  { %v5539_v35 = vmul.f32 %v5537_v49, %v5537_v49  ;;  %v13738_v25 = vpack.c.bf16 %v132_v38, %v131_v20 }
0x199e   :  { %v5538_v59 = vmul.f32 %v5536_v37, %v5536_v37 }
0x199f   :  { %v5543_v43 = vsel %vm233_vm0, %v5539_v35, 0.0  ;;  %12190 = vmatprep.subr.msk.bf16.mxu0 %vm13734_vm8, %v13738_v25  ;;  %v10806_v35 = vld [vmem:[#allocation8 + $0x3f] ss:$0 sm:$0xff] }
0x19a0   :  { %v5540_v15 = vsel %vm233_vm0, %v5538_v59, 0.0  ;;  %12193 = vmatpush3.bf16.xpose.msk.msra.mxu0 %vm13734_vm8, %v13738_v25  ;;  %v10805_v59 = vld [vmem:[#allocation8 + $0x3e] ss:$0 sm:$0xff] }
0x19a1   :  { %5541 = vadd.xlane.f32.xlu0 %v5540_v15  ;;  %12196 = vmatprep.subr.msk.bf16.mxu0 %vm12902_vm1, %v12906_v4 }
0x19a5   :  { %5544 = vadd.xlane.f32.xlu0 %v5543_v43 }
0x1a2e   :  { %v5542_v36 = vpop.xlane.xlu0 %5541 }
0x1a2f   :  { %v5546_v39 = vmul.f32 0.03125, %v5542_v36 }
0x1a31   :  { %v5548_v2 = vadd.f32 1e-05, %v5546_v39 }
0x1a32   :  { %v5545_v13 = vpop.xlane.xlu0 %5544 }
0x1a33   :  { %12521 = vrsqrt.f32 %v5548_v2  ;;  %v5547_v21 = vmul.f32 0.03125, %v5545_v13 }
0x1a35   :  { %v5549_v9 = vadd.f32 1e-05, %v5547_v21 }
0x1a37   :  { %12523 = vrsqrt.f32 %v5549_v9 }
0x1a3d   :  { %v12522_v48 = vpop.eup %12521 }
0x1a3e   :  { %v5552_v15 = vmul.f32 %v12522_v48, %v5536_v37 }
0x1a40   :  { %v5554_v43 = vmul.f32 %v10805_v59, %v5552_v15 }
0x1a41   :  { %v12524_v45 = vpop.eup %12523 }
0x1a42   :  { %v5553_v11 = vmul.f32 %v12524_v45, %v5537_v49  ;;  %v5556_v3 = vadd.f32 %v10806_v35, %v5554_v43 }
0x1a44   :  { %11677 = vmatprep.mubr.msk.f32.mxu1 %vm233_vm0, %v5556_v3  ;;  %v5555_v17 = vmul.f32 %v10805_v59, %v5553_v11 }
0x1a46   :  { %v5557_v7 = vadd.f32 %v10806_v35, %v5555_v17 }
0x1a48   :  { %11678 = vmatmul.mubr.msk.f32.vlgmr.msra.gmra.mrb[26].mxu1 %vm233_vm0, %v5557_v7 }
0x1b1b   :  { %v11679_v61 = vpop.f32.mrb[26].mxu1 }
0x1b1c   :  { %v5660_v12 = vadd.f32 %v11679_v61, %v10799_v57  ;;  %v5654_v20 = vpop.f32.mrb[27].mxu1 }
0x1b1d   :  { %v5655_v38 = vadd.f32 %v10799_v57, %v5654_v20 }
0x1b1e   :  { %v5664_v39 = vmax.f32 %v5660_v12, 0.0 }
0x1b1f   :  { %v5663_v36 = vmax.f32 %v5655_v38, 0.0  ;;  %v10807_v38 = vld [vmem:[#allocation8 + $0x40] ss:$0 sm:$0xff] }
0x1b21   :  { %11688 = vmatprep.mubr.msk.f32.mxu0 %vm5665_vm7, %v5663_v36 }
0x1b22   :  { %11689 = vmatmul.mubr.msk.f32.vlgmr.msra.gmra.mrb[38].mxu0 %vm5665_vm7, %v5664_v39 }
0x1b23   :  { %12199 = vmatpush3.bf16.xpose.msk.msra.mxu0 %vm12902_vm1, %v12906_v4  ;;  %v10800_v4 = vld [vmem:[#allocation8 + $0x39] ss:$0 sm:$0xff] }
0x1b24   :  { %12202 = vmatprep.subr.msk.bf16.mxu0 %vm12902_vm1, %v12908_v6 }
0x1b2b   :  { %12205 = vmatpush3.bf16.xpose.msk.msra.mxu0 %vm12902_vm1, %v12908_v6 }
0x1b2c   :  { %12208 = vmatprep.subr.msk.bf16.mxu0 %vm12902_vm1, %v12925_v16 }
0x1b33   :  { %12211 = vmatpush3.bf16.xpose.msk.msra.mxu0 %vm12902_vm1, %v12925_v16 }
0x1b34   :  { %12214 = vmatprep.subr.msk.bf16.mxu0 %vm12902_vm1, %v12937_v22 }
0x1b3b   :  { %12217 = vmatpush3.bf16.xpose.msk.msra.mxu0 %vm12902_vm1, %v12937_v22 }
0x1b3c   :  { %12220 = vmatprep.subr.msk.bf16.mxu0 %vm12902_vm1, %v12949_v28 }
0x1b43   :  { %12223 = vmatpush3.bf16.xpose.msk.msra.mxu0 %vm12902_vm1, %v12949_v28 }
0x1b44   :  { %12226 = vmatprep.subr.msk.bf16.mxu0 %vm12902_vm1, %v12961_v31 }
0x1b4b   :  { %12229 = vmatpush3.bf16.xpose.msk.msra.mxu0 %vm12902_vm1, %v12961_v31 }
0x1b4c   :  { %12248 = vmatprep.subr.msk.bf16.mxu0 %vm12902_vm1, %v13142_v33 }
0x1bf5   :  { %v11690_v6 = vpop.f32.mrb[38].mxu0 }
0x1bf6   :  { %v5756_v16 = vadd.f32 %v11690_v6, %v10800_v4  ;;  %v5750_v22 = vpop.f32.mrb[39].mxu0  ;;  %v10808_v6 = vld [vmem:[#allocation8 + $0x41] ss:$0 sm:$0xff] }
0x1bf7   :  { %v5751_v49 = vadd.f32 %v10800_v4, %v5750_v22 }
0x1bf8   :  { %v5760_v37 = vadd.f32 %v5756_v16, %v5557_v7 }
0x1bf9   :  { %v5759_v2 = vadd.f32 %v5751_v49, %v5556_v3 }
0x1bfa   :  { %v5764_v28 = vsel %vm233_vm0, %v5760_v37, 0.0 }
0x1bfb   :  { %5765 = vadd.xlane.f32.xlu0 %v5764_v28  ;;  %v5761_v13 = vsel %vm233_vm0, %v5759_v2, 0.0  ;;  %v12641_v28 = vld [vmem:[#allocation8 + $0x30] ss:$0 sm:$0xff] }
0x1bfc   :  { %5762 = vadd.xlane.f32.xlu1 %v5761_v13 }
0x1c88   :  { %v5766_v21 = vpop.xlane.xlu0 %5765 }
0x1c89   :  { %v5768_v9 = vmul.f32 0.03125, %v5766_v21  ;;  %v5763_v31 = vpop.xlane.xlu1 %5762 }
0x1c8a   :  { %v5767_v48 = vmul.f32 0.03125, %v5763_v31 }
0x1c8b   :  { %v5770_v59 = vsub.f32 %v5760_v37, %v5768_v9 }
0x1c8c   :  { %v5769_v15 = vsub.f32 %v5759_v2, %v5767_v48 }
0x1c8d   :  { %v5772_v35 = vmul.f32 %v5770_v59, %v5770_v59 }
0x1c8e   :  { %v5771_v43 = vmul.f32 %v5769_v15, %v5769_v15 }
0x1c8f   :  { %v5776_v45 = vsel %vm233_vm0, %v5772_v35, 0.0 }
0x1c90   :  { %5777 = vadd.xlane.f32.xlu0 %v5776_v45  ;;  %v5773_v11 = vsel %vm233_vm0, %v5771_v43, 0.0 }
0x1c91   :  { %5774 = vadd.xlane.f32.xlu1 %v5773_v11 }
0x1d1d   :  { %v5778_v3 = vpop.xlane.xlu0 %5777 }
0x1d1e   :  { %v5780_v17 = vmul.f32 0.03125, %v5778_v3  ;;  %v5775_v7 = vpop.xlane.xlu1 %5774 }
0x1d1f   :  { %v5779_v57 = vmul.f32 0.03125, %v5775_v7 }
0x1d20   :  { %v5782_v61 = vadd.f32 1e-05, %v5780_v17 }
0x1d21   :  { %v5781_v12 = vadd.f32 1e-05, %v5779_v57 }
0x1d22   :  { %12525 = vrsqrt.f32 %v5782_v61 }
0x1d23   :  { %12527 = vrsqrt.f32 %v5781_v12 }
0x1d2c   :  { %v12526_v20 = vpop.eup %12525 }
0x1d2d   :  { %v12528_v36 = vpop.eup %12527  ;;  %v5786_v39 = vmul.f32 %v12526_v20, %v5770_v59 }
0x1d2e   :  { %v5785_v4 = vmul.f32 %v12528_v36, %v5769_v15 }
0x1d2f   :  { %v5788_v16 = vmul.f32 %v10807_v38, %v5786_v39 }
0x1d30   :  { %v5787_v22 = vmul.f32 %v10807_v38, %v5785_v4 }
0x1d31   :  { %v13801_v37 = vadd.f32 %v10808_v6, %v5788_v16 }
0x1d32   :  { %v13799_v49 = vadd.f32 %v10808_v6, %v5787_v22 }
0x1d34   :  { %11715 = vmatprep.mubr.msk.f32.mxu0 %vm233_vm0, %v13799_v49 }
0x1d35   :  { %11716 = vmatmul.mubr.msk.f32.vlgmr.msra.gmra.mrb[40].mxu0 %vm233_vm0, %v13801_v37 }
0x1d36   :  { %12251 = vmatpush3.bf16.xpose.msk.msra.mxu0 %vm12902_vm1, %v13142_v33 }
0x1d37   :  { %12254 = vmatprep.subr.msk.bf16.mxu0 %vm12902_vm1, %v13184_v19 }
0x1d3e   :  { %12257 = vmatpush3.bf16.xpose.msk.msra.mxu0 %vm12902_vm1, %v13184_v19 }
0x1d3f   :  { %12284 = vmatprep.subr.msk.bf16.mxu0 %vm12902_vm1, %v13230_v23 }
0x1e08   :  { %v11717_v2 = vpop.f32.mrb[40].mxu0 }
0x1e09   :  { %v5869_v13 = vadd.f32 %v12641_v28, %v11717_v2  ;;  %v5863_v21 = vpop.f32.mrb[41].mxu0 }
0x1e0a   :  { %v5864_v9 = vadd.f32 %v12641_v28, %v5863_v21  ;;  %v13870_v21 = vld [vmem:[#allocation8 + $0x18] sm:$0xff] }
0x1e0b   :  { %5892 = vrot.lane.b32.xlu0 %v5869_v13, %s12789_s12  ;;  %v5873_v43 = vmul.f32 0.35355338, %v5869_v13 }
0x1e0c   :  { %5890 = vrot.lane.b32.xlu1 %v5864_v9, %s12789_s12  ;;  %v5872_v33 = vmul.f32 0.35355338, %v5864_v9 }
0x1e0e   :  { %11720 = vmatprep.mubr.msk.f32.mxu1 %vm638_vm2, %v5872_v33 }
0x1e0f   :  { %5898 = vrot.lane.b32.xlu0 %v5864_v9, %s12790_s1 }
0x1e10   :  { %5894 = vrot.lane.b32.xlu1 %v5864_v9, %s12788_s3 }
0x1e13   :  { %5902 = vrot.lane.b32.xlu0 %v5864_v9, %s12791_s13 }
0x1e14   :  { %5896 = vrot.lane.b32.xlu1 %v5869_v13, %s12788_s3 }
0x1e18   :  { %5900 = vrot.lane.b32.xlu1 %v5869_v13, %s12790_s1 }
0x1e1c   :  { %5904 = vrot.lane.b32.xlu1 %v5869_v13, %s12791_s13 }
0x1e7d   :  { %v13828_v19 = vpop.permute.xlu0 %5892 }
0x1e7e   :  { %5908 = vrot.lane.b32.xlu1 %v13828_v19, %s12791_s13  ;;  %v13832_v31 = vpop.permute.xlu1 %5890 }
0x1e7f   :  { %5906 = vrot.lane.b32.xlu0 %v13832_v31, %s12791_s13 }
0x1e81   :  { %v13845_v15 = vpop.permute.xlu0 %5898 }
0x1e82   :  { %v13836_v48 = vpop.permute.xlu1 %5894 }
0x1e83   :  { %5910 = vrot.lane.b32.xlu0 %v13836_v48, %s12791_s13 }
0x1e85   :  { %v5903_v45 = vpop.permute.xlu0 %5902 }
0x1e86   :  { %v13840_v59 = vpop.permute.xlu1 %5896 }
0x1e87   :  { %5912 = vrot.lane.b32.xlu1 %v13840_v59, %s12791_s13  ;;  %5876 = vrot.lane.b32.xlu0 %v5872_v33, %s12789_s12 }
0x1e8a   :  { %v13847_v35 = vpop.permute.xlu1 %5900 }
0x1e8b   :  { %5916 = vrot.lane.b32.xlu1 %v13847_v35, %s12791_s13  ;;  %5914 = vrot.lane.b32.xlu0 %v13845_v15, %s12791_s13 }
0x1e8e   :  { %v5905_v11 = vpop.permute.xlu1 %5904 }
0x1e8f   :  { %5878 = vrot.lane.b32.xlu1 %v5873_v43, %s12789_s12  ;;  %5880 = vrot.lane.b32.xlu0 %v5872_v33, %s12788_s3 }
0x1e93   :  { %5882 = vrot.lane.b32.xlu1 %v5873_v43, %s12788_s3 }
0x1e97   :  { %5884 = vrot.lane.b32.xlu1 %v5872_v33, %s12790_s1 }
0x1e9b   :  { %5886 = vrot.lane.b32.xlu1 %v5873_v43, %s12790_s1 }
0x1ead   :  { %5926 = vxpose.xlu0.b32.start [1/2] (short) (narrow) %v5903_v45, 8 }
0x1eb1   :  { %5927 = vxpose.xlu0.b32.end [2/2] (short) (narrow) %v5905_v11, 8 }
0x1ef0   :  { %v5909_v17 = vpop.permute.xlu1 %5908 }
0x1ef1   :  { %v5907_v3 = vpop.permute.xlu0 %5906 }
0x1ef2   :  { %5958 = vxpose.xlu1.b32.start [1/2] (short) (narrow) %v5907_v3, 8 }
0x1ef5   :  { %v5911_v7 = vpop.permute.xlu0 %5910 }
0x1ef6   :  { %5959 = vxpose.xlu1.b32.end [2/2] (short) (narrow) %v5909_v17, 8  ;;  %5990 = vxpose.xlu0.b32.start [1/2] (short) (narrow) %v5911_v7, 8 }
0x1ef9   :  { %v5913_v57 = vpop.permute.xlu1 %5912  ;;  %v5877_v61 = vpop.permute.xlu0 %5876 }
0x1efa   :  { %5991 = vxpose.xlu0.b32.end [2/2] (short) (narrow) %v5913_v57, 8 }
0x1efd   :  { %v5915_v12 = vpop.permute.xlu0 %5914  ;;  %v5917_v20 = vpop.permute.xlu1 %5916 }
0x1efe   :  { %6022 = vxpose.xlu0.b32.start [1/2] (short) (narrow) %v5915_v12, 8 }
0x1f01   :  { %v5881_v38 = vpop.permute.xlu0 %5880  ;;  %v5879_v39 = vpop.permute.xlu1 %5878 }
0x1f02   :  { %6023 = vxpose.xlu0.b32.end [2/2] (short) (narrow) %v5917_v20, 8 }
0x1f05   :  { %v5883_v4 = vpop.permute.xlu1 %5882 }
0x1f09   :  { %v5885_v6 = vpop.permute.xlu1 %5884 }
0x1f0d   :  { %v5887_v16 = vpop.permute.xlu1 %5886 }
0x1f14   :  { %6458 = vrot.lane.b32.xlu1 %v5864_v9, %s12792_s14 }
0x1f2b   :  { %6460 = vrot.lane.b32.xlu0 %v5869_v13, %s12792_s14 }
0x1f2d   :  { %v5942_v36 = vpop.trf.xlu0 }
0x1f2e   :  { %11718 = vmatprep.subr.mxu1 %v5942_v36 }
0x1f2f   :  { %11719 = vmatpush3.msra.mxu1 %v5942_v36 }
0x1f30   :  { %11721 = vmatmul.mubr.msk.f32.vlgmr.msra.gmra.mrb[28].mxu1 %vm638_vm2, %v5873_v43  ;;  %v13873_v43 = vld [vmem:[#allocation8 + $0x10] sm:$0xff] }
0x1f31   :  { %11725 = vmatprep.mubr.msk.f32.mxu1 %vm638_vm2, %v5877_v61 }
0x1f72   :  { %v5974_v22 = vpop.trf.xlu1 }
0x1f73   :  { %11723 = vmatprep.subr.mxu1 %v5974_v22 }
0x1f74   :  { %11724 = vmatpush3.msra.mxu1 %v5974_v22 }
0x1f75   :  { %11726 = vmatmul.mubr.msk.f32.vlgmr.msra.gmra.mrb[30].mxu1 %vm638_vm2, %v5879_v39 }
0x1f76   :  { %v6006_v2 = vpop.trf.xlu0  ;;  %11730 = vmatprep.mubr.msk.f32.mxu1 %vm638_vm2, %v5881_v38 }
0x1f77   :  { %11728 = vmatprep.subr.mxu1 %v6006_v2 }
0x1f78   :  { %11729 = vmatpush3.msra.mxu1 %v6006_v2 }
0x1f79   :  { %11731 = vmatmul.mubr.msk.f32.vlgmr.msra.gmra.mrb[32].mxu1 %vm638_vm2, %v5883_v4 }
0x1f7a   :  { %11735 = vmatprep.mubr.msk.f32.mxu1 %vm638_vm2, %v5885_v6 }
0x1f7e   :  { %v6038_v28 = vpop.trf.xlu0 }
0x1f7f   :  { %11733 = vmatprep.subr.mxu1 %v6038_v28 }
0x1f80   :  { %11734 = vmatpush3.msra.mxu1 %v6038_v28 }
0x1f81   :  { %11736 = vmatmul.mubr.msk.f32.vlgmr.msra.gmra.mrb[34].mxu1 %vm638_vm2, %v5887_v16  ;;  %12230 = vmatprep.subr.bf16.mxu1 %v12793_v44 }
0x1f82   :  { %11742 = vmatprep.mubr.msk.f32.mxu1 %vm12794_vm4, %v12795_v27 }
0x2003   :  { %v11722_v13 = vpop.f32.mrb[28].mxu1 }
0x2004   :  { %v6130_v9 = vadd.f32 %v13870_v21, %v11722_v13  ;;  %v6124_v33 = vpop.f32.mrb[29].mxu1 }
0x2005   :  { %v6125_v45 = vadd.f32 %v13873_v43, %v6124_v33 }
0x2006   :  { %v6373_v11 = vsel %vm955_vm3, %v6130_v9, -inf }
0x2007   :  { %6374 = vmax.xlane.f32.xlu1 %v6373_v11  ;;  %v6370_v3 = vsel %vm955_vm3, %v6125_v45, -inf }
0x2008   :  { %6371 = vmax.xlane.f32.xlu0 %v6370_v3  ;;  %v13902_v3 = vpop.permute.xlu0 %6460 }
0x2048   :  { %v11727_v17 = vpop.f32.mrb[30].mxu1 }
0x2049   :  { %v6209_v7 = vadd.f32 %v13870_v21, %v11727_v17  ;;  %v6203_v57 = vpop.f32.mrb[31].mxu1 }
0x204a   :  { %v6204_v61 = vadd.f32 %v13873_v43, %v6203_v57 }
0x204b   :  { %v6379_v12 = vsel %vm955_vm3, %v6209_v7, -inf }
0x204c   :  { %v11732_v20 = vpop.f32.mrb[32].mxu1  ;;  %6380 = vmax.xlane.f32.xlu0 %v6379_v12  ;;  %v6376_v38 = vsel %vm955_vm3, %v6204_v61, -inf }
0x204d   :  { %v6288_v36 = vadd.f32 %v13870_v21, %v11732_v20  ;;  %v6282_v39 = vpop.f32.mrb[33].mxu1  ;;  %6377 = vmax.xlane.f32.xlu1 %v6376_v38 }
0x204e   :  { %v6283_v4 = vadd.f32 %v13873_v43, %v6282_v39 }
0x204f   :  { %v6385_v6 = vsel %vm955_vm3, %v6288_v36, -inf }
0x2050   :  { %6386 = vmax.xlane.f32.xlu0 %v6385_v6  ;;  %v6382_v16 = vsel %vm955_vm3, %v6283_v4, -inf }
0x2051   :  { %6383 = vmax.xlane.f32.xlu1 %v6382_v16 }
0x2054   :  { %v11737_v22 = vpop.f32.mrb[34].mxu1 }
0x2055   :  { %v6361_v2 = vpop.f32.mrb[35].mxu1  ;;  %v6367_v28 = vadd.f32 %v13870_v21, %v11737_v22 }
0x2056   :  { %v6362_v13 = vadd.f32 %v13873_v43, %v6361_v2 }
0x2057   :  { %v6391_v33 = vsel %vm955_vm3, %v6367_v28, -inf }
0x2058   :  { %v6388_v11 = vsel %vm955_vm3, %v6362_v13, -inf }
0x2062   :  { %6462 = vrot.lane.b32.xlu1 %v13832_v31, %s12792_s14 }
0x2066   :  { %6464 = vrot.lane.b32.xlu0 %v13828_v19, %s12792_s14  ;;  %v13900_v19 = vpop.permute.xlu1 %6458 }
0x2085   :  { %6392 = vmax.xlane.f32.xlu0 %v6391_v33 }
0x2086   :  { %6389 = vmax.xlane.f32.xlu1 %v6388_v11 }
0x2094   :  { %v6375_v31 = vpop.xlane.xlu1 %6374 }
0x2095   :  { %v6395_v17 = vsub.f32 %v6130_v9, %v6375_v31  ;;  %v6372_v57 = vpop.xlane.xlu0 %6371 }
0x2096   :  { %v6394_v20 = vsub.f32 %v6125_v45, %v6372_v57 }
0x2097   :  { %6466 = vrot.lane.b32.xlu1 %v13836_v48, %s12792_s14  ;;  %v6404_v12 = vmul.f32 1.442695, %v6395_v17 }
0x2098   :  { %v6402_v38 = vmul.f32 1.442695, %v6394_v20 }
0x2099   :  { %12529 = vpow2.f32 %v6404_v12 }
0x209a   :  { %12531 = vpow2.f32 %v6402_v38 }
0x209b   :  { %6470 = vrot.lane.b32.xlu1 %v13845_v15, %s12792_s14  ;;  %6468 = vrot.lane.b32.xlu0 %v13840_v59, %s12792_s14 }
0x20a3   :  { %v13904_v39 = vpop.eup %12529 }
0x20a4   :  { %v6421_v48 = vsel %vm955_vm3, %v13904_v39, 0.0  ;;  %v12532_v15 = vpop.eup %12531 }
0x20a5   :  { %v6418_v59 = vsel %vm955_vm3, %v12532_v15, 0.0 }
0x20ba   :  { %6422 = vadd.xlane.f32.xlu0 %v6421_v48 }
0x20bf   :  { %6419 = vadd.xlane.f32.xlu1 %v6418_v59 }
0x20d9   :  { %v6381_v6 = vpop.xlane.xlu0 %6380 }
0x20da   :  { %v6397_v16 = vsub.f32 %v6209_v7, %v6381_v6  ;;  %v6378_v22 = vpop.xlane.xlu1 %6377 }
0x20db   :  { %v6396_v9 = vsub.f32 %v6204_v61, %v6378_v22 }
0x20dc   :  { %v6408_v2 = vmul.f32 1.442695, %v6397_v16 }
0x20dd   :  { %v6406_v33 = vmul.f32 1.442695, %v6396_v9 }
0x20de   :  { %12533 = vpow2.f32 %v6408_v2  ;;  %v6384_v45 = vpop.xlane.xlu1 %6383 }
0x20df   :  { %12535 = vpow2.f32 %v6406_v33  ;;  %v6398_v11 = vsub.f32 %v6283_v4, %v6384_v45  ;;  %v6387_v4 = vpop.xlane.xlu0 %6386 }
0x20e0   :  { %v6399_v38 = vsub.f32 %v6288_v36, %v6387_v4 }
0x20e1   :  { %v6410_v31 = vmul.f32 1.442695, %v6398_v11 }
0x20e2   :  { %v6412_v48 = vmul.f32 1.442695, %v6399_v38  ;;  %v6463_v6 = vpop.permute.xlu1 %6462 }
0x20e3   :  { %12537 = vpow2.f32 %v6410_v31  ;;  %v6465_v59 = vpop.permute.xlu0 %6464 }
0x20e4   :  { %12539 = vpow2.f32 %v6412_v48 }
0x20e8   :  { %v13909_v17 = vpop.eup %12533 }
0x20e9   :  { %v13911_v57 = vpop.eup %12535  ;;  %v6427_v12 = vsel %vm955_vm3, %v13909_v17, 0.0 }
0x20ea   :  { %6428 = vadd.xlane.f32.xlu0 %v6427_v12  ;;  %v6424_v7 = vsel %vm955_vm3, %v13911_v57, 0.0 }
0x20eb   :  { %6425 = vadd.xlane.f32.xlu1 %v6424_v7 }
0x20ed   :  { %v13917_v61 = vpop.eup %12537 }
0x20ee   :  { %v6430_v20 = vsel %vm955_vm3, %v13917_v61, 0.0  ;;  %v12540_v11 = vpop.eup %12539 }
0x20ef   :  { %6431 = vadd.xlane.f32.xlu1 %v6430_v20  ;;  %v6433_v31 = vsel %vm955_vm3, %v12540_v11, 0.0 }
0x2100   :  { %6472 = vrot.lane.b32.xlu0 %v13847_v35, %s12792_s14 }
0x2112   :  { %v6393_v16 = vpop.xlane.xlu0 %6392 }
0x2113   :  { %v6401_v22 = vsub.f32 %v6367_v28, %v6393_v16  ;;  %v6390_v9 = vpop.xlane.xlu1 %6389 }
0x2114   :  { %v6400_v2 = vsub.f32 %v6362_v13, %v6390_v9 }
0x2115   :  { %v6416_v33 = vmul.f32 1.442695, %v6401_v22 }
0x2116   :  { %v6414_v45 = vmul.f32 1.442695, %v6400_v2  ;;  %v6469_v7 = vpop.permute.xlu0 %6468 }
0x2117   :  { %12541 = vpow2.f32 %v6416_v33  ;;  %v6467_v13 = vpop.permute.xlu1 %6466 }
0x2118   :  { %12543 = vpow2.f32 %v6414_v45 }
0x211b   :  { %v6471_v20 = vpop.permute.xlu1 %6470 }
0x211f   :  { %6434 = vadd.xlane.f32.xlu0 %v6433_v31 }
0x2121   :  { %v13924_v12 = vpop.eup %12541 }
0x2122   :  { %v13926_v35 = vpop.eup %12543  ;;  %v6439_v36 = vsel %vm955_vm3, %v13924_v12, 0.0 }
0x2123   :  { %6440 = vadd.xlane.f32.xlu0 %v6439_v36  ;;  %v6436_v28 = vsel %vm955_vm3, %v13926_v35, 0.0 }
0x2124   :  { %6437 = vadd.xlane.f32.xlu1 %v6436_v28 }
0x2147   :  { %v6423_v4 = vpop.xlane.xlu0 %6422 }
0x2148   :  { %12545 = vrcp.f32 %v6423_v4 }
0x214c   :  { %v6420_v38 = vpop.xlane.xlu1 %6419 }
0x214d   :  { %12547 = vrcp.f32 %v6420_v38 }
0x2150   :  { %6514 = vxpose.xlu0.b32.start [1/2] (short) (narrow) %v6463_v6, 8 }
0x2152   :  { %v12546_v48 = vpop.eup %12545 }
0x2153   :  { %v6445_v22 = vmul.f32 %v12546_v48, %v13904_v39 }
0x2154   :  { %6515 = vxpose.xlu0.b32.end [2/2] (short) (narrow) %v6465_v59, 8 }
0x2157   :  { %v12548_v16 = vpop.eup %12547  ;;  %6482 = vxpose.xlu1.b32.start [1/2] (short) (narrow) %v13900_v19, 8 }
0x2158   :  { %v6443_v9 = vmul.f32 %v12548_v16, %v12532_v15  ;;  %6546 = vxpose.xlu0.b32.start [1/2] (short) (narrow) %v6467_v13, 8 }
0x215a   :  { %v12231_v2 = vpack.c.bf16 %v6445_v22, %v6443_v9 }
0x215b   :  { %6483 = vxpose.xlu1.b32.end [2/2] (short) (narrow) %v13902_v3, 8 }
0x215c   :  { %6547 = vxpose.xlu0.b32.end [2/2] (short) (narrow) %v6469_v7, 8  ;;  %12233 = vmatpush3.bf16.xpose.msk.msra.mxu1 %vm13116_vm5, %v12231_v2 }
0x215d   :  { %12234 = vmatprep.subr.bf16.mxu1 %v12793_v44 }
0x215f   :  { %6578 = vxpose.xlu1.b32.start [1/2] (short) (narrow) %v6471_v20, 8 }
0x2177   :  { %v6429_v6 = vpop.xlane.xlu0 %6428 }
0x2178   :  { %v6426_v33 = vpop.xlane.xlu1 %6425  ;;  %12549 = vrcp.f32 %v6429_v6 }
0x2179   :  { %12551 = vrcp.f32 %v6426_v33 }
0x217b   :  { %v6473_v59 = vpop.permute.xlu0 %6472 }
0x217c   :  { %6579 = vxpose.xlu1.b32.end [2/2] (short) (narrow) %v6473_v59, 8  ;;  %v6432_v39 = vpop.xlane.xlu1 %6431 }
0x2182   :  { %v12550_v15 = vpop.eup %12549 }
0x2183   :  { %v12552_v45 = vpop.eup %12551  ;;  %v6449_v31 = vmul.f32 %v12550_v15, %v13909_v17 }
0x2184   :  { %v6447_v36 = vmul.f32 %v12552_v45, %v13911_v57 }
0x2186   :  { %v12235_v7 = vpack.c.bf16 %v6449_v31, %v6447_v36 }
0x21ac   :  { %v6435_v19 = vpop.xlane.xlu0 %6434 }
0x21ad   :  { %12553 = vrcp.f32 %v6435_v19 }
0x21ae   :  { %12555 = vrcp.f32 %v6432_v39 }
0x21b0   :  { %v6441_v3 = vpop.xlane.xlu0 %6440 }
0x21b1   :  { %v6438_v28 = vpop.xlane.xlu1 %6437  ;;  %12557 = vrcp.f32 %v6441_v3 }
0x21b2   :  { %12559 = vrcp.f32 %v6438_v28 }
0x21b7   :  { %v12554_v20 = vpop.eup %12553 }
0x21b8   :  { %v12556_v4 = vpop.eup %12555  ;;  %v6453_v17 = vmul.f32 %v12554_v20, %v12540_v11 }
0x21b9   :  { %v6451_v57 = vmul.f32 %v12556_v4, %v13917_v61 }
0x21bb   :  { %v12558_v48 = vpop.eup %12557  ;;  %v12239_v16 = vpack.c.bf16 %v6453_v17, %v6451_v57 }
0x21bc   :  { %v12560_v22 = vpop.eup %12559  ;;  %v6457_v9 = vmul.f32 %v12558_v48, %v13924_v12 }
0x21bd   :  { %v6455_v11 = vmul.f32 %v12560_v22, %v13926_v35 }
0x21bf   :  { %v12243_v61 = vpack.c.bf16 %v6457_v9, %v6455_v11 }
0x21d0   :  { %v6530_v38 = vpop.trf.xlu0 }
0x21d7   :  { %v6498_v13 = vpop.trf.xlu1 }
0x21d8   :  { %11743 = vmatmul.mubr.msk.f32.vlgmr.msra.gmra.mrb[36].mxu1 %vm955_vm3, %v6498_v13  ;;  %v6562_v2 = vpop.trf.xlu0 }
0x21d9   :  { %12237 = vmatpush3.bf16.xpose.msk.msra.mxu1 %vm13116_vm5, %v12235_v7  ;;  %11749 = vmatprep.mubr.msk.f32.mxu1 %vm12794_vm4, %v12795_v27 }
0x21da   :  { %12238 = vmatprep.subr.bf16.mxu1 %v12793_v44 }
0x21e0   :  { %11750 = vmatmul.mubr.msk.f32.vlgmr.msra.gmra.mrb[38].mxu1 %vm955_vm3, %v6530_v38 }
0x21e1   :  { %12241 = vmatpush3.bf16.xpose.msk.msra.mxu1 %vm13116_vm5, %v12239_v16  ;;  %11756 = vmatprep.mubr.msk.f32.mxu1 %vm12794_vm4, %v12795_v27 }
0x21e2   :  { %12242 = vmatprep.subr.bf16.mxu1 %v12793_v44 }
0x21e8   :  { %11757 = vmatmul.mubr.msk.f32.vlgmr.msra.gmra.mrb[40].mxu1 %vm955_vm3, %v6562_v2 }
0x21e9   :  { %12245 = vmatpush3.bf16.xpose.msk.msra.mxu1 %vm13116_vm5, %v12243_v61  ;;  %11763 = vmatprep.mubr.msk.f32.mxu1 %vm12794_vm4, %v12795_v27 }
0x21ea   :  { %12260 = vmatprep.subr.msk.bf16.mxu1 %vm12902_vm1, %v13212_v1 }
0x21f8   :  { %v6594_v6 = vpop.trf.xlu1 }
0x21f9   :  { %11764 = vmatmul.mubr.msk.f32.vlgmr.msra.gmra.mrb[42].mxu1 %vm955_vm3, %v6594_v6 }
0x21fa   :  { %12263 = vmatpush3.bf16.xpose.msk.msra.mxu1 %vm12902_vm1, %v13212_v1 }
0x21fb   :  { %12266 = vmatprep.subr.msk.bf16.mxu1 %vm12902_vm1, %v13222_v18 }
0x2202   :  { %12269 = vmatpush3.bf16.xpose.msk.msra.mxu1 %vm12902_vm1, %v13222_v18 }
0x2203   :  { %12272 = vmatprep.subr.msk.bf16.mxu1 %vm12902_vm1, %v13235_v26 }
0x220a   :  { %12275 = vmatpush3.bf16.xpose.msk.msra.mxu1 %vm12902_vm1, %v13235_v26 }
0x220b   :  { %12278 = vmatprep.subr.msk.bf16.mxu1 %vm12902_vm1, %v13251_v46 }
0x2212   :  { %12281 = vmatpush3.bf16.xpose.msk.msra.mxu1 %vm12902_vm1, %v13251_v46 }
0x22ab   :  { %v6685_v1 = vpop.f32.mrb[36].mxu1 }
0x22ac   :  { %v11744_v12 = vpop.f32.mrb[37].mxu1  ;;  %6926 = vxpose.xlu0.b32.start.end [1/1] (short) (narrow) %v6685_v1, 16 }
0x22b3   :  { %v6764_v18 = vpop.f32.mrb[38].mxu1 }
0x22b4   :  { %v11751_v35 = vpop.f32.mrb[39].mxu1  ;;  %6958 = vxpose.xlu1.b32.start.end [1/1] (short) (narrow) %v6764_v18, 16 }
0x22bb   :  { %v6843_v59 = vpop.f32.mrb[40].mxu1 }
0x22bc   :  { %6990 = vxpose.xlu0.b32.start.end [1/1] (short) (narrow) %v6843_v59, 16  ;;  %v11758_v33 = vpop.f32.mrb[41].mxu1 }
0x22cc   :  { %v6922_v19 = vpop.f32.mrb[42].mxu1 }
0x22cd   :  { %7022 = vxpose.xlu1.b32.start.end [1/1] (short) (narrow) %v6922_v19, 16  ;;  %v11765_v26 = vpop.f32.mrb[43].mxu1 }
0x232c   :  { %v6942_v39 = vpop.trf.xlu0 }
0x2330   :  { %v6943_v45 = vpop.trf.xlu0 }
0x2334   :  { %v6974_v15 = vpop.trf.xlu1 }
0x2338   :  { %v6975_v3 = vpop.trf.xlu1 }
0x233c   :  { %v7006_v31 = vpop.trf.xlu0 }
0x233d   :  { %v7054_v36 = vcombine.low %v6942_v39, %v7006_v31  ;;  %v7055_v28 = vcombine.high %v6942_v39, %v7006_v31 }
0x233f   :  { %v7062_v4 = vrot.slane %v7054_v36, %v13150_v51  ;;  %v7069_v17 = vrot.slane %v7055_v28, %v13150_v51 }
0x2340   :  { %v7007_v13 = vpop.trf.xlu0 }
0x2341   :  { %v7122_v48 = vcombine.low %v6943_v45, %v7007_v13  ;;  %v7123_v16 = vcombine.high %v6943_v45, %v7007_v13 }
0x2343   :  { %v7130_v33 = vrot.slane %v7122_v48, %v13150_v51  ;;  %v7137_v19 = vrot.slane %v7123_v16, %v13150_v51 }
0x234d   :  { %v7038_v46 = vpop.trf.xlu1 }
0x234e   :  { %v7070_v7 = vcombine.low %v6974_v15, %v7038_v46  ;;  %v7071_v20 = vcombine.high %v6974_v15, %v7038_v46 }
0x2350   :  { %v7078_v57 = vrot.slane %v7070_v7, %v13150_v51  ;;  %v7085_v38 = vrot.slane %v7071_v20, %v13150_v51 }
0x2351   :  { %v7039_v22 = vpop.trf.xlu1 }
0x2352   :  { %v7086_v9 = vcombine.low %v7062_v4, %v7078_v57  ;;  %v7087_v11 = vcombine.high %v7062_v4, %v7078_v57  ;;  %v7102_v2 = vcombine.low %v7069_v17, %v7085_v38  ;;  %v7103_v61 = vcombine.high %v7069_v17, %v7085_v38 }
0x2353   :  { %v7138_v6 = vcombine.low %v6975_v3, %v7039_v22  ;;  %v7139_v1 = vcombine.high %v6975_v3, %v7039_v22 }
0x2354   :  { %v7094_v12 = vrot.slane %v7086_v9, %v13152_v58  ;;  %v7101_v18 = vrot.slane %v7087_v11, %v13152_v58  ;;  %v7110_v35 = vrot.slane %v7102_v2, %v13152_v58  ;;  %v7117_v59 = vrot.slane %v7103_v61, %v13152_v58 }
0x2355   :  { %v7146_v26 = vrot.slane %v7138_v6, %v13150_v51  ;;  %v7153_v39 = vrot.slane %v7139_v1, %v13150_v51 }
0x2356   :  { %v7190_v15 = vcombine.low %v7094_v12, %v7101_v18  ;;  %v10995_v45 = vcombine.high %v7094_v12, %v7101_v18  ;;  %v7206_v31 = vcombine.low %v7110_v35, %v7117_v59  ;;  %v10996_v3 = vcombine.high %v7110_v35, %v7117_v59 }
0x2357   :  { %v7154_v36 = vcombine.low %v7130_v33, %v7146_v26  ;;  %v7155_v28 = vcombine.high %v7130_v33, %v7146_v26  ;;  %v7170_v46 = vcombine.low %v7137_v19, %v7153_v39  ;;  %v7171_v13 = vcombine.high %v7137_v19, %v7153_v39 }
0x2358   :  { %v7197_v7 = vrot.slane %v7190_v15, %v13150_v51  ;;  %v7205_v20 = vrot.slane %v10995_v45, %v13150_v51  ;;  %v7213_v4 = vrot.slane %v7206_v31, %v13150_v51  ;;  %v7221_v17 = vrot.slane %v10996_v3, %v13150_v51 }
0x2359   :  { %v7162_v57 = vrot.slane %v7154_v36, %v13152_v58  ;;  %v7169_v38 = vrot.slane %v7155_v28, %v13152_v58  ;;  %v7178_v48 = vrot.slane %v7170_v46, %v13152_v58  ;;  %v7185_v16 = vrot.slane %v7171_v13, %v13152_v58 }
0x235a   :  { %v7223_v22 = vcombine.high %v7197_v7, %v7205_v20  ;;  %v7239_v9 = vcombine.high %v7213_v4, %v7221_v17  ;;  %v7222_v11 = vcombine.low %v7197_v7, %v7205_v20  ;;  %v7238_v2 = vcombine.low %v7213_v4, %v7221_v17 }
0x235b   :  { %v7258_v61 = vcombine.low %v7162_v57, %v7169_v38  ;;  %v10997_v6 = vcombine.high %v7162_v57, %v7169_v38  ;;  %v7274_v1 = vcombine.low %v7178_v48, %v7185_v16  ;;  %v10998_v12 = vcombine.high %v7178_v48, %v7185_v16 }
0x235c   :  { %v7237_v18 = vrot.slane %v7223_v22, %v13152_v58  ;;  %v7253_v35 = vrot.slane %v7239_v9, %v13152_v58  ;;  %v7230_v59 = vrot.slane %v7222_v11, %v13152_v58  ;;  %v7246_v33 = vrot.slane %v7238_v2, %v13152_v58 }
0x235d   :  { %v7265_v19 = vrot.slane %v7258_v61, %v13150_v51  ;;  %v7273_v26 = vrot.slane %v10997_v6, %v13150_v51  ;;  %v7281_v39 = vrot.slane %v7274_v1, %v13150_v51  ;;  %v7289_v15 = vrot.slane %v10998_v12, %v13150_v51 }
0x235e   :  { %v7256_v45 = vcombine.low %v7237_v18, %v7253_v35  ;;  %v7255_v31 = vcombine.high %v7230_v59, %v7246_v33  ;;  %v7254_v3 = vcombine.low %v7230_v59, %v7246_v33  ;;  %v7257_v22 = vcombine.high %v7237_v18, %v7253_v35 }
0x235f   :  { %v7291_v36 = vcombine.high %v7265_v19, %v7273_v26  ;;  %v7307_v28 = vcombine.high %v7281_v39, %v7289_v15  ;;  %v7290_v46 = vcombine.low %v7265_v19, %v7273_v26  ;;  %v7306_v13 = vcombine.low %v7281_v39, %v7289_v15  ;;  %v12644_v39 = vld [vmem:[#allocation8 + $0x31] ss:$0 sm:$0xff] }
0x2360   :  { %7336 = vrot.lane.b32.xlu1 %v7256_v45, %s12798_s15  ;;  %7328 = vrot.lane.b32.xlu0 %v7255_v31, %s12785_s28 }
0x2361   :  { %v7305_v7 = vrot.slane %v7291_v36, %v13152_v58  ;;  %v7321_v20 = vrot.slane %v7307_v28, %v13152_v58  ;;  %v7298_v4 = vrot.slane %v7290_v46, %v13152_v58  ;;  %v7314_v17 = vrot.slane %v7306_v13, %v13152_v58 }
0x2363   :  { %v7325_v57 = vcombine.high %v7305_v7, %v7321_v20  ;;  %v7323_v38 = vcombine.high %v7298_v4, %v7314_v17  ;;  %v7322_v48 = vcombine.low %v7298_v4, %v7314_v17  ;;  %v7324_v16 = vcombine.low %v7305_v7, %v7321_v20 }
0x2365   :  { %7346 = vrot.lane.b32.xlu0 %v7325_v57, %s12799_s16  ;;  %7330 = vrot.lane.b32.xlu1 %v7323_v38, %s12785_s28 }
0x2369   :  { %7338 = vrot.lane.b32.xlu1 %v7324_v16, %s12798_s15 }
0x236d   :  { %7344 = vrot.lane.b32.xlu1 %v7257_v22, %s12799_s16 }
0x23d2   :  { %v7337_v9 = vpop.permute.xlu1 %7336  ;;  %v7329_v2 = vpop.permute.xlu0 %7328 }
0x23d3   :  { %v7350_v6 = vsel %vm638_vm2, %v7254_v3, %v7329_v2 }
0x23d4   :  { %v7352_v33 = vsel %vm955_vm3, %v7350_v6, %v7337_v9 }
0x23d7   :  { %v7331_v11 = vpop.permute.xlu1 %7330  ;;  %v7347_v19 = vpop.permute.xlu0 %7346 }
0x23d8   :  { %v7351_v1 = vsel %vm638_vm2, %v7322_v48, %v7331_v11 }
0x23db   :  { %v7339_v61 = vpop.permute.xlu1 %7338 }
0x23dc   :  { %v7353_v12 = vsel %vm955_vm3, %v7351_v1, %v7339_v61 }
0x23dd   :  { %v7355_v18 = vsel %vm1940_vm6, %v7353_v12, %v7347_v19  ;;  %v12645_v12 = vld [vmem:[#allocation8 + $0x3a] ss:$0 sm:$0xff]  ;;  %v12646_v19 = vld [vmem:[#allocation8 + $0x3b] ss:$0 sm:$0xff] }
0x23df   :  { %v7345_v59 = vpop.permute.xlu1 %7344 }
0x23e0   :  { %v7354_v26 = vsel %vm1940_vm6, %v7352_v33, %v7345_v59 }
0x23e1   :  { %11774 = vmatprep.mubr.msk.f32.mxu0 %vm233_vm0, %v7354_v26 }
0x23e2   :  { %11775 = vmatmul.mubr.msk.f32.vlgmr.msra.gmra.mrb[42].mxu0 %vm233_vm0, %v7355_v18 }
0x23e3   :  { %12287 = vmatpush3.bf16.xpose.msk.msra.mxu0 %vm12902_vm1, %v13230_v23 }
0x23e4   :  { %12290 = vmatprep.subr.msk.bf16.mxu0 %vm12902_vm1, %v13246_v34 }
0x23eb   :  { %12293 = vmatpush3.bf16.xpose.msk.msra.mxu0 %vm12902_vm1, %v13246_v34 }
0x24b5   :  { %v11776_v35 = vpop.f32.mrb[42].mxu0 }
0x24b6   :  { %v7434_v15 = vadd.f32 %v12644_v39, %v11776_v35  ;;  %v7428_v45 = vpop.f32.mrb[43].mxu0  ;;  %v12647_v35 = vld [vmem:[#allocation8] sm:$0xff] }
0x24b7   :  { %v7429_v31 = vadd.f32 %v12644_v39, %v7428_v45 }
0x24b8   :  { %v7438_v3 = vadd.f32 %v7434_v15, %v13801_v37  ;;  %v12648_v15 = vld [vmem:[#allocation8 + $0x8] sm:$0xff] }
0x24b9   :  { %v7437_v36 = vadd.f32 %v7429_v31, %v13799_v49 }
0x24ba   :  { %v7442_v28 = vsel %vm233_vm0, %v7438_v3, 0.0 }
0x24bb   :  { %7443 = vadd.xlane.f32.xlu0 %v7442_v28  ;;  %v7439_v23 = vsel %vm233_vm0, %v7437_v36, 0.0  ;;  %v12649_v28 = vld [vmem:[#allocation8 + $0x32] ss:$0 sm:$0xff] }
0x24bc   :  { %7440 = vadd.xlane.f32.xlu1 %v7439_v23 }
0x2548   :  { %v7444_v46 = vpop.xlane.xlu0 %7443 }
0x2549   :  { %v7446_v13 = vmul.f32 0.03125, %v7444_v46  ;;  %v7441_v7 = vpop.xlane.xlu1 %7440 }
0x254a   :  { %v7445_v20 = vmul.f32 0.03125, %v7441_v7 }
0x254b   :  { %v7448_v34 = vsub.f32 %v7438_v3, %v7446_v13 }
0x254c   :  { %v7447_v4 = vsub.f32 %v7437_v36, %v7445_v20 }
0x254d   :  { %v7450_v17 = vmul.f32 %v7448_v34, %v7448_v34 }
0x254e   :  { %v7449_v57 = vmul.f32 %v7447_v4, %v7447_v4 }
0x254f   :  { %v7454_v38 = vsel %vm233_vm0, %v7450_v17, 0.0 }
0x2550   :  { %7455 = vadd.xlane.f32.xlu1 %v7454_v38  ;;  %v7451_v37 = vsel %vm233_vm0, %v7449_v57, 0.0 }
0x2551   :  { %7452 = vadd.xlane.f32.xlu0 %v7451_v37 }
0x25dd   :  { %v7456_v49 = vpop.xlane.xlu1 %7455 }
0x25de   :  { %v7458_v48 = vmul.f32 0.03125, %v7456_v49  ;;  %v7453_v16 = vpop.xlane.xlu0 %7452 }
0x25df   :  { %v7457_v22 = vmul.f32 0.03125, %v7453_v16 }
0x25e0   :  { %v7460_v9 = vadd.f32 1e-05, %v7458_v48 }
0x25e1   :  { %v7459_v11 = vadd.f32 1e-05, %v7457_v22 }
0x25e2   :  { %12561 = vrsqrt.f32 %v7460_v9 }
0x25e3   :  { %12563 = vrsqrt.f32 %v7459_v11 }
0x25ec   :  { %v12562_v2 = vpop.eup %12561 }
0x25ed   :  { %v12564_v61 = vpop.eup %12563  ;;  %v7464_v6 = vmul.f32 %v12562_v2, %v7448_v34 }
0x25ee   :  { %v7463_v1 = vmul.f32 %v12564_v61, %v7447_v4 }
0x25ef   :  { %v7466_v59 = vmul.f32 %v12645_v12, %v7464_v6 }
0x25f0   :  { %v7465_v33 = vmul.f32 %v12645_v12, %v7463_v1 }
0x25f1   :  { %v14046_v26 = vadd.f32 %v12646_v19, %v7466_v59 }
0x25f2   :  { %v14048_v18 = vadd.f32 %v12646_v19, %v7465_v33 }
0x25f3   :  { %v7470_v45 = vadd.f32 %v12648_v15, %v14046_v26 }
0x25f4   :  { %11804 = vmatprep.mubr.msk.f32.mxu0 %vm233_vm0, %v14048_v18  ;;  %v7469_v39 = vadd.f32 %v12647_v35, %v14048_v18 }
0x25f5   :  { %11805 = vmatmul.mubr.msk.f32.vlgmr.msra.gmra.mrb[44].mxu0 %vm233_vm0, %v14046_v26 }
0x25f6   :  { %11793 = vmatprep.mubr.msk.f32.mxu1 %vm233_vm0, %v7469_v39 }
0x25f7   :  { %11794 = vmatmul.mubr.msk.f32.vlgmr.msra.gmra.mrb[44].mxu1 %vm233_vm0, %v7470_v45 }
0x26c8   :  { %v14058_v31 = vpop.f32.mrb[44].mxu0 }
0x26c9   :  { %v14060_v3 = vpop.f32.mrb[45].mxu0 }
0x26ca   :  { %v11795_v36 = vpop.f32.mrb[44].mxu1 }
0x26cb   :  { %v7549_v23 = vadd.f32 %v12649_v28, %v11795_v36  ;;  %v7543_v46 = vpop.f32.mrb[45].mxu1 }
0x26cc   :  { %v7544_v13 = vadd.f32 %v12649_v28, %v7543_v46 }
0x26cd   :  { %7653 = vrot.lane.b32.xlu1 %v7549_v23, %s12789_s12  ;;  %v7634_v37 = vmul.f32 0.35355338, %v7549_v23 }
0x26ce   :  { %7651 = vrot.lane.b32.xlu0 %v7544_v13, %s12789_s12  ;;  %v7633_v7 = vmul.f32 0.35355338, %v7544_v13 }
0x26d0   :  { %11809 = vmatprep.mubr.msk.f32.mxu0 %vm638_vm2, %v7633_v7 }
0x26d1   :  { %7655 = vrot.lane.b32.xlu1 %v7544_v13, %s12788_s3 }
0x26d2   :  { %7659 = vrot.lane.b32.xlu0 %v7544_v13, %s12790_s1 }
0x26d5   :  { %7657 = vrot.lane.b32.xlu1 %v7549_v23, %s12788_s3 }
0x26d6   :  { %7661 = vrot.lane.b32.xlu0 %v7549_v23, %s12790_s1 }
0x26d9   :  { %7685 = vrot.lane.b32.xlu1 %v7549_v23, %s12791_s13 }
0x26dd   :  { %7683 = vrot.lane.b32.xlu1 %v7544_v13, %s12791_s13 }
0x273f   :  { %v7654_v20 = vpop.permute.xlu1 %7653 }
0x2740   :  { %7689 = vrot.lane.b32.xlu0 %v7654_v20, %s12791_s13  ;;  %v7652_v34 = vpop.permute.xlu0 %7651 }
0x2743   :  { %v7656_v4 = vpop.permute.xlu1 %7655 }
0x2744   :  { %7687 = vrot.lane.b32.xlu0 %v7652_v34, %s12791_s13  ;;  %v7660_v17 = vpop.permute.xlu0 %7659 }
0x2747   :  { %v7658_v57 = vpop.permute.xlu1 %7657 }
0x2748   :  { %7693 = vrot.lane.b32.xlu1 %v7658_v57, %s12791_s13  ;;  %v7662_v38 = vpop.permute.xlu0 %7661 }
0x2749   :  { %7697 = vrot.lane.b32.xlu0 %v7662_v38, %s12791_s13 }
0x274b   :  { %v7686_v49 = vpop.permute.xlu1 %7685 }
0x274c   :  { %7637 = vrot.lane.b32.xlu1 %v7633_v7, %s12789_s12 }
0x274d   :  { %7695 = vrot.lane.b32.xlu0 %v7660_v17, %s12791_s13 }
0x274f   :  { %v7684_v48 = vpop.permute.xlu1 %7683 }
0x2750   :  { %7691 = vrot.lane.b32.xlu1 %v7656_v4, %s12791_s13 }
0x2751   :  { %7639 = vrot.lane.b32.xlu0 %v7634_v37, %s12789_s12 }
0x2754   :  { %7641 = vrot.lane.b32.xlu1 %v7633_v7, %s12788_s3 }
0x2755   :  { %7645 = vrot.lane.b32.xlu0 %v7633_v7, %s12790_s1 }
0x2758   :  { %7643 = vrot.lane.b32.xlu1 %v7634_v37, %s12788_s3 }
0x2759   :  { %7647 = vrot.lane.b32.xlu0 %v7634_v37, %s12790_s1 }
0x2781   :  { %7707 = vxpose.xlu1.b32.start [1/2] (short) (narrow) %v7684_v48, 8 }
0x2785   :  { %7708 = vxpose.xlu1.b32.end [2/2] (short) (narrow) %v7686_v49, 8 }
0x27b2   :  { %v7690_v16 = vpop.permute.xlu0 %7689 }
0x27b6   :  { %v7688_v22 = vpop.permute.xlu0 %7687 }
0x27b7   :  { %7739 = vxpose.xlu0.b32.start [1/2] (short) (narrow) %v7688_v22, 8 }
0x27ba   :  { %v7694_v9 = vpop.permute.xlu1 %7693 }
0x27bb   :  { %7740 = vxpose.xlu0.b32.end [2/2] (short) (narrow) %v7690_v16, 8  ;;  %v7698_v61 = vpop.permute.xlu0 %7697 }
0x27be   :  { %v7638_v11 = vpop.permute.xlu1 %7637 }
0x27bf   :  { %11814 = vmatprep.mubr.msk.f32.mxu1 %vm638_vm2, %v7638_v11  ;;  %v7696_v6 = vpop.permute.xlu0 %7695 }
0x27c2   :  { %v7692_v2 = vpop.permute.xlu1 %7691 }
0x27c3   :  { %7771 = vxpose.xlu0.b32.start [1/2] (short) (narrow) %v7692_v2, 8  ;;  %v7640_v33 = vpop.permute.xlu0 %7639 }
0x27c6   :  { %v7642_v1 = vpop.permute.xlu1 %7641 }
0x27c7   :  { %7772 = vxpose.xlu0.b32.end [2/2] (short) (narrow) %v7694_v9, 8  ;;  %v7646_v19 = vpop.permute.xlu0 %7645 }
0x27ca   :  { %v7644_v12 = vpop.permute.xlu1 %7643 }
0x27cb   :  { %7803 = vxpose.xlu0.b32.start [1/2] (short) (narrow) %v7696_v6, 8  ;;  %v7648_v35 = vpop.permute.xlu0 %7647 }
0x27cf   :  { %7804 = vxpose.xlu0.b32.end [2/2] (short) (narrow) %v7698_v61, 8 }
0x2801   :  { %v7723_v59 = vpop.trf.xlu1 }
0x2802   :  { %11807 = vmatprep.subr.mxu0 %v7723_v59 }
0x2803   :  { %11808 = vmatpush3.msra.mxu0 %v7723_v59  ;;  %v12650_v59 = vld [vmem:[#allocation8 + $0x33] ss:$0 sm:$0xff] }
0x2804   :  { %11810 = vmatmul.mubr.msk.f32.vlgmr.msra.gmra.mrb[46].mxu0 %vm638_vm2, %v7634_v37 }
0x2805   :  { %11819 = vmatprep.mubr.msk.f32.mxu0 %vm638_vm2, %v7642_v1 }
0x2837   :  { %v7755_v39 = vpop.trf.xlu0 }
0x2838   :  { %11812 = vmatprep.subr.mxu1 %v7755_v39 }
0x2839   :  { %11813 = vmatpush3.msra.mxu1 %v7755_v39 }
0x283a   :  { %11815 = vmatmul.mubr.msk.f32.vlgmr.msra.gmra.mrb[46].mxu1 %vm638_vm2, %v7640_v33  ;;  %v14113_v33 = vadd.f32 %v12650_v59, %v14058_v31 }
0x283b   :  { %11824 = vmatprep.mubr.msk.f32.mxu1 %vm638_vm2, %v7646_v19  ;;  %v14116_v19 = vadd.f32 %v12650_v59, %v14060_v3 }
0x2843   :  { %v7787_v15 = vpop.trf.xlu0 }
0x2844   :  { %11817 = vmatprep.subr.mxu0 %v7787_v15 }
0x2845   :  { %11818 = vmatpush3.msra.mxu0 %v7787_v15 }
0x2846   :  { %11820 = vmatmul.mubr.msk.f32.vlgmr.msra.gmra.mrb[48].mxu0 %vm638_vm2, %v7644_v12  ;;  %12294 = vmatprep.subr.bf16.mxu0 %v12793_v44 }
0x2847   :  { %11831 = vmatprep.mubr.msk.f32.mxu0 %vm12794_vm4, %v12795_v27 }
0x284b   :  { %v7819_v45 = vpop.trf.xlu0 }
0x284c   :  { %11822 = vmatprep.subr.mxu1 %v7819_v45 }
0x284d   :  { %11823 = vmatpush3.msra.mxu1 %v7819_v45 }
0x284e   :  { %11825 = vmatmul.mubr.msk.f32.vlgmr.msra.gmra.mrb[48].mxu1 %vm638_vm2, %v7648_v35  ;;  %12298 = vmatprep.subr.bf16.mxu1 %v12793_v44 }
0x284f   :  { %11838 = vmatprep.mubr.msk.f32.mxu1 %vm12794_vm4, %v12795_v27 }
0x28d7   :  { %v11811_v36 = vpop.f32.mrb[46].mxu0 }
0x28d8   :  { %v7911_v28 = vadd.f32 %v13870_v21, %v11811_v36  ;;  %v7905_v23 = vpop.f32.mrb[47].mxu0 }
0x28d9   :  { %v7906_v46 = vadd.f32 %v13873_v43, %v7905_v23 }
0x28da   :  { %v8154_v13 = vsel %vm955_vm3, %v7911_v28, -inf }
0x28db   :  { %8155 = vmax.xlane.f32.xlu0 %v8154_v13  ;;  %v8151_v7 = vsel %vm955_vm3, %v7906_v46, -inf }
0x28dc   :  { %8152 = vmax.xlane.f32.xlu1 %v8151_v7 }
0x290d   :  { %v11816_v20 = vpop.f32.mrb[46].mxu1 }
0x290e   :  { %v7990_v34 = vadd.f32 %v13870_v21, %v11816_v20  ;;  %v7984_v4 = vpop.f32.mrb[47].mxu1 }
0x290f   :  { %v7985_v49 = vadd.f32 %v13873_v43, %v7984_v4 }
0x2910   :  { %v8160_v17 = vsel %vm955_vm3, %v7990_v34, -inf }
0x2911   :  { %8161 = vmax.xlane.f32.xlu1 %v8160_v17  ;;  %v8157_v22 = vsel %vm955_vm3, %v7985_v49, -inf }
0x2919   :  { %v11821_v57 = vpop.f32.mrb[48].mxu0 }
0x291a   :  { %v8069_v38 = vadd.f32 %v13870_v21, %v11821_v57  ;;  %v8063_v37 = vpop.f32.mrb[49].mxu0 }
0x291b   :  { %v8064_v16 = vadd.f32 %v13873_v43, %v8063_v37 }
0x291c   :  { %v8166_v48 = vsel %vm955_vm3, %v8069_v38, -inf }
0x291d   :  { %8167 = vmax.xlane.f32.xlu1 %v8166_v48  ;;  %v8163_v6 = vsel %vm955_vm3, %v8064_v16, -inf }
0x2921   :  { %v11826_v9 = vpop.f32.mrb[48].mxu1  ;;  %8158 = vmax.xlane.f32.xlu1 %v8157_v22 }
0x2922   :  { %v8142_v11 = vpop.f32.mrb[49].mxu1  ;;  %v8148_v61 = vadd.f32 %v13870_v21, %v11826_v9 }
0x2923   :  { %v8143_v2 = vadd.f32 %v13873_v43, %v8142_v11 }
0x2924   :  { %v8172_v12 = vsel %vm955_vm3, %v8148_v61, -inf }
0x2925   :  { %8164 = vmax.xlane.f32.xlu1 %v8163_v6  ;;  %v8169_v1 = vsel %vm955_vm3, %v8143_v2, -inf }
0x2926   :  { %8170 = vmax.xlane.f32.xlu0 %v8169_v1 }
0x2929   :  { %8173 = vmax.xlane.f32.xlu1 %v8172_v12 }
0x293a   :  { %7667 = vrot.lane.b32.xlu1 %v14113_v33, %s12789_s12 }
0x293c   :  { %7665 = vrot.lane.b32.xlu0 %v14116_v19, %s12789_s12 }
0x2940   :  { %7671 = vrot.lane.b32.xlu0 %v14116_v19, %s12788_s3 }
0x2944   :  { %7677 = vrot.lane.b32.xlu0 %v14116_v19, %s12790_s1 }
0x2948   :  { %7673 = vrot.lane.b32.xlu0 %v14113_v33, %s12788_s3 }
0x2968   :  { %v8156_v21 = vpop.xlane.xlu0 %8155 }
0x2969   :  { %v8176_v43 = vsub.f32 %v7911_v28, %v8156_v21  ;;  %v8153_v31 = vpop.xlane.xlu1 %8152 }
0x296a   :  { %v8175_v3 = vsub.f32 %v7906_v46, %v8153_v31 }
0x296b   :  { %v8185_v35 = vmul.f32 1.442695, %v8176_v43 }
0x296c   :  { %v8183_v39 = vmul.f32 1.442695, %v8175_v3 }
0x296d   :  { %12565 = vpow2.f32 %v8185_v35 }
0x296e   :  { %12567 = vpow2.f32 %v8183_v39 }
0x2977   :  { %v14128_v15 = vpop.eup %12565 }
0x2978   :  { %v8202_v45 = vsel %vm955_vm3, %v14128_v15, 0.0  ;;  %v14132_v36 = vpop.eup %12567 }
0x2979   :  { %8203 = vadd.xlane.f32.xlu1 %v8202_v45  ;;  %v8199_v23 = vsel %vm955_vm3, %v14132_v36, 0.0 }
0x297d   :  { %8200 = vadd.xlane.f32.xlu1 %v8199_v23 }
0x299e   :  { %v8162_v13 = vpop.xlane.xlu1 %8161 }
0x299f   :  { %v8178_v28 = vsub.f32 %v7990_v34, %v8162_v13 }
0x29a1   :  { %v8189_v7 = vmul.f32 1.442695, %v8178_v28 }
0x29a3   :  { %12569 = vpow2.f32 %v8189_v7 }
0x29aa   :  { %v8168_v46 = vpop.xlane.xlu1 %8167 }
0x29ab   :  { %v8180_v20 = vsub.f32 %v8069_v38, %v8168_v46 }
0x29ad   :  { %v14136_v4 = vpop.eup %12569  ;;  %v8193_v17 = vmul.f32 1.442695, %v8180_v20 }
0x29ae   :  { %v8159_v57 = vpop.xlane.xlu1 %8158  ;;  %v8208_v37 = vsel %vm955_vm3, %v14136_v4, 0.0 }
0x29af   :  { %12571 = vpow2.f32 %v8193_v17  ;;  %v8177_v48 = vsub.f32 %v7985_v49, %v8159_v57  ;;  %8209 = vadd.xlane.f32.xlu1 %v8208_v37 }
0x29b1   :  { %v8187_v22 = vmul.f32 1.442695, %v8177_v48 }
0x29b2   :  { %v8165_v9 = vpop.xlane.xlu1 %8164 }
0x29b3   :  { %12573 = vpow2.f32 %v8187_v22  ;;  %v8179_v11 = vsub.f32 %v8064_v16, %v8165_v9  ;;  %v8171_v6 = vpop.xlane.xlu0 %8170 }
0x29b4   :  { %v8181_v1 = vsub.f32 %v8143_v2, %v8171_v6 }
0x29b5   :  { %v8191_v34 = vmul.f32 1.442695, %v8179_v11 }
0x29b6   :  { %v8174_v12 = vpop.xlane.xlu1 %8173  ;;  %v8195_v21 = vmul.f32 1.442695, %v8181_v1 }
0x29b7   :  { %12575 = vpow2.f32 %v8191_v34  ;;  %v8182_v38 = vsub.f32 %v8148_v61, %v8174_v12  ;;  %v7666_v23 = vpop.permute.xlu0 %7665 }
0x29b9   :  { %v14140_v59 = vpop.eup %12571  ;;  %v8197_v43 = vmul.f32 1.442695, %v8182_v38 }
0x29ba   :  { %v8214_v31 = vsel %vm955_vm3, %v14140_v59, 0.0  ;;  %v7668_v28 = vpop.permute.xlu1 %7667 }
0x29bb   :  { %12577 = vpow2.f32 %v8197_v43  ;;  %8215 = vadd.xlane.f32.xlu1 %v8214_v31  ;;  %v7672_v13 = vpop.permute.xlu0 %7671 }
0x29bc   :  { %12579 = vpow2.f32 %v8195_v21 }
0x29bd   :  { %v12574_v49 = vpop.eup %12573 }
0x29be   :  { %v8205_v3 = vsel %vm955_vm3, %v12574_v49, 0.0 }
0x29bf   :  { %8206 = vadd.xlane.f32.xlu1 %v8205_v3  ;;  %v7678_v7 = vpop.permute.xlu0 %7677 }
0x29c1   :  { %v12576_v16 = vpop.eup %12575 }
0x29c2   :  { %v8211_v2 = vsel %vm955_vm3, %v12576_v16, 0.0 }
0x29c3   :  { %8212 = vadd.xlane.f32.xlu0 %v8211_v2  ;;  %v7674_v46 = vpop.permute.xlu0 %7673 }
0x29c5   :  { %v12578_v35 = vpop.eup %12577 }
0x29c6   :  { %v8220_v61 = vsel %vm955_vm3, %v12578_v35, 0.0  ;;  %v12580_v39 = vpop.eup %12579 }
0x29c7   :  { %8221 = vadd.xlane.f32.xlu0 %v8220_v61  ;;  %v8217_v45 = vsel %vm955_vm3, %v12580_v39, 0.0 }
0x29cb   :  { %8218 = vadd.xlane.f32.xlu0 %v8217_v45 }
0x29d0   :  { %7679 = vrot.lane.b32.xlu1 %v14113_v33, %s12790_s1 }
0x29f8   :  { %8271 = vxpose.xlu0.b32.start [1/2] (short) (narrow) %v7666_v23, 8 }
0x29f9   :  { %8239 = vxpose.xlu1.b32.start [1/2] (short) (narrow) %v14116_v19, 8 }
0x29fc   :  { %8272 = vxpose.xlu0.b32.end [2/2] (short) (narrow) %v7668_v28, 8 }
0x29fd   :  { %8240 = vxpose.xlu1.b32.end [2/2] (short) (narrow) %v14113_v33, 8 }
0x2a00   :  { %8303 = vxpose.xlu0.b32.start [1/2] (short) (narrow) %v7672_v13, 8 }
0x2a04   :  { %8304 = vxpose.xlu0.b32.end [2/2] (short) (narrow) %v7674_v46, 8 }
0x2a06   :  { %v8204_v20 = vpop.xlane.xlu1 %8203 }
0x2a07   :  { %12581 = vrcp.f32 %v8204_v20 }
0x2a08   :  { %8335 = vxpose.xlu0.b32.start [1/2] (short) (narrow) %v7678_v7, 8 }
0x2a0a   :  { %v8201_v17 = vpop.xlane.xlu1 %8200 }
0x2a0b   :  { %12583 = vrcp.f32 %v8201_v17 }
0x2a11   :  { %v12582_v57 = vpop.eup %12581 }
0x2a12   :  { %v8226_v48 = vmul.f32 %v12582_v57, %v14128_v15 }
0x2a15   :  { %v12584_v37 = vpop.eup %12583 }
0x2a16   :  { %v8224_v22 = vmul.f32 %v12584_v37, %v14132_v36 }
0x2a18   :  { %v12295_v19 = vpack.c.bf16 %v8226_v48, %v8224_v22 }
0x2a1a   :  { %12297 = vmatpush3.bf16.xpose.msk.msra.mxu0 %vm13116_vm5, %v12295_v19 }
0x2a1b   :  { %12302 = vmatprep.subr.bf16.mxu0 %v12793_v44 }
0x2a3c   :  { %v8210_v33 = vpop.xlane.xlu1 %8209 }
0x2a3d   :  { %12585 = vrcp.f32 %v8210_v33 }
0x2a47   :  { %v12586_v34 = vpop.eup %12585 }
0x2a48   :  { %v8216_v9 = vpop.xlane.xlu1 %8215  ;;  %v8230_v12 = vmul.f32 %v12586_v34, %v14136_v4 }
0x2a4c   :  { %v8207_v11 = vpop.xlane.xlu1 %8206 }
0x2a4d   :  { %12587 = vrcp.f32 %v8207_v11 }
0x2a50   :  { %v7680_v6 = vpop.permute.xlu1 %7679  ;;  %v8213_v38 = vpop.xlane.xlu0 %8212 }
0x2a51   :  { %8336 = vxpose.xlu0.b32.end [2/2] (short) (narrow) %v7680_v6, 8 }
0x2a54   :  { %v8222_v21 = vpop.xlane.xlu0 %8221 }
0x2a57   :  { %v12588_v1 = vpop.eup %12587 }
0x2a58   :  { %v8228_v15 = vmul.f32 %v12588_v1, %v12574_v49  ;;  %v8219_v43 = vpop.xlane.xlu0 %8218 }
0x2a59   :  { %12589 = vrcp.f32 %v8219_v43 }
0x2a5a   :  { %v12299_v36 = vpack.c.bf16 %v8230_v12, %v8228_v15  ;;  %12591 = vrcp.f32 %v8213_v38 }
0x2a5b   :  { %12593 = vrcp.f32 %v8222_v21 }
0x2a5c   :  { %12301 = vmatpush3.bf16.xpose.msk.msra.mxu1 %vm13116_vm5, %v12299_v36  ;;  %12595 = vrcp.f32 %v8216_v9 }
0x2a5d   :  { %12306 = vmatprep.subr.bf16.mxu1 %v12793_v44 }
0x2a63   :  { %v12590_v31 = vpop.eup %12589 }
0x2a64   :  { %v12592_v3 = vpop.eup %12591  ;;  %v8236_v45 = vmul.f32 %v12590_v31, %v12580_v39 }
0x2a65   :  { %v12594_v2 = vpop.eup %12593  ;;  %v8232_v4 = vmul.f32 %v12592_v3, %v12576_v16 }
0x2a66   :  { %v12596_v61 = vpop.eup %12595  ;;  %v8238_v49 = vmul.f32 %v12594_v2, %v12578_v35 }
0x2a67   :  { %v8234_v23 = vmul.f32 %v12596_v61, %v14140_v59 }
0x2a68   :  { %v12307_v28 = vpack.c.bf16 %v8238_v49, %v8236_v45 }
0x2a69   :  { %v12303_v46 = vpack.c.bf16 %v8234_v23, %v8232_v4 }
0x2a78   :  { %v8287_v13 = vpop.trf.xlu0 }
0x2a79   :  { %11839 = vmatmul.mubr.msk.f32.vlgmr.msra.gmra.mrb[50].mxu1 %vm955_vm3, %v8287_v13  ;;  %v8255_v7 = vpop.trf.xlu1 }
0x2a7a   :  { %12309 = vmatpush3.bf16.xpose.msk.msra.mxu1 %vm13116_vm5, %v12307_v28  ;;  %11832 = vmatmul.mubr.msk.f32.vlgmr.msra.gmra.mrb[50].mxu0 %vm955_vm3, %v8255_v7 }
0x2a7b   :  { %12305 = vmatpush3.bf16.xpose.msk.msra.mxu0 %vm13116_vm5, %v12303_v46  ;;  %11845 = vmatprep.mubr.msk.f32.mxu0 %vm12794_vm4, %v12795_v27 }
0x2a7c   :  { %12312 = vmatprep.subr.msk.bf16.mxu0 %vm12902_vm1, %v13390_v53  ;;  %11852 = vmatprep.mubr.msk.f32.mxu1 %vm12794_vm4, %v12795_v27 }
0x2a7d   :  { %12324 = vmatprep.subr.msk.bf16.mxu1 %vm12902_vm1, %v13472_v41 }
0x2a80   :  { %v8319_v59 = vpop.trf.xlu0 }
0x2a82   :  { %11846 = vmatmul.mubr.msk.f32.vlgmr.msra.gmra.mrb[52].mxu0 %vm955_vm3, %v8319_v59 }
0x2a83   :  { %12315 = vmatpush3.bf16.xpose.msk.msra.mxu0 %vm12902_vm1, %v13390_v53 }
0x2a84   :  { %12318 = vmatprep.subr.msk.bf16.mxu0 %vm12902_vm1, %v13428_v50 }
0x2a8b   :  { %12321 = vmatpush3.bf16.xpose.msk.msra.mxu0 %vm12902_vm1, %v13428_v50 }
0x2a8c   :  { %11877 = vmatprep.subr.mxu0 %v13504_v5 }
0x2acd   :  { %v8351_v16 = vpop.trf.xlu0 }
0x2ace   :  { %11853 = vmatmul.mubr.msk.f32.vlgmr.msra.gmra.mrb[52].mxu1 %vm955_vm3, %v8351_v16 }
0x2acf   :  { %12327 = vmatpush3.bf16.xpose.msk.msra.mxu1 %vm12902_vm1, %v13472_v41 }
0x2ad0   :  { %12330 = vmatprep.subr.msk.bf16.mxu1 %vm12902_vm1, %v13484_v60 }
0x2ad7   :  { %12333 = vmatpush3.bf16.xpose.msk.msra.mxu1 %vm12902_vm1, %v13484_v60 }
0x2ad8   :  { %11882 = vmatprep.subr.mxu1 %v13542_v55 }
0x2b4c   :  { %v8521_v53 = vpop.f32.mrb[50].mxu1 }
0x2b4d   :  { %v8442_v50 = vpop.f32.mrb[50].mxu0  ;;  %v11840_v35 = vpop.f32.mrb[51].mxu1 }
0x2b4e   :  { %8683 = vxpose.xlu1.b32.start.end [1/1] (short) (narrow) %v8442_v50, 16  ;;  %v11833_v39 = vpop.f32.mrb[51].mxu0 }
0x2b53   :  { %8715 = vxpose.xlu1.b32.start.end [1/1] (short) (narrow) %v8521_v53, 16 }
0x2b55   :  { %v8600_v20 = vpop.f32.mrb[52].mxu0 }
0x2b56   :  { %8747 = vxpose.xlu0.b32.start.end [1/1] (short) (narrow) %v8600_v20, 16  ;;  %v11847_v17 = vpop.f32.mrb[53].mxu0 }
0x2ba1   :  { %v8679_v41 = vpop.f32.mrb[52].mxu1 }
0x2ba2   :  { %8779 = vxpose.xlu1.b32.start.end [1/1] (short) (narrow) %v8679_v41, 16  ;;  %v11854_v57 = vpop.f32.mrb[53].mxu1 }
0x2bce   :  { %v8699_v37 = vpop.trf.xlu1 }
0x2bd2   :  { %v8700_v48 = vpop.trf.xlu1 }
0x2bd6   :  { %v8731_v22 = vpop.trf.xlu1  ;;  %v8763_v33 = vpop.trf.xlu0 }
0x2bd7   :  { %v8811_v60 = vcombine.low %v8699_v37, %v8763_v33  ;;  %v8812_v9 = vcombine.high %v8699_v37, %v8763_v33 }
0x2bd9   :  { %v8819_v12 = vrot.slane %v8811_v60, %v13150_v51  ;;  %v8826_v15 = vrot.slane %v8812_v9, %v13150_v51 }
0x2bda   :  { %v8732_v19 = vpop.trf.xlu1  ;;  %v8764_v6 = vpop.trf.xlu0 }
0x2bdb   :  { %v8879_v21 = vcombine.low %v8700_v48, %v8764_v6  ;;  %v8880_v43 = vcombine.high %v8700_v48, %v8764_v6 }
0x2bdd   :  { %v8887_v46 = vrot.slane %v8879_v21, %v13150_v51  ;;  %v8894_v59 = vrot.slane %v8880_v43, %v13150_v51 }
0x2c22   :  { %v8795_v11 = vpop.trf.xlu1 }
0x2c23   :  { %v8827_v34 = vcombine.low %v8731_v22, %v8795_v11  ;;  %v8828_v1 = vcombine.high %v8731_v22, %v8795_v11 }
0x2c25   :  { %v8835_v38 = vrot.slane %v8827_v34, %v13150_v51  ;;  %v8842_v36 = vrot.slane %v8828_v1, %v13150_v51 }
0x2c26   :  { %v8796_v31 = vpop.trf.xlu1 }
0x2c27   :  { %v8843_v3 = vcombine.low %v8819_v12, %v8835_v38  ;;  %v8844_v2 = vcombine.high %v8819_v12, %v8835_v38  ;;  %v8859_v61 = vcombine.low %v8826_v15, %v8842_v36  ;;  %v8860_v45 = vcombine.high %v8826_v15, %v8842_v36 }
0x2c28   :  { %v8895_v4 = vcombine.low %v8732_v19, %v8796_v31  ;;  %v8896_v49 = vcombine.high %v8732_v19, %v8796_v31 }
0x2c29   :  { %v8851_v23 = vrot.slane %v8843_v3, %v13152_v58  ;;  %v8858_v13 = vrot.slane %v8844_v2, %v13152_v58  ;;  %v8867_v28 = vrot.slane %v8859_v61, %v13152_v58  ;;  %v8874_v7 = vrot.slane %v8860_v45, %v13152_v58 }
0x2c2a   :  { %v8903_v16 = vrot.slane %v8895_v4, %v13150_v51  ;;  %v8910_v53 = vrot.slane %v8896_v49, %v13150_v51 }
0x2c2b   :  { %v8947_v50 = vcombine.low %v8851_v23, %v8858_v13  ;;  %v11041_v35 = vcombine.high %v8851_v23, %v8858_v13  ;;  %v8963_v39 = vcombine.low %v8867_v28, %v8874_v7  ;;  %v11042_v20 = vcombine.high %v8867_v28, %v8874_v7 }
0x2c2c   :  { %v8911_v17 = vcombine.low %v8887_v46, %v8903_v16  ;;  %v8912_v41 = vcombine.high %v8887_v46, %v8903_v16  ;;  %v8927_v57 = vcombine.low %v8894_v59, %v8910_v53  ;;  %v8928_v37 = vcombine.high %v8894_v59, %v8910_v53 }
0x2c2d   :  { %v8954_v48 = vrot.slane %v8947_v50, %v13150_v51  ;;  %v8962_v22 = vrot.slane %v11041_v35, %v13150_v51  ;;  %v8970_v19 = vrot.slane %v8963_v39, %v13150_v51  ;;  %v8978_v33 = vrot.slane %v11042_v20, %v13150_v51 }
0x2c2e   :  { %v8919_v60 = vrot.slane %v8911_v17, %v13152_v58  ;;  %v8926_v9 = vrot.slane %v8912_v41, %v13152_v58  ;;  %v8935_v11 = vrot.slane %v8927_v57, %v13152_v58  ;;  %v8942_v6 = vrot.slane %v8928_v37, %v13152_v58 }
0x2c2f   :  { %v8980_v34 = vcombine.high %v8954_v48, %v8962_v22  ;;  %v8996_v1 = vcombine.high %v8970_v19, %v8978_v33  ;;  %v8979_v12 = vcombine.low %v8954_v48, %v8962_v22  ;;  %v8995_v15 = vcombine.low %v8970_v19, %v8978_v33 }
0x2c30   :  { %v9015_v38 = vcombine.low %v8919_v60, %v8926_v9  ;;  %v11043_v36 = vcombine.high %v8919_v60, %v8926_v9  ;;  %v9031_v21 = vcombine.low %v8935_v11, %v8942_v6  ;;  %v11044_v43 = vcombine.high %v8935_v11, %v8942_v6 }
0x2c31   :  { %v8994_v31 = vrot.slane %v8980_v34, %v13152_v58  ;;  %v9010_v3 = vrot.slane %v8996_v1, %v13152_v58  ;;  %v8987_v2 = vrot.slane %v8979_v12, %v13152_v58  ;;  %v9003_v61 = vrot.slane %v8995_v15, %v13152_v58 }
0x2c32   :  { %v9022_v45 = vrot.slane %v9015_v38, %v13150_v51  ;;  %v9030_v4 = vrot.slane %v11043_v36, %v13150_v51  ;;  %v9038_v49 = vrot.slane %v9031_v21, %v13150_v51  ;;  %v9046_v23 = vrot.slane %v11044_v43, %v13150_v51  ;;  %v12651_v21 = vld [vmem:[#allocation8 + $0x34] ss:$0 sm:$0xff] }
0x2c33   :  { %v9013_v13 = vcombine.low %v8994_v31, %v9010_v3  ;;  %v9012_v28 = vcombine.high %v8987_v2, %v9003_v61  ;;  %v9011_v7 = vcombine.low %v8987_v2, %v9003_v61  ;;  %v9014_v48 = vcombine.high %v8994_v31, %v9010_v3 }
0x2c34   :  { %v9048_v46 = vcombine.high %v9022_v45, %v9030_v4  ;;  %v9064_v59 = vcombine.high %v9038_v49, %v9046_v23  ;;  %v9047_v16 = vcombine.low %v9022_v45, %v9030_v4  ;;  %v9063_v53 = vcombine.low %v9038_v49, %v9046_v23 }
0x2c35   :  { %9093 = vrot.lane.b32.xlu1 %v9013_v13, %s12798_s15  ;;  %9085 = vrot.lane.b32.xlu0 %v9012_v28, %s12785_s28 }
0x2c36   :  { %v9062_v50 = vrot.slane %v9048_v46, %v13152_v58  ;;  %v9078_v35 = vrot.slane %v9064_v59, %v13152_v58  ;;  %v9055_v39 = vrot.slane %v9047_v16, %v13152_v58  ;;  %v9071_v20 = vrot.slane %v9063_v53, %v13152_v58 }
0x2c38   :  { %v9082_v17 = vcombine.high %v9062_v50, %v9078_v35  ;;  %v9080_v41 = vcombine.high %v9055_v39, %v9071_v20  ;;  %v9079_v57 = vcombine.low %v9055_v39, %v9071_v20  ;;  %v9081_v37 = vcombine.low %v9062_v50, %v9078_v35 }
0x2c3a   :  { %9103 = vrot.lane.b32.xlu0 %v9082_v17, %s12799_s16  ;;  %9087 = vrot.lane.b32.xlu1 %v9080_v41, %s12785_s28 }
0x2c3e   :  { %9095 = vrot.lane.b32.xlu1 %v9081_v37, %s12798_s15 }
0x2c42   :  { %9101 = vrot.lane.b32.xlu1 %v9014_v48, %s12799_s16 }
0x2ca7   :  { %v9094_v22 = vpop.permute.xlu1 %9093  ;;  %v9086_v33 = vpop.permute.xlu0 %9085 }
0x2ca8   :  { %v9107_v9 = vsel %vm638_vm2, %v9011_v7, %v9086_v33 }
0x2ca9   :  { %v9109_v1 = vsel %vm955_vm3, %v9107_v9, %v9094_v22 }
0x2cac   :  { %v9088_v19 = vpop.permute.xlu1 %9087  ;;  %v9104_v12 = vpop.permute.xlu0 %9103 }
0x2cad   :  { %v9108_v11 = vsel %vm638_vm2, %v9079_v57, %v9088_v19  ;;  %v12652_v57 = vld [vmem:[#allocation8 + $0x3c] ss:$0 sm:$0xff]  ;;  %v12653_v19 = vld [vmem:[#allocation8 + $0x3d] ss:$0 sm:$0xff] }
0x2cb0   :  { %v9096_v60 = vpop.permute.xlu1 %9095 }
0x2cb1   :  { %v9110_v6 = vsel %vm955_vm3, %v9108_v11, %v9096_v60 }
0x2cb2   :  { %v9112_v38 = vsel %vm1940_vm6, %v9110_v6, %v9104_v12  ;;  %v12654_v6 = vld [vmem:[#allocation8 + $0x35] ss:$0 sm:$0xff] }
0x2cb4   :  { %v9102_v34 = vpop.permute.xlu1 %9101 }
0x2cb5   :  { %v9111_v15 = vsel %vm1940_vm6, %v9109_v1, %v9102_v34 }
0x2cb6   :  { %11863 = vmatprep.mubr.msk.f32.mxu0 %vm233_vm0, %v9111_v15 }
0x2cb7   :  { %11864 = vmatmul.mubr.msk.f32.vlgmr.msra.gmra.mrb[54].mxu0 %vm233_vm0, %v9112_v38 }
0x2cb8   :  { %11878 = vmatpush3.msra.mxu0 %v13504_v5 }
0x2cb9   :  { %11887 = vmatprep.subr.mxu0 %v13534_v52 }
0x2d8a   :  { %v11865_v36 = vpop.f32.mrb[54].mxu0 }
0x2d8b   :  { %v9191_v43 = vadd.f32 %v12651_v21, %v11865_v36  ;;  %v9185_v31 = vpop.f32.mrb[55].mxu0 }
0x2d8c   :  { %v9186_v3 = vadd.f32 %v12651_v21, %v9185_v31 }
0x2d8d   :  { %v9195_v2 = vadd.f32 %v9191_v43, %v14046_v26 }
0x2d8e   :  { %v9194_v61 = vadd.f32 %v9186_v3, %v14048_v18  ;;  %v12655_v3 = vld [vmem:[#allocation8 + $0x28] sm:$0xff] }
0x2d8f   :  { %v9199_v45 = vsel %vm233_vm0, %v9195_v2, 0.0 }
0x2d90   :  { %9200 = vadd.xlane.f32.xlu0 %v9199_v45  ;;  %v9196_v4 = vsel %vm233_vm0, %v9194_v61, 0.0  ;;  %v12656_v45 = vld [vmem:[#allocation8 + $0x20] sm:$0xff] }
0x2d91   :  { %9197 = vadd.xlane.f32.xlu1 %v9196_v4 }
0x2e1d   :  { %v9201_v49 = vpop.xlane.xlu0 %9200 }
0x2e1e   :  { %v9203_v23 = vmul.f32 0.03125, %v9201_v49  ;;  %v9198_v5 = vpop.xlane.xlu1 %9197 }
0x2e1f   :  { %v9202_v13 = vmul.f32 0.03125, %v9198_v5 }
0x2e20   :  { %v9205_v28 = vsub.f32 %v9195_v2, %v9203_v23 }
0x2e21   :  { %v9204_v7 = vsub.f32 %v9194_v61, %v9202_v13 }
0x2e22   :  { %v9207_v16 = vmul.f32 %v9205_v28, %v9205_v28 }
0x2e23   :  { %v9206_v46 = vmul.f32 %v9204_v7, %v9204_v7 }
0x2e24   :  { %v9211_v26 = vsel %vm233_vm0, %v9207_v16, 0.0 }
0x2e25   :  { %v9208_v59 = vsel %vm233_vm0, %v9206_v46, 0.0 }
0x2e26   :  { %9209 = vadd.xlane.f32.xlu0 %v9208_v59 }
0x2e2a   :  { %9212 = vadd.xlane.f32.xlu0 %v9211_v26 }
0x2eb3   :  { %v9210_v18 = vpop.xlane.xlu0 %9209 }
0x2eb4   :  { %v9214_v53 = vmul.f32 0.03125, %v9210_v18 }
0x2eb6   :  { %v9216_v50 = vadd.f32 1e-05, %v9214_v53 }
0x2eb7   :  { %v9213_v35 = vpop.xlane.xlu0 %9212 }
0x2eb8   :  { %12597 = vrsqrt.f32 %v9216_v50  ;;  %v9215_v39 = vmul.f32 0.03125, %v9213_v35 }
0x2eba   :  { %v9217_v20 = vadd.f32 1e-05, %v9215_v39 }
0x2ebc   :  { %12599 = vrsqrt.f32 %v9217_v20 }
0x2ec2   :  { %v12598_v17 = vpop.eup %12597 }
0x2ec3   :  { %v9220_v41 = vmul.f32 %v12598_v17, %v9204_v7 }
0x2ec5   :  { %v9222_v37 = vmul.f32 %v12652_v57, %v9220_v41 }
0x2ec6   :  { %v12600_v48 = vpop.eup %12599 }
0x2ec7   :  { %v9221_v22 = vmul.f32 %v12600_v48, %v9205_v28  ;;  %v14254_v33 = vadd.f32 %v12653_v19, %v9222_v37 }
0x2ec9   :  { %11874 = vmatprep.mubr.msk.f32.mxu1 %vm233_vm0, %v14254_v33  ;;  %v9223_v60 = vmul.f32 %v12652_v57, %v9221_v22 }
0x2ecb   :  { %v14258_v9 = vadd.f32 %v12653_v19, %v9223_v60 }
0x2ecd   :  { %11875 = vmatmul.mubr.msk.f32.vlgmr.msra.gmra.mrb[54].mxu1 %vm233_vm0, %v14258_v9 }
0x2ece   :  { %11883 = vmatpush3.msra.mxu1 %v13542_v55 }
0x2ecf   :  { %11892 = vmatprep.subr.mxu1 %v13544_v54 }
0x2fa0   :  { %v11876_v11 = vpop.f32.mrb[54].mxu1 }
0x2fa1   :  { %v9304_v34 = vadd.f32 %v12654_v6, %v11876_v11  ;;  %v9298_v1 = vpop.f32.mrb[55].mxu1 }
0x2fa2   :  { %v9299_v12 = vadd.f32 %v12654_v6, %v9298_v1 }
0x2fa3   :  { %v9308_v15 = vmul.f32 0.35355338, %v9304_v34 }
0x2fa4   :  { %v9307_v38 = vmul.f32 0.35355338, %v9299_v12 }
0x2fa5   :  { %9313 = vrot.lane.b32.xlu0 %v9308_v15, %s12789_s12 }
0x2fa6   :  { %9311 = vrot.lane.b32.xlu1 %v9307_v38, %s12789_s12  ;;  %11879 = vmatprep.mubr.msk.f32.mxu0 %vm638_vm2, %v9307_v38 }
0x2fa7   :  { %11880 = vmatmul.mubr.msk.f32.vlgmr.msra.gmra.mrb[56].mxu0 %vm638_vm2, %v9308_v15 }
0x2fa8   :  { %11888 = vmatpush3.msra.mxu0 %v13534_v52 }
0x2fa9   :  { %9321 = vrot.lane.b32.xlu0 %v9308_v15, %s12790_s1  ;;  %12334 = vmatprep.subr.bf16.mxu0 %v12793_v44 }
0x2faa   :  { %9315 = vrot.lane.b32.xlu1 %v9307_v38, %s12788_s3 }
0x2fae   :  { %9319 = vrot.lane.b32.xlu1 %v9307_v38, %s12790_s1 }
0x2fb2   :  { %9317 = vrot.lane.b32.xlu1 %v9308_v15, %s12788_s3 }
0x3017   :  { %v9314_v36 = vpop.permute.xlu0 %9313 }
0x3018   :  { %v9312_v55 = vpop.permute.xlu1 %9311 }
0x3019   :  { %11884 = vmatprep.mubr.msk.f32.mxu1 %vm638_vm2, %v9312_v55 }
0x301a   :  { %11885 = vmatmul.mubr.msk.f32.vlgmr.msra.gmra.mrb[56].mxu1 %vm638_vm2, %v9314_v36 }
0x301b   :  { %11893 = vmatpush3.msra.mxu1 %v13544_v54  ;;  %v9322_v43 = vpop.permute.xlu0 %9321 }
0x301c   :  { %v9316_v21 = vpop.permute.xlu1 %9315  ;;  %12338 = vmatprep.subr.bf16.mxu1 %v12793_v44 }
0x301d   :  { %11889 = vmatprep.mubr.msk.f32.mxu0 %vm638_vm2, %v9316_v21 }
0x3020   :  { %v9320_v52 = vpop.permute.xlu1 %9319 }
0x3021   :  { %11894 = vmatprep.mubr.msk.f32.mxu1 %vm638_vm2, %v9320_v52 }
0x3022   :  { %11895 = vmatmul.mubr.msk.f32.vlgmr.msra.gmra.mrb[58].mxu1 %vm638_vm2, %v9322_v43 }
0x3023   :  { %11908 = vmatprep.mubr.msk.f32.mxu1 %vm12794_vm4, %v12795_v27 }
0x3024   :  { %v9318_v31 = vpop.permute.xlu1 %9317 }
0x3025   :  { %11890 = vmatmul.mubr.msk.f32.vlgmr.msra.gmra.mrb[58].mxu0 %vm638_vm2, %v9318_v31 }
0x3026   :  { %11901 = vmatprep.mubr.msk.f32.mxu0 %vm12794_vm4, %v12795_v27 }
0x307a   :  { %v11881_v54 = vpop.f32.mrb[56].mxu0 }
0x307b   :  { %v9399_v2 = vadd.f32 %v12655_v3, %v11881_v54  ;;  %v9393_v61 = vpop.f32.mrb[57].mxu0 }
0x307c   :  { %v9394_v4 = vadd.f32 %v12656_v45, %v9393_v61 }
0x307d   :  { %v9642_v49 = vsel %vm955_vm3, %v9399_v2, -inf }
0x307e   :  { %9643 = vmax.xlane.f32.xlu0 %v9642_v49  ;;  %v9639_v23 = vsel %vm955_vm3, %v9394_v4, -inf }
0x307f   :  { %9640 = vmax.xlane.f32.xlu1 %v9639_v23 }
0x30ed   :  { %v11886_v5 = vpop.f32.mrb[56].mxu1 }
0x30ee   :  { %v9478_v13 = vadd.f32 %v12655_v3, %v11886_v5  ;;  %v9472_v28 = vpop.f32.mrb[57].mxu1 }
0x30ef   :  { %v9473_v7 = vadd.f32 %v12656_v45, %v9472_v28 }
0x30f0   :  { %v9648_v46 = vsel %vm955_vm3, %v9478_v13, -inf }
0x30f1   :  { %9649 = vmax.xlane.f32.xlu0 %v9648_v46  ;;  %v9645_v59 = vsel %vm955_vm3, %v9473_v7, -inf }
0x30f5   :  { %v11896_v16 = vpop.f32.mrb[58].mxu1  ;;  %9646 = vmax.xlane.f32.xlu0 %v9645_v59 }
0x30f6   :  { %v9630_v26 = vpop.f32.mrb[59].mxu1  ;;  %v9636_v39 = vadd.f32 %v12655_v3, %v11896_v16 }
0x30f7   :  { %v9631_v17 = vadd.f32 %v12656_v45, %v9630_v26 }
0x30f8   :  { %v11891_v18 = vpop.f32.mrb[58].mxu0  ;;  %v9660_v57 = vsel %vm955_vm3, %v9636_v39, -inf }
0x30f9   :  { %v9557_v53 = vadd.f32 %v12655_v3, %v11891_v18  ;;  %v9551_v50 = vpop.f32.mrb[59].mxu0  ;;  %v9657_v37 = vsel %vm955_vm3, %v9631_v17, -inf }
0x30fa   :  { %v9552_v35 = vadd.f32 %v12656_v45, %v9551_v50 }
0x30fb   :  { %v9654_v20 = vsel %vm955_vm3, %v9557_v53, -inf }
0x30fc   :  { %9655 = vmax.xlane.f32.xlu0 %v9654_v20  ;;  %v9651_v41 = vsel %vm955_vm3, %v9552_v35, -inf }
0x30fd   :  { %9652 = vmax.xlane.f32.xlu1 %v9651_v41 }
0x3100   :  { %9661 = vmax.xlane.f32.xlu0 %v9660_v57 }
0x3101   :  { %9658 = vmax.xlane.f32.xlu1 %v9657_v37 }
0x310b   :  { %v9644_v48 = vpop.xlane.xlu0 %9643 }
0x310c   :  { %v9664_v22 = vsub.f32 %v9399_v2, %v9644_v48  ;;  %v9641_v19 = vpop.xlane.xlu1 %9640 }
0x310d   :  { %v9663_v60 = vsub.f32 %v9394_v4, %v9641_v19 }
0x310e   :  { %v9673_v11 = vmul.f32 1.442695, %v9664_v22 }
0x310f   :  { %v9671_v6 = vmul.f32 1.442695, %v9663_v60 }
0x3110   :  { %12601 = vpow2.f32 %v9673_v11 }
0x3111   :  { %12603 = vpow2.f32 %v9671_v6 }
0x311a   :  { %v12602_v34 = vpop.eup %12601 }
0x311b   :  { %v12604_v1 = vpop.eup %12603  ;;  %v9690_v12 = vsel %vm955_vm3, %v12602_v34, 0.0 }
0x311c   :  { %9691 = vadd.xlane.f32.xlu0 %v9690_v12  ;;  %v9687_v15 = vsel %vm955_vm3, %v12604_v1, 0.0 }
0x311d   :  { %9688 = vadd.xlane.f32.xlu1 %v9687_v15 }
0x317e   :  { %v9650_v38 = vpop.xlane.xlu0 %9649 }
0x317f   :  { %v9666_v55 = vsub.f32 %v9478_v13, %v9650_v38 }
0x3181   :  { %v9677_v36 = vmul.f32 1.442695, %v9666_v55 }
0x3182   :  { %v9647_v21 = vpop.xlane.xlu0 %9646 }
0x3183   :  { %12605 = vpow2.f32 %v9677_v36  ;;  %v9665_v52 = vsub.f32 %v9473_v7, %v9647_v21 }
0x3185   :  { %v9675_v43 = vmul.f32 1.442695, %v9665_v52 }
0x3187   :  { %12607 = vpow2.f32 %v9675_v43 }
0x3189   :  { %v9656_v31 = vpop.xlane.xlu0 %9655 }
0x318a   :  { %v9668_v54 = vsub.f32 %v9557_v53, %v9656_v31  ;;  %v9653_v3 = vpop.xlane.xlu1 %9652 }
0x318b   :  { %v9667_v2 = vsub.f32 %v9552_v35, %v9653_v3 }
0x318c   :  { %v9681_v61 = vmul.f32 1.442695, %v9668_v54 }
0x318d   :  { %v12606_v45 = vpop.eup %12605  ;;  %v9679_v4 = vmul.f32 1.442695, %v9667_v2  ;;  %v9662_v49 = vpop.xlane.xlu0 %9661 }
0x318e   :  { %12609 = vpow2.f32 %v9681_v61  ;;  %v9670_v23 = vsub.f32 %v9636_v39, %v9662_v49  ;;  %v9659_v5 = vpop.xlane.xlu1 %9658  ;;  %v9696_v28 = vsel %vm955_vm3, %v12606_v45, 0.0 }
0x318f   :  { %12611 = vpow2.f32 %v9679_v4  ;;  %v9669_v13 = vsub.f32 %v9631_v17, %v9659_v5  ;;  %9697 = vadd.xlane.f32.xlu0 %v9696_v28 }
0x3190   :  { %v9685_v46 = vmul.f32 1.442695, %v9670_v23 }
0x3191   :  { %v12608_v7 = vpop.eup %12607  ;;  %v9683_v59 = vmul.f32 1.442695, %v9669_v13 }
0x3192   :  { %12613 = vpow2.f32 %v9685_v46  ;;  %v9693_v16 = vsel %vm955_vm3, %v12608_v7, 0.0 }
0x3193   :  { %12615 = vpow2.f32 %v9683_v59  ;;  %9694 = vadd.xlane.f32.xlu1 %v9693_v16 }
0x3198   :  { %v12610_v26 = vpop.eup %12609 }
0x3199   :  { %v12612_v18 = vpop.eup %12611  ;;  %v9702_v53 = vsel %vm955_vm3, %v12610_v26, 0.0 }
0x319a   :  { %9703 = vadd.xlane.f32.xlu0 %v9702_v53  ;;  %v9699_v50 = vsel %vm955_vm3, %v12612_v18, 0.0 }
0x319b   :  { %9700 = vadd.xlane.f32.xlu1 %v9699_v50 }
0x319c   :  { %v12614_v35 = vpop.eup %12613 }
0x319d   :  { %v12616_v39 = vpop.eup %12615  ;;  %v9708_v20 = vsel %vm955_vm3, %v12614_v35, 0.0 }
0x319e   :  { %9709 = vadd.xlane.f32.xlu0 %v9708_v20  ;;  %v9705_v17 = vsel %vm955_vm3, %v12616_v39, 0.0 }
0x319f   :  { %9706 = vadd.xlane.f32.xlu1 %v9705_v17 }
0x31a9   :  { %v9692_v41 = vpop.xlane.xlu0 %9691 }
0x31aa   :  { %12617 = vrcp.f32 %v9692_v41  ;;  %v9689_v57 = vpop.xlane.xlu1 %9688 }
0x31ab   :  { %12619 = vrcp.f32 %v9689_v57 }
0x31b4   :  { %v12618_v37 = vpop.eup %12617 }
0x31b5   :  { %v12620_v48 = vpop.eup %12619  ;;  %v9714_v22 = vmul.f32 %v12618_v37, %v12602_v34 }
0x31b6   :  { %v9712_v19 = vmul.f32 %v12620_v48, %v12604_v1 }
0x31b8   :  { %v12335_v60 = vpack.c.bf16 %v9714_v22, %v9712_v19 }
0x31ba   :  { %12337 = vmatpush3.bf16.xpose.msk.msra.mxu0 %vm13116_vm5, %v12335_v60 }
0x31bb   :  { %12342 = vmatprep.subr.bf16.mxu0 %v12793_v44 }
0x31c1   :  { %11902 = vmatmul.mubr.msk.f32.vlgmr.msra.gmra.mrb[60].mxu0 %vm955_vm3, %v13605_v29 }
0x31c2   :  { %11915 = vmatprep.mubr.msk.f32.mxu0 %vm12794_vm4, %v12795_v27 }
0x321c   :  { %v9698_v11 = vpop.xlane.xlu0 %9697 }
0x321d   :  { %12621 = vrcp.f32 %v9698_v11 }
0x3220   :  { %v9695_v6 = vpop.xlane.xlu1 %9694 }
0x3221   :  { %12623 = vrcp.f32 %v9695_v6 }
0x3227   :  { %v9704_v12 = vpop.xlane.xlu0 %9703  ;;  %v12622_v1 = vpop.eup %12621 }
0x3228   :  { %12625 = vrcp.f32 %v9704_v12  ;;  %v9701_v34 = vpop.xlane.xlu1 %9700  ;;  %v9718_v55 = vmul.f32 %v12622_v1, %v12606_v45 }
0x3229   :  { %12627 = vrcp.f32 %v9701_v34 }
0x322b   :  { %v12624_v15 = vpop.eup %12623  ;;  %v9710_v38 = vpop.xlane.xlu0 %9709 }
0x322c   :  { %v9716_v36 = vmul.f32 %v12624_v15, %v12608_v7  ;;  %12629 = vrcp.f32 %v9710_v38  ;;  %v9707_v21 = vpop.xlane.xlu1 %9706 }
0x322d   :  { %12631 = vrcp.f32 %v9707_v21 }
0x322e   :  { %v12339_v29 = vpack.c.bf16 %v9718_v55, %v9716_v36 }
0x3230   :  { %12341 = vmatpush3.bf16.xpose.msk.msra.mxu1 %vm13116_vm5, %v12339_v29 }
0x3231   :  { %12346 = vmatprep.subr.bf16.mxu1 %v12793_v44 }
0x3232   :  { %v12626_v52 = vpop.eup %12625 }
0x3233   :  { %v12628_v43 = vpop.eup %12627  ;;  %v9722_v31 = vmul.f32 %v12626_v52, %v12610_v26 }
0x3234   :  { %v9720_v54 = vmul.f32 %v12628_v43, %v12612_v18 }
0x3236   :  { %v12630_v3 = vpop.eup %12629  ;;  %v12343_v2 = vpack.c.bf16 %v9722_v31, %v9720_v54 }
0x3237   :  { %v12632_v61 = vpop.eup %12631  ;;  %v9726_v4 = vmul.f32 %v12630_v3, %v12614_v35  ;;  %11909 = vmatmul.mubr.msk.f32.vlgmr.msra.gmra.mrb[60].mxu1 %vm955_vm3, %v13614_v30 }
0x3238   :  { %v9724_v45 = vmul.f32 %v12632_v61, %v12616_v39  ;;  %12345 = vmatpush3.bf16.xpose.msk.msra.mxu0 %vm13116_vm5, %v12343_v2  ;;  %11922 = vmatprep.mubr.msk.f32.mxu1 %vm12794_vm4, %v12795_v27 }
0x3239   :  { %12352 = vmatprep.subr.msk.bf16.mxu0 %vm12902_vm1, %v13630_v32 }
0x323a   :  { %v12347_v44 = vpack.c.bf16 %v9726_v4, %v9724_v45 }
0x323c   :  { %12349 = vmatpush3.bf16.xpose.msk.msra.mxu1 %vm13116_vm5, %v12347_v44 }
0x323d   :  { %12364 = vmatprep.subr.msk.bf16.mxu1 %vm12902_vm1, %v13696_v62 }
0x323f   :  { %11916 = vmatmul.mubr.msk.f32.vlgmr.msra.gmra.mrb[62].mxu0 %vm955_vm3, %v13622_v24 }
0x3240   :  { %12355 = vmatpush3.bf16.xpose.msk.msra.mxu0 %vm12902_vm1, %v13630_v32 }
0x3241   :  { %12358 = vmatprep.subr.msk.bf16.mxu0 %vm12902_vm1, %v13668_v63 }
0x3243   :  { %11923 = vmatmul.mubr.msk.f32.vlgmr.msra.gmra.mrb[62].mxu1 %vm955_vm3, %v13626_v8 }
0x3244   :  { %12367 = vmatpush3.bf16.xpose.msk.msra.mxu1 %vm12902_vm1, %v13696_v62 }
0x3245   :  { %12370 = vmatprep.subr.msk.bf16.mxu1 %vm12902_vm1, %v13706_v47 }
0x3248   :  { %12361 = vmatpush3.bf16.xpose.msk.msra.mxu0 %vm12902_vm1, %v13668_v63 }
0x3249   :  { %12388 = vmatprep.subr.msk.bf16.mxu0 %vm13734_vm8, %v13730_v14 }
0x324c   :  { %12373 = vmatpush3.bf16.xpose.msk.msra.mxu1 %vm12902_vm1, %v13706_v47 }
0x324d   :  { %12376 = vmatprep.subr.msk.bf16.mxu1 %vm12902_vm1, %v13714_v56 }
0x3254   :  { %12379 = vmatpush3.bf16.xpose.msk.msra.mxu1 %vm12902_vm1, %v13714_v56 }
0x3255   :  { %12382 = vmatprep.subr.msk.bf16.mxu1 %vm12902_vm1, %v13722_v40 }
0x325c   :  { %12385 = vmatpush3.bf16.xpose.msk.msra.mxu1 %vm12902_vm1, %v13722_v40 }
0x3294   :  { %v9799_v27 = vpop.f32.mrb[60].mxu0 }
0x3295   :  { %10031 = vxpose.xlu1.b32.start.end [1/1] (short) (narrow) %v9799_v27, 16  ;;  %v11903_v42 = vpop.f32.mrb[61].mxu0 }
0x330a   :  { %v9875_v30 = vpop.f32.mrb[60].mxu1 }
0x330b   :  { %10063 = vxpose.xlu0.b32.start.end [1/1] (short) (narrow) %v9875_v30, 16  ;;  %v11910_v24 = vpop.f32.mrb[61].mxu1 }
0x3312   :  { %v9951_v8 = vpop.f32.mrb[62].mxu0 }
0x3313   :  { %10095 = vxpose.xlu0.b32.start.end [1/1] (short) (narrow) %v9951_v8, 16  ;;  %v11917_v32 = vpop.f32.mrb[63].mxu0 }
0x3315   :  { %v10047_v56 = vpop.trf.xlu1 }
0x3316   :  { %v10027_v63 = vpop.f32.mrb[62].mxu1 }
0x3317   :  { %10127 = vxpose.xlu1.b32.start.end [1/1] (short) (narrow) %v10027_v63, 16  ;;  %v11924_v62 = vpop.f32.mrb[63].mxu1 }
0x3319   :  { %v10048_v23 = vpop.trf.xlu1 }
0x338b   :  { %v10079_v47 = vpop.trf.xlu0 }
0x338f   :  { %v10080_v49 = vpop.trf.xlu0 }
0x3393   :  { %v10111_v5 = vpop.trf.xlu0 }
0x3394   :  { %v10159_v28 = vcombine.low %v10047_v56, %v10111_v5  ;;  %v10160_v0 = vcombine.high %v10047_v56, %v10111_v5 }
0x3396   :  { %v10167_v59 = vrot.slane %v10159_v28, %v13150_v51  ;;  %v10174_v16 = vrot.slane %v10160_v0, %v13150_v51 }
0x3397   :  { %v10143_v40 = vpop.trf.xlu1  ;;  %v10112_v13 = vpop.trf.xlu0 }
0x3398   :  { %v10175_v46 = vcombine.low %v10079_v47, %v10143_v40  ;;  %v10176_v7 = vcombine.high %v10079_v47, %v10143_v40  ;;  %v10227_v53 = vcombine.low %v10048_v23, %v10112_v13  ;;  %v10228_v50 = vcombine.high %v10048_v23, %v10112_v13 }
0x339a   :  { %v10183_v26 = vrot.slane %v10175_v46, %v13150_v51  ;;  %v10190_v18 = vrot.slane %v10176_v7, %v13150_v51  ;;  %v10235_v11 = vrot.slane %v10227_v53, %v13150_v51  ;;  %v10242_v6 = vrot.slane %v10228_v50, %v13150_v51 }
0x339b   :  { %v10144_v35 = vpop.trf.xlu1 }
0x339c   :  { %v10191_v39 = vcombine.low %v10167_v59, %v10183_v26  ;;  %v10192_v20 = vcombine.high %v10167_v59, %v10183_v26  ;;  %v10207_v17 = vcombine.low %v10174_v16, %v10190_v18  ;;  %v10208_v41 = vcombine.high %v10174_v16, %v10190_v18 }
0x339d   :  { %v10243_v57 = vcombine.low %v10080_v49, %v10144_v35  ;;  %v10244_v37 = vcombine.high %v10080_v49, %v10144_v35 }
0x339e   :  { %v10199_v48 = vrot.slane %v10191_v39, %v13152_v58  ;;  %v10206_v22 = vrot.slane %v10192_v20, %v13152_v58  ;;  %v10215_v19 = vrot.slane %v10207_v17, %v13152_v58  ;;  %v10222_v60 = vrot.slane %v10208_v41, %v13152_v58 }
0x339f   :  { %v10251_v12 = vrot.slane %v10243_v57, %v13150_v51  ;;  %v10258_v34 = vrot.slane %v10244_v37, %v13150_v51 }
0x33a0   :  { %v10295_v1 = vcombine.low %v10199_v48, %v10206_v22  ;;  %v11077_v15 = vcombine.high %v10199_v48, %v10206_v22  ;;  %v10311_v38 = vcombine.low %v10215_v19, %v10222_v60  ;;  %v11078_v55 = vcombine.high %v10215_v19, %v10222_v60 }
0x33a1   :  { %v10259_v36 = vcombine.low %v10235_v11, %v10251_v12  ;;  %v10260_v21 = vcombine.high %v10235_v11, %v10251_v12  ;;  %v10275_v29 = vcombine.low %v10242_v6, %v10258_v34  ;;  %v10276_v52 = vcombine.high %v10242_v6, %v10258_v34 }
0x33a2   :  { %v10302_v43 = vrot.slane %v10295_v1, %v13150_v51  ;;  %v10310_v31 = vrot.slane %v11077_v15, %v13150_v51  ;;  %v10318_v54 = vrot.slane %v10311_v38, %v13150_v51  ;;  %v10326_v3 = vrot.slane %v11078_v55, %v13150_v51  ;;  %v12657_v38 = vld [vmem:[#allocation8 + $0x37] ss:$0 sm:$0xff] }
0x33a3   :  { %v10267_v2 = vrot.slane %v10259_v36, %v13152_v58  ;;  %v10274_v61 = vrot.slane %v10260_v21, %v13152_v58  ;;  %v10283_v4 = vrot.slane %v10275_v29, %v13152_v58  ;;  %v10290_v45 = vrot.slane %v10276_v52, %v13152_v58 }
0x33a4   :  { %v10328_v44 = vcombine.high %v10302_v43, %v10310_v31  ;;  %v10344_v27 = vcombine.high %v10318_v54, %v10326_v3  ;;  %v10327_v42 = vcombine.low %v10302_v43, %v10310_v31  ;;  %v10343_v30 = vcombine.low %v10318_v54, %v10326_v3 }
0x33a5   :  { %v10363_v24 = vcombine.low %v10267_v2, %v10274_v61  ;;  %v11079_v8 = vcombine.high %v10267_v2, %v10274_v61  ;;  %v10379_v32 = vcombine.low %v10283_v4, %v10290_v45  ;;  %v11080_v63 = vcombine.high %v10283_v4, %v10290_v45 }
0x33a6   :  { %v10342_v62 = vrot.slane %v10328_v44, %v13152_v58  ;;  %v10358_v47 = vrot.slane %v10344_v27, %v13152_v58  ;;  %v10335_v56 = vrot.slane %v10327_v42, %v13152_v58  ;;  %v10351_v49 = vrot.slane %v10343_v30, %v13152_v58 }
0x33a7   :  { %v10370_v23 = vrot.slane %v10363_v24, %v13150_v51  ;;  %v10378_v5 = vrot.slane %v11079_v8, %v13150_v51  ;;  %v10386_v28 = vrot.slane %v10379_v32, %v13150_v51  ;;  %v10394_v0 = vrot.slane %v11080_v63, %v13150_v51  ;;  %v12658_v63 = vld [vmem:[#allocation8 + $0x3e] ss:$0 sm:$0xff] }
0x33a8   :  { %v10361_v40 = vcombine.low %v10342_v62, %v10358_v47  ;;  %v10360_v13 = vcombine.high %v10335_v56, %v10351_v49  ;;  %v10359_v46 = vcombine.low %v10335_v56, %v10351_v49  ;;  %v10362_v41 = vcombine.high %v10342_v62, %v10358_v47  ;;  %v12659_v49 = vld [vmem:[#allocation8 + $0x3f] ss:$0 sm:$0xff] }
0x33a9   :  { %v10396_v7 = vcombine.high %v10370_v23, %v10378_v5  ;;  %v10412_v59 = vcombine.high %v10386_v28, %v10394_v0  ;;  %v10395_v16 = vcombine.low %v10370_v23, %v10378_v5  ;;  %v10411_v26 = vcombine.low %v10386_v28, %v10394_v0 }
0x33aa   :  { %10441 = vrot.lane.b32.xlu1 %v10361_v40, %s12798_s15  ;;  %10433 = vrot.lane.b32.xlu0 %v10360_v13, %s12785_s28  ;;  %v12660_v40 = vld [vmem:[#allocation8 + $0x38] ss:$0 sm:$0xff] }
0x33ab   :  { %v10410_v18 = vrot.slane %v10396_v7, %v13152_v58  ;;  %v10426_v53 = vrot.slane %v10412_v59, %v13152_v58  ;;  %v10403_v50 = vrot.slane %v10395_v16, %v13152_v58  ;;  %v10419_v35 = vrot.slane %v10411_v26, %v13152_v58 }
0x33ad   :  { %v10430_v51 = vcombine.high %v10410_v18, %v10426_v53  ;;  %v10428_v39 = vcombine.high %v10403_v50, %v10419_v35  ;;  %v10427_v20 = vcombine.low %v10403_v50, %v10419_v35  ;;  %v10429_v17 = vcombine.low %v10410_v18, %v10426_v53  ;;  %v12661_v18 = vld [vmem:[#allocation8 + $0x39] ss:$0 sm:$0xff] }
0x33af   :  { %10451 = vrot.lane.b32.xlu0 %v10430_v51, %s12799_s16  ;;  %10435 = vrot.lane.b32.xlu1 %v10428_v39, %s12785_s28 }
0x33b3   :  { %10443 = vrot.lane.b32.xlu1 %v10429_v17, %s12798_s15 }
0x33b7   :  { %10449 = vrot.lane.b32.xlu1 %v10362_v41, %s12799_s16 }
0x341c   :  { %v10442_v57 = vpop.permute.xlu1 %10441  ;;  %v10434_v48 = vpop.permute.xlu0 %10433 }
0x341d   :  { %v10455_v19 = vsel %vm638_vm2, %v10359_v46, %v10434_v48 }
0x341e   :  { %v10457_v11 = vsel %vm955_vm3, %v10455_v19, %v10442_v57 }
0x3421   :  { %v10436_v37 = vpop.permute.xlu1 %10435  ;;  %v10452_v12 = vpop.permute.xlu0 %10451 }
0x3422   :  { %v10456_v58 = vsel %vm638_vm2, %v10427_v20, %v10436_v37 }
0x3425   :  { %v10444_v22 = vpop.permute.xlu1 %10443 }
0x3426   :  { %v10458_v60 = vsel %vm955_vm3, %v10456_v58, %v10444_v22 }
0x3427   :  { %v10460_v1 = vsel %vm1940_vm6, %v10458_v60, %v10452_v12 }
0x3429   :  { %v10450_v6 = vpop.permute.xlu1 %10449 }
0x342a   :  { %v10459_v34 = vsel %vm1940_vm6, %v10457_v11, %v10450_v6 }
0x342b   :  { %11933 = vmatprep.mubr.msk.f32.mxu0 %vm233_vm0, %v10459_v34 }
0x342c   :  { %11934 = vmatmul.mubr.msk.f32.vlgmr.msra.gmra.mrb[64].mxu0 %vm233_vm0, %v10460_v1 }
0x342d   :  { %12391 = vmatpush3.bf16.xpose.msk.msra.mxu0 %vm13734_vm8, %v13730_v14 }
0x342e   :  { %12394 = vmatprep.subr.msk.bf16.mxu0 %vm13734_vm8, %v13738_v25 }
0x3435   :  { %12397 = vmatpush3.bf16.xpose.msk.msra.mxu0 %vm13734_vm8, %v13738_v25 }
0x34ff   :  { %v11935_v15 = vpop.f32.mrb[64].mxu0 }
0x3500   :  { %v10539_v55 = vadd.f32 %v12657_v38, %v11935_v15  ;;  %v10533_v36 = vpop.f32.mrb[65].mxu0 }
0x3501   :  { %v10534_v21 = vadd.f32 %v12657_v38, %v10533_v36 }
0x3502   :  { %v10543_v29 = vadd.f32 %v10539_v55, %v14258_v9 }
0x3503   :  { %v10542_v52 = vadd.f32 %v10534_v21, %v14254_v33 }
0x3504   :  { %v10547_v43 = vsel %vm233_vm0, %v10543_v29, 0.0 }
0x3505   :  { %10548 = vadd.xlane.f32.xlu0 %v10547_v43  ;;  %v10544_v14 = vsel %vm233_vm0, %v10542_v52, 0.0  ;;  %v12662_v43 = vld [vmem:[#allocation8 + $0x40] ss:$0 sm:$0xff] }
0x3506   :  { %10545 = vadd.xlane.f32.xlu1 %v10544_v14 }
0x3592   :  { %v10549_v31 = vpop.xlane.xlu0 %10548 }
0x3593   :  { %v10551_v54 = vmul.f32 0.03125, %v10549_v31  ;;  %v10546_v3 = vpop.xlane.xlu1 %10545 }
0x3594   :  { %v10550_v10 = vmul.f32 0.03125, %v10546_v3 }
0x3595   :  { %v10553_v25 = vsub.f32 %v10543_v29, %v10551_v54  ;;  %v12663_v54 = vld [vmem:[#allocation8 + $0x41] ss:$0 sm:$0xff] }
0x3596   :  { %v10552_v2 = vsub.f32 %v10542_v52, %v10550_v10 }
0x3597   :  { %v10555_v45 = vmul.f32 %v10553_v25, %v10553_v25 }
0x3598   :  { %v10554_v61 = vmul.f32 %v10552_v2, %v10552_v2 }
0x3599   :  { %v10559_v9 = vsel %vm233_vm0, %v10555_v45, 0.0 }
0x359a   :  { %v10556_v4 = vsel %vm233_vm0, %v10554_v61, 0.0 }
0x359b   :  { %10557 = vadd.xlane.f32.xlu0 %v10556_v4 }
0x359f   :  { %10560 = vadd.xlane.f32.xlu0 %v10559_v9 }
0x3628   :  { %v10558_v33 = vpop.xlane.xlu0 %10557 }
0x3629   :  { %v10562_v44 = vmul.f32 0.03125, %v10558_v33 }
0x362b   :  { %v10564_v27 = vadd.f32 1e-05, %v10562_v44 }
0x362c   :  { %v10561_v42 = vpop.xlane.xlu0 %10560 }
0x362d   :  { %12633 = vrsqrt.f32 %v10564_v27  ;;  %v10563_v30 = vmul.f32 0.03125, %v10561_v42 }
0x362f   :  { %v10565_v24 = vadd.f32 1e-05, %v10563_v30 }
0x3631   :  { %12635 = vrsqrt.f32 %v10565_v24 }
0x3637   :  { %v12634_v8 = vpop.eup %12633 }
0x3638   :  { %v10568_v32 = vmul.f32 %v12634_v8, %v10552_v2 }
0x363a   :  { %v10570_v62 = vmul.f32 %v12658_v63, %v10568_v32 }
0x363b   :  { %v12636_v47 = vpop.eup %12635 }
0x363c   :  { %v10569_v56 = vmul.f32 %v12636_v47, %v10553_v25  ;;  %v10572_v23 = vadd.f32 %v12659_v49, %v10570_v62 }
0x363e   :  { %11952 = vmatprep.mubr.msk.f32.mxu1 %vm233_vm0, %v10572_v23  ;;  %v10571_v5 = vmul.f32 %v12658_v63, %v10569_v56 }
0x3640   :  { %v10573_v28 = vadd.f32 %v12659_v49, %v10571_v5 }
0x3642   :  { %11953 = vmatmul.mubr.msk.f32.vlgmr.msra.gmra.mrb[64].mxu1 %vm233_vm0, %v10573_v28 }
0x3715   :  { %v11954_v0 = vpop.f32.mrb[64].mxu1 }
0x3716   :  { %v10652_v13 = vadd.f32 %v12660_v40, %v11954_v0  ;;  %v10646_v46 = vpop.f32.mrb[65].mxu1 }
0x3717   :  { %v10647_v7 = vadd.f32 %v12660_v40, %v10646_v46 }
0x3718   :  { %v10656_v16 = vmax.f32 %v10652_v13, 0.0 }
0x3719   :  { %v10655_v59 = vmax.f32 %v10647_v7, 0.0 }
0x371b   :  { %11963 = vmatprep.mubr.msk.f32.mxu0 %vm5665_vm7, %v10655_v59 }
0x371c   :  { %11964 = vmatmul.mubr.msk.f32.vlgmr.msra.gmra.mrb[66].mxu0 %vm5665_vm7, %v10656_v16 }
0x37ef   :  { %v11965_v26 = vpop.f32.mrb[66].mxu0 }
0x37f0   :  { %v10735_v53 = vadd.f32 %v12661_v18, %v11965_v26  ;;  %v10729_v50 = vpop.f32.mrb[67].mxu0 }
0x37f1   :  { %v10730_v35 = vadd.f32 %v12661_v18, %v10729_v50 }
0x37f2   :  { %v10739_v51 = vadd.f32 %v10735_v53, %v10573_v28 }
0x37f3   :  { %v10738_v39 = vadd.f32 %v10730_v35, %v10572_v23 }
0x37f4   :  { %v10743_v20 = vsel %vm233_vm0, %v10739_v51, 0.0 }
0x37f5   :  { %10744 = vadd.xlane.f32.xlu0 %v10743_v20  ;;  %v10740_v17 = vsel %vm233_vm0, %v10738_v39, 0.0 }
0x37f6   :  { %10741 = vadd.xlane.f32.xlu1 %v10740_v17 }
0x3882   :  { %v10745_v41 = vpop.xlane.xlu0 %10744 }
0x3883   :  { %v10747_v57 = vmul.f32 0.03125, %v10745_v41  ;;  %v10742_v37 = vpop.xlane.xlu1 %10741 }
0x3884   :  { %v10746_v48 = vmul.f32 0.03125, %v10742_v37 }
0x3885   :  { %v10749_v22 = vsub.f32 %v10739_v51, %v10747_v57 }
0x3886   :  { %v10748_v19 = vsub.f32 %v10738_v39, %v10746_v48 }
0x3887   :  { %v10751_v58 = vmul.f32 %v10749_v22, %v10749_v22 }
0x3888   :  { %v10750_v60 = vmul.f32 %v10748_v19, %v10748_v19 }
0x3889   :  { %v10755_v11 = vsel %vm233_vm0, %v10751_v58, 0.0 }
0x388a   :  { %10756 = vadd.xlane.f32.xlu0 %v10755_v11  ;;  %v10752_v6 = vsel %vm233_vm0, %v10750_v60, 0.0 }
0x388b   :  { %10753 = vadd.xlane.f32.xlu1 %v10752_v6 }
0x3917   :  { %v10757_v12 = vpop.xlane.xlu0 %10756 }
0x3918   :  { %v10759_v34 = vmul.f32 0.03125, %v10757_v12  ;;  %v10754_v1 = vpop.xlane.xlu1 %10753 }
0x3919   :  { %v10758_v15 = vmul.f32 0.03125, %v10754_v1 }
0x391a   :  { %v10761_v38 = vadd.f32 1e-05, %v10759_v34 }
0x391b   :  { %v10760_v55 = vadd.f32 1e-05, %v10758_v15 }
0x391c   :  { %12637 = vrsqrt.f32 %v10761_v38 }
0x391d   :  { %12639 = vrsqrt.f32 %v10760_v55 }
0x3926   :  { %v12638_v36 = vpop.eup %12637 }
0x3927   :  { %v12640_v21 = vpop.eup %12639  ;;  %v10765_v29 = vmul.f32 %v12638_v36, %v10749_v22 }
0x3928   :  { %v10764_v52 = vmul.f32 %v12640_v21, %v10748_v19 }
0x3929   :  { %v10767_v14 = vmul.f32 %v12662_v43, %v10765_v29 }
0x392a   :  { %v10766_v31 = vmul.f32 %v12662_v43, %v10764_v52 }
0x392b   :  { %v10769_v3 = vadd.f32 %v12663_v54, %v10767_v14 }
0x392c   :  { %v10768_v10 = vadd.f32 %v12663_v54, %v10766_v31 }
0x392d   :  { %10771 = vst.msk [vmem:[#allocation10 + $0x8] sm:$0xff] %vm233_vm0, %v10769_v3 }
0x392e   :  { %10770 = vst.msk [vmem:[#allocation10] sm:$0xff] %vm233_vm0, %v10768_v10 }
0x392f   :  { %12763 = shalt.err (!%p12760_p8)
}
0x3930   :  { %s12764_s23 = scalar_lea.hbm %s14453_s4, 256 }
0x3931   :  { %p12765_p9 = scmp.ne.s32.totalorder %s14453_s4, %s12764_s23  ;;  %p12768_p10 = scmp.lt.u32.totalorder %s12764_s23, %s14453_s4 }
0x3933   :  { %p12770_p11 = pnand %p12768_p10, %p12765_p9 }
0x3935   :  { %12773 = shalt.err (!%p12770_p11)
}
0x3936   :  { %10783 = dma.vmem_to_hbm [thread:$0]  %s10778_s19, 256, %s14453_s4, [#allocation4], %s12784_s27, %s12784_s27, %s12785_s28  }
0x3937   :  { %12780 = dma.done.wait [#allocation4], 256  }
0x3938   :  { %12781 = vsyncadd [#allocation4], 4294967040 }
0x3939   :  { %10787 = vsyncpa [#allocation3], 1 }
0x393a   :  { %10788 = vsyncpa [#allocation6], 1 }
0x393b   :  { %10789 = vsyncpa [#allocation9], 1 }
0x393c   :  { %10790 = vsyncpa [#allocation4], 1 }

</bundles_post_ra>
